<compile_context>
chip_gen: v7x
topology: tpu7x:2x2x1
jax: 0.10.0
libtpu: 0.0.40
codegen_flags: <defaults>
</compile_context>

<pallas_src>
import numpy as np
import jax
import jax.numpy as jnp
from jax.experimental import pallas as pl
from jax.experimental.pallas import tpu as pltpu  # noqa: F401

# ----------------------- small, consistent config -----------------------
IMG = 16          # img_size
PATCH = 8         # patch_size
IN_CHANS = 3
FRAMES = 4        # all_frames
TUBELET = 2       # tubelet_size
EMBED = 128       # embed_dim
DEPTH = 2
HEADS = 4
MLP_RATIO = 4
VERB = 8          # verb_num_classes
NOUN = 16         # noun_num_classes
B = 2
EPS = 1e-5        # nn.LayerNorm default eps

N_T = FRAMES // TUBELET
N_H = IMG // PATCH
N_W = IMG // PATCH
NTOK = N_T * N_H * N_W                       # 8 tokens
K = IN_CHANS * TUBELET * PATCH * PATCH       # 384 = flattened patch size
HDIM = EMBED // HEADS                        # 32
MLP_H = EMBED * MLP_RATIO                    # 512
M = B * NTOK                                 # 16 token rows
NCLS = VERB + NOUN                           # 24
HEAD_PAD = 128                               # lane-dense head output width
SCALE = HDIM ** -0.5


# ----------------------- fused kernel -----------------------
def _layernorm(v, w, b):
    mu = jnp.mean(v, axis=-1, keepdims=True)
    var = jnp.mean(jnp.square(v - mu), axis=-1, keepdims=True)
    return (v - mu) * jax.lax.rsqrt(var + EPS) * w + b


def fused_vit_kernel(patches_ref, pe_w_ref, bias_pos_ref,
                     ln1w_ref, ln1b_ref, qw_ref, kw_ref, vw_ref, pw_ref, pb_ref,
                     ln2w_ref, ln2b_ref, f1w_ref, f1b_ref, f2w_ref, f2b_ref,
                     fn1w_ref, fn1b_ref, fn2w_ref, fn2b_ref, hw_ref, hb_ref,
                     o_ref):
    # ---------- patch embed: (M, K) @ (K, D) + (conv_bias + pos_embed) ----------
    tok = jnp.dot(patches_ref[...], pe_w_ref[...],
                  preferred_element_type=jnp.float32)                    # (M, D) f32
    tok = tok.reshape(B, NTOK, EMBED) + bias_pos_ref[...][None]
    x = tok.reshape(M, EMBED)                                            # residual stream, f32

    # ---------- transformer blocks (static unrolled; all weights VMEM-resident) ----------
    for l in range(DEPTH):
        # --- attention ---
        xn = _layernorm(x, ln1w_ref[l], ln1b_ref[l]).astype(jnp.bfloat16)   # (M, D)
        xh = jnp.broadcast_to(xn[None], (HEADS, M, EMBED))                  # (H, M, D)
        # per-head weights come pre-split from the wrapper -> no lane slicing in-kernel
        q = jnp.einsum('hme,hed->hmd', xh, qw_ref[l],
                       preferred_element_type=jnp.float32)                  # (H, M, Hd)
        k = jnp.einsum('hme,hed->hmd', xh, kw_ref[l],
                       preferred_element_type=jnp.float32)
        v = jnp.einsum('hme,hed->hmd', xh, vw_ref[l],
                       preferred_element_type=jnp.float32)
        # (H, B*N, Hd) -> (H*B, N, Hd): pure leading-dim regroup (row-major compatible)
        qz = q.reshape(HEADS * B, NTOK, HDIM)
        kz = k.reshape(HEADS * B, NTOK, HDIM)
        vz = v.reshape(HEADS * B, NTOK, HDIM)

        s = jnp.einsum('zqd,zkd->zqk', qz, kz,
                       preferred_element_type=jnp.float32) * SCALE          # (H*B, N, N)
        s = s - jnp.max(s, axis=-1, keepdims=True)                          # f32 softmax
        p = jnp.exp(s)
        p = p / jnp.sum(p, axis=-1, keepdims=True)
        o = jnp.einsum('zqk,zkd->zqd', p, vz,
                       preferred_element_type=jnp.float32)                  # (H*B, N, Hd)
        o = o.reshape(HEADS, M, HDIM).astype(jnp.bfloat16)                  # (H, M, Hd)
        # sum_h o_h @ projW_h  ==  concat_heads(o) @ projW   (no lane concat needed)
        per_head = jnp.einsum('hmd,hde->hme', o, pw_ref[l],
                              preferred_element_type=jnp.float32)           # (H, M, D)
        attn = jnp.sum(per_head, axis=0) + pb_ref[l]
        x = x + attn

        # --- MLP ---
        xn2 = _layernorm(x, ln2w_ref[l], ln2b_ref[l]).astype(jnp.bfloat16)
        hid = jnp.dot(xn2, f1w_ref[l],
                      preferred_element_type=jnp.float32) + f1b_ref[l]      # (M, MLP_H) f32
        # TODO(synk): PyTorch nn.GELU default is exact erf-GELU; tanh approximation
        # used here for robust Mosaic lowering (max abs diff ~1e-3).
        hid = jax.nn.gelu(hid, approximate=True).astype(jnp.bfloat16)
        mlp = jnp.dot(hid, f2w_ref[l],
                      preferred_element_type=jnp.float32) + f2b_ref[l]
        x = x + mlp

    # ---------- mean pool + fused dual head (block-diagonal, lane-dense output) ----------
    xm = jnp.mean(x.reshape(B, NTOK, EMBED), axis=1)                        # (B, D)
    mu = jnp.mean(xm, axis=-1, keepdims=True)
    var = jnp.mean(jnp.square(xm - mu), axis=-1, keepdims=True)
    xhat = (xm - mu) * jax.lax.rsqrt(var + EPS)
    x1 = xhat * fn1w_ref[...] + fn1b_ref[...]                               # fc_norm
    x2 = xhat * fn2w_ref[...] + fn2b_ref[...]                               # fc_norm2
    xcat = jnp.concatenate([x1, x2], axis=-1).astype(jnp.bfloat16)          # (B, 2D), 128-aligned
    o_ref[...] = jnp.dot(xcat, hw_ref[...],
                         preferred_element_type=jnp.float32) + hb_ref[...]  # (B, HEAD_PAD)


# ----------------------- wrappers (JAX glue) -----------------------
def sinusoid_pos_table(n_position, d_hid):
    pos = np.arange(n_position, dtype=np.float64)[:, None]
    i = np.arange(d_hid, dtype=np.float64)[None, :]
    angle = pos / np.power(10000.0, 2.0 * (i // 2) / d_hid)
    table = np.zeros((n_position, d_hid), dtype=np.float32)
    table[:, 0::2] = np.sin(angle[:, 0::2])
    table[:, 1::2] = np.cos(angle[:, 1::2])
    return jnp.asarray(table)


def prepare_kernel_params(params):
    """Host-side (XLA) repack of module-style params into the fused-kernel layout."""
    bf16 = jnp.bfloat16
    conv_w, conv_b, pos = params["conv_w"], params["conv_b"], params["pos"]
    pe_w = conv_w.reshape(EMBED, K).T.astype(bf16)                    # (K, D)
    bias_pos = (pos + conv_b[None, :]).astype(jnp.float32)            # (NTOK, D)

    (ln1w, ln1b, qkvw, projw, projb,
     ln2w, ln2b, fc1w, fc1b, fc2w, fc2b) = params["blocks"]

    def split_heads(w):       # (DEPTH, D, D) -> (DEPTH, HEADS, D, HDIM)
        return w.reshape(DEPTH, EMBED, HEADS, HDIM).transpose(0, 2, 1, 3).astype(bf16)

    qw = split_heads(qkvw[:, :, 0 * EMBED:1 * EMBED])
    kw = split_heads(qkvw[:, :, 1 * EMBED:2 * EMBED])
    vw = split_heads(qkvw[:, :, 2 * EMBED:3 * EMBED])
    pw = projw.reshape(DEPTH, HEADS, HDIM, EMBED).astype(bf16)        # rows are (h, d)

    fn1w, fn1b, h1w, h1b, fn2w, fn2b, h2w, h2b = params["head"]
    # block-diagonal packed head weight, zero-padded to a lane-dense 128-wide output
    hw = jnp.zeros((2 * EMBED, HEAD_PAD), jnp.float32)
    hw = hw.at[:EMBED, :VERB].set(h1w)
    hw = hw.at[EMBED:, VERB:NCLS].set(h2w)
    hw = hw.astype(bf16)
    hb = jnp.zeros((1, HEAD_PAD), jnp.float32)
    hb = hb.at[:, :VERB].set(h1b)
    hb = hb.at[:, VERB:NCLS].set(h2b)

    return (pe_w, bias_pos,
            ln1w, ln1b, qw, kw, vw, pw, projb,
            ln2w, ln2b, fc1w.astype(bf16), fc1b, fc2w.astype(bf16), fc2b,
            fn1w, fn1b, fn2w, fn2b, hw, hb)


@jax.jit
def vision_transformer_forward(x, params):
    kparams = prepare_kernel_params(params)
    # Non-overlapping Conv3d patch gather == pure layout op, done host/XLA side.
    xr = x.reshape(B, IN_CHANS, N_T, TUBELET, N_H, PATCH, N_W, PATCH)
    xr = xr.transpose(0, 2, 4, 6, 1, 3, 5, 7)            # (B, T', H', W', C, tub, p, p)
    patches = xr.reshape(M, K).astype(jnp.bfloat16)
    # Single fused kernel; everything fits VMEM with huge headroom on v5e/v6e/v7x.
    # (A parallel batch grid axis for v7x's second TensorCore is only worthwhile at
    #  much larger batch sizes.)
    out = pl.pallas_call(
        fused_vit_kernel,
        out_shape=jax.ShapeDtypeStruct((B, HEAD_PAD), jnp.float32),
    )(patches, *kparams)
    return out[:, :NCLS]                                  # (B, VERB + NOUN)


# ----------------------- deterministic parameter init (module-style) -----------------------
def init_params(key):
    ks = iter(jax.random.split(key, 32))
    nrm = lambda shape: 0.02 * jax.random.normal(next(ks), shape, jnp.float32)
    ones = lambda s: jnp.ones(s, jnp.float32)
    zeros = lambda s: jnp.zeros(s, jnp.float32)

    conv_w = nrm((EMBED, IN_CHANS, TUBELET, PATCH, PATCH))
    conv_b = jnp.zeros((EMBED,), jnp.float32)
    pos = sinusoid_pos_table(NTOK, EMBED)

    blocks = [
        ones((DEPTH, 1, EMBED)),                 # ln1 weight
        zeros((DEPTH, 1, EMBED)),                # ln1 bias
        nrm((DEPTH, EMBED, 3 * EMBED)),          # qkv weight (qkv_bias=False)
        nrm((DEPTH, EMBED, EMBED)),              # proj weight
        zeros((DEPTH, 1, EMBED)),                # proj bias
        ones((DEPTH, 1, EMBED)),                 # ln2 weight
        zeros((DEPTH, 1, EMBED)),                # ln2 bias
        nrm((DEPTH, EMBED, MLP_H)),              # mlp fc1 weight
        zeros((DEPTH, 1, MLP_H)),                # mlp fc1 bias
        nrm((DEPTH, MLP_H, EMBED)),              # mlp fc2 weight
        zeros((DEPTH, 1, EMBED)),                # mlp fc2 bias
    ]
    # NOTE: the reference multiplies head weights by init_scale=0.0; we keep nonzero
    # weights so the kernel output is nontrivial (forward semantics are unchanged).
    head = [
        ones((1, EMBED)), zeros((1, EMBED)),     # fc_norm
        nrm((EMBED, VERB)), zeros((1, VERB)),    # head (verb)
        ones((1, EMBED)), zeros((1, EMBED)),     # fc_norm2
        nrm((EMBED, NOUN)), zeros((1, NOUN)),    # head2 (noun)
    ]
    return {"conv_w": conv_w, "conv_b": conv_b, "pos": pos,
            "blocks": blocks, "head": head}


if __name__ == "__main__":
    key = jax.random.PRNGKey(0)
    k_x, k_p = jax.random.split(key)
    x = jax.random.normal(k_x, (B, IN_CHANS, FRAMES, IMG, IMG), jnp.float32)
    params = init_params(k_p)

    out = vision_transformer_forward(x, params)
    out = jax.block_until_ready(out)
    assert out.shape == (B, NCLS), out.shape
    assert bool(jnp.all(jnp.isfinite(out)))
    print("KERNEL_OK")
</pallas_src>

<mosaic_0001>
module attributes {stable_mosaic.version = 11 : i64} {
  func.func @fused_vit_kernel(%arg0: memref<16x384xbf16, #tpu.memory_space<vmem>>, %arg1: memref<384x128xbf16, #tpu.memory_space<vmem>>, %arg2: memref<8x128xf32, #tpu.memory_space<vmem>>, %arg3: memref<2x1x128xf32, #tpu.memory_space<vmem>>, %arg4: memref<2x1x128xf32, #tpu.memory_space<vmem>>, %arg5: memref<2x4x128x32xbf16, #tpu.memory_space<vmem>>, %arg6: memref<2x4x128x32xbf16, #tpu.memory_space<vmem>>, %arg7: memref<2x4x128x32xbf16, #tpu.memory_space<vmem>>, %arg8: memref<2x4x32x128xbf16, #tpu.memory_space<vmem>>, %arg9: memref<2x1x128xf32, #tpu.memory_space<vmem>>, %arg10: memref<2x1x128xf32, #tpu.memory_space<vmem>>, %arg11: memref<2x1x128xf32, #tpu.memory_space<vmem>>, %arg12: memref<2x128x512xbf16, #tpu.memory_space<vmem>>, %arg13: memref<2x1x512xf32, #tpu.memory_space<vmem>>, %arg14: memref<2x512x128xbf16, #tpu.memory_space<vmem>>, %arg15: memref<2x1x128xf32, #tpu.memory_space<vmem>>, %arg16: memref<1x128xf32, #tpu.memory_space<vmem>>, %arg17: memref<1x128xf32, #tpu.memory_space<vmem>>, %arg18: memref<1x128xf32, #tpu.memory_space<vmem>>, %arg19: memref<1x128xf32, #tpu.memory_space<vmem>>, %arg20: memref<256x128xbf16, #tpu.memory_space<vmem>>, %arg21: memref<1x128xf32, #tpu.memory_space<vmem>>, %arg22: memref<2x128xf32, #tpu.memory_space<vmem>>) attributes {dimension_semantics = [], scalar_prefetch = 0 : i64, scratch_operands = 0 : i64, tpu.core_type = #tpu.core_type<tc>} {
    %c0 = arith.constant 0 : index
    %c0_0 = arith.constant 0 : index
    %0 = vector.load %arg0[%c0, %c0_0] : memref<16x384xbf16, #tpu.memory_space<vmem>>, vector<16x384xbf16>
    %c0_1 = arith.constant 0 : index
    %c0_2 = arith.constant 0 : index
    %1 = vector.load %arg1[%c0_1, %c0_2] : memref<384x128xbf16, #tpu.memory_space<vmem>>, vector<384x128xbf16>
    %cst = arith.constant dense<0.000000e+00> : vector<16x128xf32>
    %2 = tpu.matmul %0, %1, %cst {dimension_numbers = #tpu.dot_dimension_numbers<[1], [0], [0], [1], [0, 0, 1, 1], [], []>} : vector<16x384xbf16>, vector<384x128xbf16>, vector<16x128xf32> -> vector<16x128xf32>
    %3 = vector.shape_cast %2 : vector<16x128xf32> to vector<2x8x128xf32>
    %c0_3 = arith.constant 0 : index
    %c0_4 = arith.constant 0 : index
    %4 = vector.load %arg2[%c0_3, %c0_4] : memref<8x128xf32, #tpu.memory_space<vmem>>, vector<8x128xf32>
    %5 = vector.shape_cast %4 : vector<8x128xf32> to vector<1x8x128xf32>
    %6 = vector.broadcast %5 : vector<1x8x128xf32> to vector<2x8x128xf32>
    %7 = arith.addf %3, %6 : vector<2x8x128xf32>
    %8 = vector.shape_cast %7 : vector<2x8x128xf32> to vector<16x128xf32>
    %c0_5 = arith.constant 0 : index
    %c0_6 = arith.constant 0 : index
    %c0_7 = arith.constant 0 : index
    %9 = vector.load %arg3[%c0_5, %c0_6, %c0_7] : memref<2x1x128xf32, #tpu.memory_space<vmem>>, vector<1x1x128xf32>
    %10 = vector.shape_cast %9 : vector<1x1x128xf32> to vector<1x128xf32>
    %c0_8 = arith.constant 0 : index
    %c0_9 = arith.constant 0 : index
    %c0_10 = arith.constant 0 : index
    %11 = vector.load %arg4[%c0_8, %c0_9, %c0_10] : memref<2x1x128xf32, #tpu.memory_space<vmem>>, vector<1x1x128xf32>
    %12 = vector.shape_cast %11 : vector<1x1x128xf32> to vector<1x128xf32>
    %cst_11 = arith.constant dense<0.000000e+00> : vector<16xf32>
    %13 = vector.multi_reduction <add>, %8, %cst_11 [1] : vector<16x128xf32> to vector<16xf32>
    %14 = vector.shape_cast %13 : vector<16xf32> to vector<16x1xf32>
    %cst_12 = arith.constant 1.280000e+02 : f32
    %15 = vector.broadcast %cst_12 : f32 to vector<16x1xf32>
    %16 = arith.divf %14, %15 : vector<16x1xf32>
    %17 = vector.broadcast %16 : vector<16x1xf32> to vector<16x128xf32>
    %18 = arith.subf %8, %17 : vector<16x128xf32>
    %19 = arith.mulf %18, %18 : vector<16x128xf32>
    %cst_13 = arith.constant dense<0.000000e+00> : vector<16xf32>
    %20 = vector.multi_reduction <add>, %19, %cst_13 [1] : vector<16x128xf32> to vector<16xf32>
    %21 = vector.shape_cast %20 : vector<16xf32> to vector<16x1xf32>
    %cst_14 = arith.constant 1.280000e+02 : f32
    %22 = vector.broadcast %cst_14 : f32 to vector<16x1xf32>
    %23 = arith.divf %21, %22 : vector<16x1xf32>
    %24 = vector.broadcast %16 : vector<16x1xf32> to vector<16x128xf32>
    %25 = arith.subf %8, %24 : vector<16x128xf32>
    %cst_15 = arith.constant 9.99999974E-6 : f32
    %26 = vector.broadcast %cst_15 : f32 to vector<16x1xf32>
    %27 = arith.addf %23, %26 : vector<16x1xf32>
    %28 = math.rsqrt %27 : vector<16x1xf32>
    %29 = vector.broadcast %28 : vector<16x1xf32> to vector<16x128xf32>
    %30 = arith.mulf %25, %29 : vector<16x128xf32>
    %31 = vector.broadcast %10 : vector<1x128xf32> to vector<16x128xf32>
    %32 = arith.mulf %30, %31 : vector<16x128xf32>
    %33 = vector.broadcast %12 : vector<1x128xf32> to vector<16x128xf32>
    %34 = arith.addf %32, %33 : vector<16x128xf32>
    %35 = arith.truncf %34 : vector<16x128xf32> to vector<16x128xbf16>
    %36 = vector.shape_cast %35 : vector<16x128xbf16> to vector<1x16x128xbf16>
    %37 = vector.shape_cast %36 : vector<1x16x128xbf16> to vector<1x16x128xbf16>
    %38 = vector.broadcast %37 : vector<1x16x128xbf16> to vector<4x16x128xbf16>
    %c0_16 = arith.constant 0 : index
    %c0_17 = arith.constant 0 : index
    %c0_18 = arith.constant 0 : index
    %c0_19 = arith.constant 0 : index
    %39 = vector.load %arg5[%c0_16, %c0_17, %c0_18, %c0_19] : memref<2x4x128x32xbf16, #tpu.memory_space<vmem>>, vector<1x4x128x32xbf16>
    %40 = vector.shape_cast %39 : vector<1x4x128x32xbf16> to vector<4x128x32xbf16>
    "tpu.trace_start"() <{level = 10 : i32, message = "hme,hed->hmd"}> : () -> ()
    %cst_20 = arith.constant dense<0.000000e+00> : vector<4x16x32xf32>
    %41 = tpu.matmul %38, %40, %cst_20 {dimension_numbers = #tpu.dot_dimension_numbers<[2], [1], [1], [2], [0, 0, 0, 1, 1, 2], [0], [0]>} : vector<4x16x128xbf16>, vector<4x128x32xbf16>, vector<4x16x32xf32> -> vector<4x16x32xf32>
    "tpu.trace_stop"() : () -> ()
    %c0_21 = arith.constant 0 : index
    %c0_22 = arith.constant 0 : index
    %c0_23 = arith.constant 0 : index
    %c0_24 = arith.constant 0 : index
    %42 = vector.load %arg6[%c0_21, %c0_22, %c0_23, %c0_24] : memref<2x4x128x32xbf16, #tpu.memory_space<vmem>>, vector<1x4x128x32xbf16>
    %43 = vector.shape_cast %42 : vector<1x4x128x32xbf16> to vector<4x128x32xbf16>
    "tpu.trace_start"() <{level = 10 : i32, message = "hme,hed->hmd"}> : () -> ()
    %cst_25 = arith.constant dense<0.000000e+00> : vector<4x16x32xf32>
    %44 = tpu.matmul %38, %43, %cst_25 {dimension_numbers = #tpu.dot_dimension_numbers<[2], [1], [1], [2], [0, 0, 0, 1, 1, 2], [0], [0]>} : vector<4x16x128xbf16>, vector<4x128x32xbf16>, vector<4x16x32xf32> -> vector<4x16x32xf32>
    "tpu.trace_stop"() : () -> ()
    %c0_26 = arith.constant 0 : index
    %c0_27 = arith.constant 0 : index
    %c0_28 = arith.constant 0 : index
    %c0_29 = arith.constant 0 : index
    %45 = vector.load %arg7[%c0_26, %c0_27, %c0_28, %c0_29] : memref<2x4x128x32xbf16, #tpu.memory_space<vmem>>, vector<1x4x128x32xbf16>
    %46 = vector.shape_cast %45 : vector<1x4x128x32xbf16> to vector<4x128x32xbf16>
    "tpu.trace_start"() <{level = 10 : i32, message = "hme,hed->hmd"}> : () -> ()
    %cst_30 = arith.constant dense<0.000000e+00> : vector<4x16x32xf32>
    %47 = tpu.matmul %38, %46, %cst_30 {dimension_numbers = #tpu.dot_dimension_numbers<[2], [1], [1], [2], [0, 0, 0, 1, 1, 2], [0], [0]>} : vector<4x16x128xbf16>, vector<4x128x32xbf16>, vector<4x16x32xf32> -> vector<4x16x32xf32>
    "tpu.trace_stop"() : () -> ()
    %48 = vector.shape_cast %41 : vector<4x16x32xf32> to vector<8x8x32xf32>
    %49 = vector.shape_cast %44 : vector<4x16x32xf32> to vector<8x8x32xf32>
    %50 = vector.shape_cast %47 : vector<4x16x32xf32> to vector<8x8x32xf32>
    "tpu.trace_start"() <{level = 10 : i32, message = "zqd,zkd->zqk"}> : () -> ()
    %cst_31 = arith.constant dense<0.000000e+00> : vector<8x8x8xf32>
    %51 = tpu.matmul %48, %49, %cst_31 {dimension_numbers = #tpu.dot_dimension_numbers<[2], [2], [1], [1], [0, 0, 0, 1, 1, 1], [0], [0]>} : vector<8x8x32xf32>, vector<8x8x32xf32>, vector<8x8x8xf32> -> vector<8x8x8xf32>
    "tpu.trace_stop"() : () -> ()
    %cst_32 = arith.constant 0.176776692 : f32
    %52 = vector.broadcast %cst_32 : f32 to vector<8x8x8xf32>
    %53 = arith.mulf %51, %52 : vector<8x8x8xf32>
    %cst_33 = arith.constant dense<0xFF800000> : vector<8x8xf32>
    %54 = vector.multi_reduction <maximumf>, %53, %cst_33 [2] : vector<8x8x8xf32> to vector<8x8xf32>
    %55 = vector.shape_cast %54 : vector<8x8xf32> to vector<8x8x1xf32>
    %56 = vector.broadcast %55 : vector<8x8x1xf32> to vector<8x8x8xf32>
    %57 = arith.subf %53, %56 : vector<8x8x8xf32>
    %58 = math.exp %57 : vector<8x8x8xf32>
    %cst_34 = arith.constant dense<0.000000e+00> : vector<8x8xf32>
    %59 = vector.multi_reduction <add>, %58, %cst_34 [2] : vector<8x8x8xf32> to vector<8x8xf32>
    %60 = vector.shape_cast %59 : vector<8x8xf32> to vector<8x8x1xf32>
    %61 = vector.broadcast %60 : vector<8x8x1xf32> to vector<8x8x8xf32>
    %62 = arith.divf %58, %61 : vector<8x8x8xf32>
    "tpu.trace_start"() <{level = 10 : i32, message = "zqk,zkd->zqd"}> : () -> ()
    %cst_35 = arith.constant dense<0.000000e+00> : vector<8x8x32xf32>
    %63 = tpu.matmul %62, %50, %cst_35 {dimension_numbers = #tpu.dot_dimension_numbers<[2], [1], [1], [2], [0, 0, 0, 1, 1, 2], [0], [0]>} : vector<8x8x8xf32>, vector<8x8x32xf32>, vector<8x8x32xf32> -> vector<8x8x32xf32>
    "tpu.trace_stop"() : () -> ()
    %64 = vector.shape_cast %63 : vector<8x8x32xf32> to vector<4x16x32xf32>
    %65 = arith.truncf %64 : vector<4x16x32xf32> to vector<4x16x32xbf16>
    %c0_36 = arith.constant 0 : index
    %c0_37 = arith.constant 0 : index
    %c0_38 = arith.constant 0 : index
    %c0_39 = arith.constant 0 : index
    %66 = vector.load %arg8[%c0_36, %c0_37, %c0_38, %c0_39] : memref<2x4x32x128xbf16, #tpu.memory_space<vmem>>, vector<1x4x32x128xbf16>
    %67 = vector.shape_cast %66 : vector<1x4x32x128xbf16> to vector<4x32x128xbf16>
    "tpu.trace_start"() <{level = 10 : i32, message = "hmd,hde->hme"}> : () -> ()
    %cst_40 = arith.constant dense<0.000000e+00> : vector<4x16x128xf32>
    %68 = tpu.matmul %65, %67, %cst_40 {dimension_numbers = #tpu.dot_dimension_numbers<[2], [1], [1], [2], [0, 0, 0, 1, 1, 2], [0], [0]>} : vector<4x16x32xbf16>, vector<4x32x128xbf16>, vector<4x16x128xf32> -> vector<4x16x128xf32>
    "tpu.trace_stop"() : () -> ()
    %cst_41 = arith.constant dense<0.000000e+00> : vector<16x128xf32>
    %69 = vector.multi_reduction <add>, %68, %cst_41 [0] : vector<4x16x128xf32> to vector<16x128xf32>
    %c0_42 = arith.constant 0 : index
    %c0_43 = arith.constant 0 : index
    %c0_44 = arith.constant 0 : index
    %70 = vector.load %arg9[%c0_42, %c0_43, %c0_44] : memref<2x1x128xf32, #tpu.memory_space<vmem>>, vector<1x1x128xf32>
    %71 = vector.shape_cast %70 : vector<1x1x128xf32> to vector<1x128xf32>
    %72 = vector.broadcast %71 : vector<1x128xf32> to vector<16x128xf32>
    %73 = arith.addf %69, %72 : vector<16x128xf32>
    %74 = arith.addf %8, %73 : vector<16x128xf32>
    %c0_45 = arith.constant 0 : index
    %c0_46 = arith.constant 0 : index
    %c0_47 = arith.constant 0 : index
    %75 = vector.load %arg10[%c0_45, %c0_46, %c0_47] : memref<2x1x128xf32, #tpu.memory_space<vmem>>, vector<1x1x128xf32>
    %76 = vector.shape_cast %75 : vector<1x1x128xf32> to vector<1x128xf32>
    %c0_48 = arith.constant 0 : index
    %c0_49 = arith.constant 0 : index
    %c0_50 = arith.constant 0 : index
    %77 = vector.load %arg11[%c0_48, %c0_49, %c0_50] : memref<2x1x128xf32, #tpu.memory_space<vmem>>, vector<1x1x128xf32>
    %78 = vector.shape_cast %77 : vector<1x1x128xf32> to vector<1x128xf32>
    %cst_51 = arith.constant dense<0.000000e+00> : vector<16xf32>
    %79 = vector.multi_reduction <add>, %74, %cst_51 [1] : vector<16x128xf32> to vector<16xf32>
    %80 = vector.shape_cast %79 : vector<16xf32> to vector<16x1xf32>
    %cst_52 = arith.constant 1.280000e+02 : f32
    %81 = vector.broadcast %cst_52 : f32 to vector<16x1xf32>
    %82 = arith.divf %80, %81 : vector<16x1xf32>
    %83 = vector.broadcast %82 : vector<16x1xf32> to vector<16x128xf32>
    %84 = arith.subf %74, %83 : vector<16x128xf32>
    %85 = arith.mulf %84, %84 : vector<16x128xf32>
    %cst_53 = arith.constant dense<0.000000e+00> : vector<16xf32>
    %86 = vector.multi_reduction <add>, %85, %cst_53 [1] : vector<16x128xf32> to vector<16xf32>
    %87 = vector.shape_cast %86 : vector<16xf32> to vector<16x1xf32>
    %cst_54 = arith.constant 1.280000e+02 : f32
    %88 = vector.broadcast %cst_54 : f32 to vector<16x1xf32>
    %89 = arith.divf %87, %88 : vector<16x1xf32>
    %90 = vector.broadcast %82 : vector<16x1xf32> to vector<16x128xf32>
    %91 = arith.subf %74, %90 : vector<16x128xf32>
    %cst_55 = arith.constant 9.99999974E-6 : f32
    %92 = vector.broadcast %cst_55 : f32 to vector<16x1xf32>
    %93 = arith.addf %89, %92 : vector<16x1xf32>
    %94 = math.rsqrt %93 : vector<16x1xf32>
    %95 = vector.broadcast %94 : vector<16x1xf32> to vector<16x128xf32>
    %96 = arith.mulf %91, %95 : vector<16x128xf32>
    %97 = vector.broadcast %76 : vector<1x128xf32> to vector<16x128xf32>
    %98 = arith.mulf %96, %97 : vector<16x128xf32>
    %99 = vector.broadcast %78 : vector<1x128xf32> to vector<16x128xf32>
    %100 = arith.addf %98, %99 : vector<16x128xf32>
    %101 = arith.truncf %100 : vector<16x128xf32> to vector<16x128xbf16>
    %c0_56 = arith.constant 0 : index
    %c0_57 = arith.constant 0 : index
    %c0_58 = arith.constant 0 : index
    %102 = vector.load %arg12[%c0_56, %c0_57, %c0_58] : memref<2x128x512xbf16, #tpu.memory_space<vmem>>, vector<1x128x512xbf16>
    %103 = vector.shape_cast %102 : vector<1x128x512xbf16> to vector<128x512xbf16>
    %cst_59 = arith.constant dense<0.000000e+00> : vector<16x512xf32>
    %104 = tpu.matmul %101, %103, %cst_59 {dimension_numbers = #tpu.dot_dimension_numbers<[1], [0], [0], [1], [0, 0, 1, 1], [], []>} : vector<16x128xbf16>, vector<128x512xbf16>, vector<16x512xf32> -> vector<16x512xf32>
    %c0_60 = arith.constant 0 : index
    %c0_61 = arith.constant 0 : index
    %c0_62 = arith.constant 0 : index
    %105 = vector.load %arg13[%c0_60, %c0_61, %c0_62] : memref<2x1x512xf32, #tpu.memory_space<vmem>>, vector<1x1x512xf32>
    %106 = vector.shape_cast %105 : vector<1x1x512xf32> to vector<1x512xf32>
    %107 = vector.broadcast %106 : vector<1x512xf32> to vector<16x512xf32>
    %108 = arith.addf %104, %107 : vector<16x512xf32>
    %109 = arith.mulf %108, %108 : vector<16x512xf32>
    %110 = arith.mulf %108, %109 : vector<16x512xf32>
    %cst_63 = arith.constant 4.471500e-02 : f32
    %111 = vector.broadcast %cst_63 : f32 to vector<16x512xf32>
    %112 = arith.mulf %111, %110 : vector<16x512xf32>
    %113 = arith.addf %108, %112 : vector<16x512xf32>
    %cst_64 = arith.constant 0.797884583 : f32
    %114 = vector.broadcast %cst_64 : f32 to vector<16x512xf32>
    %115 = arith.mulf %114, %113 : vector<16x512xf32>
    %116 = math.tanh %115 : vector<16x512xf32>
    %cst_65 = arith.constant 1.000000e+00 : f32
    %117 = vector.broadcast %cst_65 : f32 to vector<16x512xf32>
    %118 = arith.addf %117, %116 : vector<16x512xf32>
    %cst_66 = arith.constant 5.000000e-01 : f32
    %119 = vector.broadcast %cst_66 : f32 to vector<16x512xf32>
    %120 = arith.mulf %119, %118 : vector<16x512xf32>
    %121 = arith.mulf %108, %120 : vector<16x512xf32>
    %122 = arith.truncf %121 : vector<16x512xf32> to vector<16x512xbf16>
    %c0_67 = arith.constant 0 : index
    %c0_68 = arith.constant 0 : index
    %c0_69 = arith.constant 0 : index
    %123 = vector.load %arg14[%c0_67, %c0_68, %c0_69] : memref<2x512x128xbf16, #tpu.memory_space<vmem>>, vector<1x512x128xbf16>
    %124 = vector.shape_cast %123 : vector<1x512x128xbf16> to vector<512x128xbf16>
    %cst_70 = arith.constant dense<0.000000e+00> : vector<16x128xf32>
    %125 = tpu.matmul %122, %124, %cst_70 {dimension_numbers = #tpu.dot_dimension_numbers<[1], [0], [0], [1], [0, 0, 1, 1], [], []>} : vector<16x512xbf16>, vector<512x128xbf16>, vector<16x128xf32> -> vector<16x128xf32>
    %c0_71 = arith.constant 0 : index
    %c0_72 = arith.constant 0 : index
    %c0_73 = arith.constant 0 : index
    %126 = vector.load %arg15[%c0_71, %c0_72, %c0_73] : memref<2x1x128xf32, #tpu.memory_space<vmem>>, vector<1x1x128xf32>
    %127 = vector.shape_cast %126 : vector<1x1x128xf32> to vector<1x128xf32>
    %128 = vector.broadcast %127 : vector<1x128xf32> to vector<16x128xf32>
    %129 = arith.addf %125, %128 : vector<16x128xf32>
    %130 = arith.addf %74, %129 : vector<16x128xf32>
    %c1 = arith.constant 1 : index
    %c0_74 = arith.constant 0 : index
    %c0_75 = arith.constant 0 : index
    %131 = vector.load %arg3[%c1, %c0_74, %c0_75] : memref<2x1x128xf32, #tpu.memory_space<vmem>>, vector<1x1x128xf32>
    %132 = vector.shape_cast %131 : vector<1x1x128xf32> to vector<1x128xf32>
    %c1_76 = arith.constant 1 : index
    %c0_77 = arith.constant 0 : index
    %c0_78 = arith.constant 0 : index
    %133 = vector.load %arg4[%c1_76, %c0_77, %c0_78] : memref<2x1x128xf32, #tpu.memory_space<vmem>>, vector<1x1x128xf32>
    %134 = vector.shape_cast %133 : vector<1x1x128xf32> to vector<1x128xf32>
    %cst_79 = arith.constant dense<0.000000e+00> : vector<16xf32>
    %135 = vector.multi_reduction <add>, %130, %cst_79 [1] : vector<16x128xf32> to vector<16xf32>
    %136 = vector.shape_cast %135 : vector<16xf32> to vector<16x1xf32>
    %cst_80 = arith.constant 1.280000e+02 : f32
    %137 = vector.broadcast %cst_80 : f32 to vector<16x1xf32>
    %138 = arith.divf %136, %137 : vector<16x1xf32>
    %139 = vector.broadcast %138 : vector<16x1xf32> to vector<16x128xf32>
    %140 = arith.subf %130, %139 : vector<16x128xf32>
    %141 = arith.mulf %140, %140 : vector<16x128xf32>
    %cst_81 = arith.constant dense<0.000000e+00> : vector<16xf32>
    %142 = vector.multi_reduction <add>, %141, %cst_81 [1] : vector<16x128xf32> to vector<16xf32>
    %143 = vector.shape_cast %142 : vector<16xf32> to vector<16x1xf32>
    %cst_82 = arith.constant 1.280000e+02 : f32
    %144 = vector.broadcast %cst_82 : f32 to vector<16x1xf32>
    %145 = arith.divf %143, %144 : vector<16x1xf32>
    %146 = vector.broadcast %138 : vector<16x1xf32> to vector<16x128xf32>
    %147 = arith.subf %130, %146 : vector<16x128xf32>
    %cst_83 = arith.constant 9.99999974E-6 : f32
    %148 = vector.broadcast %cst_83 : f32 to vector<16x1xf32>
    %149 = arith.addf %145, %148 : vector<16x1xf32>
    %150 = math.rsqrt %149 : vector<16x1xf32>
    %151 = vector.broadcast %150 : vector<16x1xf32> to vector<16x128xf32>
    %152 = arith.mulf %147, %151 : vector<16x128xf32>
    %153 = vector.broadcast %132 : vector<1x128xf32> to vector<16x128xf32>
    %154 = arith.mulf %152, %153 : vector<16x128xf32>
    %155 = vector.broadcast %134 : vector<1x128xf32> to vector<16x128xf32>
    %156 = arith.addf %154, %155 : vector<16x128xf32>
    %157 = arith.truncf %156 : vector<16x128xf32> to vector<16x128xbf16>
    %158 = vector.shape_cast %157 : vector<16x128xbf16> to vector<1x16x128xbf16>
    %159 = vector.shape_cast %158 : vector<1x16x128xbf16> to vector<1x16x128xbf16>
    %160 = vector.broadcast %159 : vector<1x16x128xbf16> to vector<4x16x128xbf16>
    %c1_84 = arith.constant 1 : index
    %c0_85 = arith.constant 0 : index
    %c0_86 = arith.constant 0 : index
    %c0_87 = arith.constant 0 : index
    %161 = vector.load %arg5[%c1_84, %c0_85, %c0_86, %c0_87] : memref<2x4x128x32xbf16, #tpu.memory_space<vmem>>, vector<1x4x128x32xbf16>
    %162 = vector.shape_cast %161 : vector<1x4x128x32xbf16> to vector<4x128x32xbf16>
    "tpu.trace_start"() <{level = 10 : i32, message = "hme,hed->hmd"}> : () -> ()
    %cst_88 = arith.constant dense<0.000000e+00> : vector<4x16x32xf32>
    %163 = tpu.matmul %160, %162, %cst_88 {dimension_numbers = #tpu.dot_dimension_numbers<[2], [1], [1], [2], [0, 0, 0, 1, 1, 2], [0], [0]>} : vector<4x16x128xbf16>, vector<4x128x32xbf16>, vector<4x16x32xf32> -> vector<4x16x32xf32>
    "tpu.trace_stop"() : () -> ()
    %c1_89 = arith.constant 1 : index
    %c0_90 = arith.constant 0 : index
    %c0_91 = arith.constant 0 : index
    %c0_92 = arith.constant 0 : index
    %164 = vector.load %arg6[%c1_89, %c0_90, %c0_91, %c0_92] : memref<2x4x128x32xbf16, #tpu.memory_space<vmem>>, vector<1x4x128x32xbf16>
    %165 = vector.shape_cast %164 : vector<1x4x128x32xbf16> to vector<4x128x32xbf16>
    "tpu.trace_start"() <{level = 10 : i32, message = "hme,hed->hmd"}> : () -> ()
    %cst_93 = arith.constant dense<0.000000e+00> : vector<4x16x32xf32>
    %166 = tpu.matmul %160, %165, %cst_93 {dimension_numbers = #tpu.dot_dimension_numbers<[2], [1], [1], [2], [0, 0, 0, 1, 1, 2], [0], [0]>} : vector<4x16x128xbf16>, vector<4x128x32xbf16>, vector<4x16x32xf32> -> vector<4x16x32xf32>
    "tpu.trace_stop"() : () -> ()
    %c1_94 = arith.constant 1 : index
    %c0_95 = arith.constant 0 : index
    %c0_96 = arith.constant 0 : index
    %c0_97 = arith.constant 0 : index
    %167 = vector.load %arg7[%c1_94, %c0_95, %c0_96, %c0_97] : memref<2x4x128x32xbf16, #tpu.memory_space<vmem>>, vector<1x4x128x32xbf16>
    %168 = vector.shape_cast %167 : vector<1x4x128x32xbf16> to vector<4x128x32xbf16>
    "tpu.trace_start"() <{level = 10 : i32, message = "hme,hed->hmd"}> : () -> ()
    %cst_98 = arith.constant dense<0.000000e+00> : vector<4x16x32xf32>
    %169 = tpu.matmul %160, %168, %cst_98 {dimension_numbers = #tpu.dot_dimension_numbers<[2], [1], [1], [2], [0, 0, 0, 1, 1, 2], [0], [0]>} : vector<4x16x128xbf16>, vector<4x128x32xbf16>, vector<4x16x32xf32> -> vector<4x16x32xf32>
    "tpu.trace_stop"() : () -> ()
    %170 = vector.shape_cast %163 : vector<4x16x32xf32> to vector<8x8x32xf32>
    %171 = vector.shape_cast %166 : vector<4x16x32xf32> to vector<8x8x32xf32>
    %172 = vector.shape_cast %169 : vector<4x16x32xf32> to vector<8x8x32xf32>
    "tpu.trace_start"() <{level = 10 : i32, message = "zqd,zkd->zqk"}> : () -> ()
    %cst_99 = arith.constant dense<0.000000e+00> : vector<8x8x8xf32>
    %173 = tpu.matmul %170, %171, %cst_99 {dimension_numbers = #tpu.dot_dimension_numbers<[2], [2], [1], [1], [0, 0, 0, 1, 1, 1], [0], [0]>} : vector<8x8x32xf32>, vector<8x8x32xf32>, vector<8x8x8xf32> -> vector<8x8x8xf32>
    "tpu.trace_stop"() : () -> ()
    %cst_100 = arith.constant 0.176776692 : f32
    %174 = vector.broadcast %cst_100 : f32 to vector<8x8x8xf32>
    %175 = arith.mulf %173, %174 : vector<8x8x8xf32>
    %cst_101 = arith.constant dense<0xFF800000> : vector<8x8xf32>
    %176 = vector.multi_reduction <maximumf>, %175, %cst_101 [2] : vector<8x8x8xf32> to vector<8x8xf32>
    %177 = vector.shape_cast %176 : vector<8x8xf32> to vector<8x8x1xf32>
    %178 = vector.broadcast %177 : vector<8x8x1xf32> to vector<8x8x8xf32>
    %179 = arith.subf %175, %178 : vector<8x8x8xf32>
    %180 = math.exp %179 : vector<8x8x8xf32>
    %cst_102 = arith.constant dense<0.000000e+00> : vector<8x8xf32>
    %181 = vector.multi_reduction <add>, %180, %cst_102 [2] : vector<8x8x8xf32> to vector<8x8xf32>
    %182 = vector.shape_cast %181 : vector<8x8xf32> to vector<8x8x1xf32>
    %183 = vector.broadcast %182 : vector<8x8x1xf32> to vector<8x8x8xf32>
    %184 = arith.divf %180, %183 : vector<8x8x8xf32>
    "tpu.trace_start"() <{level = 10 : i32, message = "zqk,zkd->zqd"}> : () -> ()
    %cst_103 = arith.constant dense<0.000000e+00> : vector<8x8x32xf32>
    %185 = tpu.matmul %184, %172, %cst_103 {dimension_numbers = #tpu.dot_dimension_numbers<[2], [1], [1], [2], [0, 0, 0, 1, 1, 2], [0], [0]>} : vector<8x8x8xf32>, vector<8x8x32xf32>, vector<8x8x32xf32> -> vector<8x8x32xf32>
    "tpu.trace_stop"() : () -> ()
    %186 = vector.shape_cast %185 : vector<8x8x32xf32> to vector<4x16x32xf32>
    %187 = arith.truncf %186 : vector<4x16x32xf32> to vector<4x16x32xbf16>
    %c1_104 = arith.constant 1 : index
    %c0_105 = arith.constant 0 : index
    %c0_106 = arith.constant 0 : index
    %c0_107 = arith.constant 0 : index
    %188 = vector.load %arg8[%c1_104, %c0_105, %c0_106, %c0_107] : memref<2x4x32x128xbf16, #tpu.memory_space<vmem>>, vector<1x4x32x128xbf16>
    %189 = vector.shape_cast %188 : vector<1x4x32x128xbf16> to vector<4x32x128xbf16>
    "tpu.trace_start"() <{level = 10 : i32, message = "hmd,hde->hme"}> : () -> ()
    %cst_108 = arith.constant dense<0.000000e+00> : vector<4x16x128xf32>
    %190 = tpu.matmul %187, %189, %cst_108 {dimension_numbers = #tpu.dot_dimension_numbers<[2], [1], [1], [2], [0, 0, 0, 1, 1, 2], [0], [0]>} : vector<4x16x32xbf16>, vector<4x32x128xbf16>, vector<4x16x128xf32> -> vector<4x16x128xf32>
    "tpu.trace_stop"() : () -> ()
    %cst_109 = arith.constant dense<0.000000e+00> : vector<16x128xf32>
    %191 = vector.multi_reduction <add>, %190, %cst_109 [0] : vector<4x16x128xf32> to vector<16x128xf32>
    %c1_110 = arith.constant 1 : index
    %c0_111 = arith.constant 0 : index
    %c0_112 = arith.constant 0 : index
    %192 = vector.load %arg9[%c1_110, %c0_111, %c0_112] : memref<2x1x128xf32, #tpu.memory_space<vmem>>, vector<1x1x128xf32>
    %193 = vector.shape_cast %192 : vector<1x1x128xf32> to vector<1x128xf32>
    %194 = vector.broadcast %193 : vector<1x128xf32> to vector<16x128xf32>
    %195 = arith.addf %191, %194 : vector<16x128xf32>
    %196 = arith.addf %130, %195 : vector<16x128xf32>
    %c1_113 = arith.constant 1 : index
    %c0_114 = arith.constant 0 : index
    %c0_115 = arith.constant 0 : index
    %197 = vector.load %arg10[%c1_113, %c0_114, %c0_115] : memref<2x1x128xf32, #tpu.memory_space<vmem>>, vector<1x1x128xf32>
    %198 = vector.shape_cast %197 : vector<1x1x128xf32> to vector<1x128xf32>
    %c1_116 = arith.constant 1 : index
    %c0_117 = arith.constant 0 : index
    %c0_118 = arith.constant 0 : index
    %199 = vector.load %arg11[%c1_116, %c0_117, %c0_118] : memref<2x1x128xf32, #tpu.memory_space<vmem>>, vector<1x1x128xf32>
    %200 = vector.shape_cast %199 : vector<1x1x128xf32> to vector<1x128xf32>
    %cst_119 = arith.constant dense<0.000000e+00> : vector<16xf32>
    %201 = vector.multi_reduction <add>, %196, %cst_119 [1] : vector<16x128xf32> to vector<16xf32>
    %202 = vector.shape_cast %201 : vector<16xf32> to vector<16x1xf32>
    %cst_120 = arith.constant 1.280000e+02 : f32
    %203 = vector.broadcast %cst_120 : f32 to vector<16x1xf32>
    %204 = arith.divf %202, %203 : vector<16x1xf32>
    %205 = vector.broadcast %204 : vector<16x1xf32> to vector<16x128xf32>
    %206 = arith.subf %196, %205 : vector<16x128xf32>
    %207 = arith.mulf %206, %206 : vector<16x128xf32>
    %cst_121 = arith.constant dense<0.000000e+00> : vector<16xf32>
    %208 = vector.multi_reduction <add>, %207, %cst_121 [1] : vector<16x128xf32> to vector<16xf32>
    %209 = vector.shape_cast %208 : vector<16xf32> to vector<16x1xf32>
    %cst_122 = arith.constant 1.280000e+02 : f32
    %210 = vector.broadcast %cst_122 : f32 to vector<16x1xf32>
    %211 = arith.divf %209, %210 : vector<16x1xf32>
    %212 = vector.broadcast %204 : vector<16x1xf32> to vector<16x128xf32>
    %213 = arith.subf %196, %212 : vector<16x128xf32>
    %cst_123 = arith.constant 9.99999974E-6 : f32
    %214 = vector.broadcast %cst_123 : f32 to vector<16x1xf32>
    %215 = arith.addf %211, %214 : vector<16x1xf32>
    %216 = math.rsqrt %215 : vector<16x1xf32>
    %217 = vector.broadcast %216 : vector<16x1xf32> to vector<16x128xf32>
    %218 = arith.mulf %213, %217 : vector<16x128xf32>
    %219 = vector.broadcast %198 : vector<1x128xf32> to vector<16x128xf32>
    %220 = arith.mulf %218, %219 : vector<16x128xf32>
    %221 = vector.broadcast %200 : vector<1x128xf32> to vector<16x128xf32>
    %222 = arith.addf %220, %221 : vector<16x128xf32>
    %223 = arith.truncf %222 : vector<16x128xf32> to vector<16x128xbf16>
    %c1_124 = arith.constant 1 : index
    %c0_125 = arith.constant 0 : index
    %c0_126 = arith.constant 0 : index
    %224 = vector.load %arg12[%c1_124, %c0_125, %c0_126] : memref<2x128x512xbf16, #tpu.memory_space<vmem>>, vector<1x128x512xbf16>
    %225 = vector.shape_cast %224 : vector<1x128x512xbf16> to vector<128x512xbf16>
    %cst_127 = arith.constant dense<0.000000e+00> : vector<16x512xf32>
    %226 = tpu.matmul %223, %225, %cst_127 {dimension_numbers = #tpu.dot_dimension_numbers<[1], [0], [0], [1], [0, 0, 1, 1], [], []>} : vector<16x128xbf16>, vector<128x512xbf16>, vector<16x512xf32> -> vector<16x512xf32>
    %c1_128 = arith.constant 1 : index
    %c0_129 = arith.constant 0 : index
    %c0_130 = arith.constant 0 : index
    %227 = vector.load %arg13[%c1_128, %c0_129, %c0_130] : memref<2x1x512xf32, #tpu.memory_space<vmem>>, vector<1x1x512xf32>
    %228 = vector.shape_cast %227 : vector<1x1x512xf32> to vector<1x512xf32>
    %229 = vector.broadcast %228 : vector<1x512xf32> to vector<16x512xf32>
    %230 = arith.addf %226, %229 : vector<16x512xf32>
    %231 = arith.mulf %230, %230 : vector<16x512xf32>
    %232 = arith.mulf %230, %231 : vector<16x512xf32>
    %cst_131 = arith.constant 4.471500e-02 : f32
    %233 = vector.broadcast %cst_131 : f32 to vector<16x512xf32>
    %234 = arith.mulf %233, %232 : vector<16x512xf32>
    %235 = arith.addf %230, %234 : vector<16x512xf32>
    %cst_132 = arith.constant 0.797884583 : f32
    %236 = vector.broadcast %cst_132 : f32 to vector<16x512xf32>
    %237 = arith.mulf %236, %235 : vector<16x512xf32>
    %238 = math.tanh %237 : vector<16x512xf32>
    %cst_133 = arith.constant 1.000000e+00 : f32
    %239 = vector.broadcast %cst_133 : f32 to vector<16x512xf32>
    %240 = arith.addf %239, %238 : vector<16x512xf32>
    %cst_134 = arith.constant 5.000000e-01 : f32
    %241 = vector.broadcast %cst_134 : f32 to vector<16x512xf32>
    %242 = arith.mulf %241, %240 : vector<16x512xf32>
    %243 = arith.mulf %230, %242 : vector<16x512xf32>
    %244 = arith.truncf %243 : vector<16x512xf32> to vector<16x512xbf16>
    %c1_135 = arith.constant 1 : index
    %c0_136 = arith.constant 0 : index
    %c0_137 = arith.constant 0 : index
    %245 = vector.load %arg14[%c1_135, %c0_136, %c0_137] : memref<2x512x128xbf16, #tpu.memory_space<vmem>>, vector<1x512x128xbf16>
    %246 = vector.shape_cast %245 : vector<1x512x128xbf16> to vector<512x128xbf16>
    %cst_138 = arith.constant dense<0.000000e+00> : vector<16x128xf32>
    %247 = tpu.matmul %244, %246, %cst_138 {dimension_numbers = #tpu.dot_dimension_numbers<[1], [0], [0], [1], [0, 0, 1, 1], [], []>} : vector<16x512xbf16>, vector<512x128xbf16>, vector<16x128xf32> -> vector<16x128xf32>
    %c1_139 = arith.constant 1 : index
    %c0_140 = arith.constant 0 : index
    %c0_141 = arith.constant 0 : index
    %248 = vector.load %arg15[%c1_139, %c0_140, %c0_141] : memref<2x1x128xf32, #tpu.memory_space<vmem>>, vector<1x1x128xf32>
    %249 = vector.shape_cast %248 : vector<1x1x128xf32> to vector<1x128xf32>
    %250 = vector.broadcast %249 : vector<1x128xf32> to vector<16x128xf32>
    %251 = arith.addf %247, %250 : vector<16x128xf32>
    %252 = arith.addf %196, %251 : vector<16x128xf32>
    %253 = vector.shape_cast %252 : vector<16x128xf32> to vector<2x8x128xf32>
    %cst_142 = arith.constant dense<0.000000e+00> : vector<2x128xf32>
    %254 = vector.multi_reduction <add>, %253, %cst_142 [1] : vector<2x8x128xf32> to vector<2x128xf32>
    %cst_143 = arith.constant 8.000000e+00 : f32
    %255 = vector.broadcast %cst_143 : f32 to vector<2x128xf32>
    %256 = arith.divf %254, %255 : vector<2x128xf32>
    %cst_144 = arith.constant dense<0.000000e+00> : vector<2xf32>
    %257 = vector.multi_reduction <add>, %256, %cst_144 [1] : vector<2x128xf32> to vector<2xf32>
    %258 = vector.shape_cast %257 : vector<2xf32> to vector<2x1xf32>
    %cst_145 = arith.constant 1.280000e+02 : f32
    %259 = vector.broadcast %cst_145 : f32 to vector<2x1xf32>
    %260 = arith.divf %258, %259 : vector<2x1xf32>
    %261 = vector.broadcast %260 : vector<2x1xf32> to vector<2x128xf32>
    %262 = arith.subf %256, %261 : vector<2x128xf32>
    %263 = arith.mulf %262, %262 : vector<2x128xf32>
    %cst_146 = arith.constant dense<0.000000e+00> : vector<2xf32>
    %264 = vector.multi_reduction <add>, %263, %cst_146 [1] : vector<2x128xf32> to vector<2xf32>
    %265 = vector.shape_cast %264 : vector<2xf32> to vector<2x1xf32>
    %cst_147 = arith.constant 1.280000e+02 : f32
    %266 = vector.broadcast %cst_147 : f32 to vector<2x1xf32>
    %267 = arith.divf %265, %266 : vector<2x1xf32>
    %268 = vector.broadcast %260 : vector<2x1xf32> to vector<2x128xf32>
    %269 = arith.subf %256, %268 : vector<2x128xf32>
    %cst_148 = arith.constant 9.99999974E-6 : f32
    %270 = vector.broadcast %cst_148 : f32 to vector<2x1xf32>
    %271 = arith.addf %267, %270 : vector<2x1xf32>
    %272 = math.rsqrt %271 : vector<2x1xf32>
    %273 = vector.broadcast %272 : vector<2x1xf32> to vector<2x128xf32>
    %274 = arith.mulf %269, %273 : vector<2x128xf32>
    %c0_149 = arith.constant 0 : index
    %c0_150 = arith.constant 0 : index
    %275 = vector.load %arg16[%c0_149, %c0_150] : memref<1x128xf32, #tpu.memory_space<vmem>>, vector<1x128xf32>
    %276 = vector.broadcast %275 : vector<1x128xf32> to vector<2x128xf32>
    %277 = arith.mulf %274, %276 : vector<2x128xf32>
    %c0_151 = arith.constant 0 : index
    %c0_152 = arith.constant 0 : index
    %278 = vector.load %arg17[%c0_151, %c0_152] : memref<1x128xf32, #tpu.memory_space<vmem>>, vector<1x128xf32>
    %279 = vector.broadcast %278 : vector<1x128xf32> to vector<2x128xf32>
    %280 = arith.addf %277, %279 : vector<2x128xf32>
    %c0_153 = arith.constant 0 : index
    %c0_154 = arith.constant 0 : index
    %281 = vector.load %arg18[%c0_153, %c0_154] : memref<1x128xf32, #tpu.memory_space<vmem>>, vector<1x128xf32>
    %282 = vector.broadcast %281 : vector<1x128xf32> to vector<2x128xf32>
    %283 = arith.mulf %274, %282 : vector<2x128xf32>
    %c0_155 = arith.constant 0 : index
    %c0_156 = arith.constant 0 : index
    %284 = vector.load %arg19[%c0_155, %c0_156] : memref<1x128xf32, #tpu.memory_space<vmem>>, vector<1x128xf32>
    %285 = vector.broadcast %284 : vector<1x128xf32> to vector<2x128xf32>
    %286 = arith.addf %283, %285 : vector<2x128xf32>
    %287 = tpu.concatenate %280, %286 in 1 : vector<2x128xf32>, vector<2x128xf32> -> vector<2x256xf32>
    %288 = arith.truncf %287 : vector<2x256xf32> to vector<2x256xbf16>
    %c0_157 = arith.constant 0 : index
    %c0_158 = arith.constant 0 : index
    %289 = vector.load %arg20[%c0_157, %c0_158] : memref<256x128xbf16, #tpu.memory_space<vmem>>, vector<256x128xbf16>
    %cst_159 = arith.constant dense<0.000000e+00> : vector<2x128xf32>
    %290 = tpu.matmul %288, %289, %cst_159 {dimension_numbers = #tpu.dot_dimension_numbers<[1], [0], [0], [1], [0, 0, 1, 1], [], []>} : vector<2x256xbf16>, vector<256x128xbf16>, vector<2x128xf32> -> vector<2x128xf32>
    %c0_160 = arith.constant 0 : index
    %c0_161 = arith.constant 0 : index
    %291 = vector.load %arg21[%c0_160, %c0_161] : memref<1x128xf32, #tpu.memory_space<vmem>>, vector<1x128xf32>
    %292 = vector.broadcast %291 : vector<1x128xf32> to vector<2x128xf32>
    %293 = arith.addf %290, %292 : vector<2x128xf32>
    %c0_162 = arith.constant 0 : index
    %c0_163 = arith.constant 0 : index
    %294 = vector.load %arg22[%c0_162, %c0_163] : memref<2x128xf32, #tpu.memory_space<vmem>>, vector<2x128xf32>
    tpu.vector_store %arg22[%c0_162, %c0_163], %293 {strides = array<i32>} : memref<2x128xf32, #tpu.memory_space<vmem>>, vector<2x128xf32>,
    return
  }
}

</mosaic_0001>

<bundles_post_ra>
// kernel: vision_transformer_forward.1
= control target key start
LH: loop header
LB: loop body
LE: loop exit
PB: predicated region body
PF: predicated region fallthrough
CT: control target
= control target key end

     0   :  { %s12450_s0 = inlined_call_operand.vmem [shape: bf16[16,384], index: 0, kind: input, shape index: {}]   ;;  %s12451_s1 = inlined_call_operand.vmem [shape: bf16[384,128], index: 1, kind: input, shape index: {}]   ;;  %s12452_s2 = inlined_call_operand.vmem [shape: f32[8,128], index: 2, kind: input, shape index: {}]   ;;  %s12453_s3 = inlined_call_operand.vmem [shape: f32[2,1,128], index: 3, kind: input, shape index: {}]   ;;  %s12454_s4 = inlined_call_operand.vmem [shape: f32[2,1,128], index: 4, kind: input, shape index: {}]   ;;  %s12455_s5 = inlined_call_operand.vmem [shape: bf16[2,4,128,32], index: 5, kind: input, shape index: {}]   ;;  %s12456_s6 = inlined_call_operand.vmem [shape: bf16[2,4,128,32], index: 6, kind: input, shape index: {}]   ;;  %s12457_s7 = inlined_call_operand.vmem [shape: bf16[2,4,128,32], index: 7, kind: input, shape index: {}]   ;;  %s12458_s8 = inlined_call_operand.vmem [shape: bf16[2,4,32,128], index: 8, kind: input, shape index: {}]   ;;  %s12459_s9 = inlined_call_operand.vmem [shape: f32[2,1,128], index: 9, kind: input, shape index: {}]   ;;  %s12460_s10 = inlined_call_operand.vmem [shape: f32[2,1,128], index: 10, kind: input, shape index: {}]   ;;  %s12461_s11 = inlined_call_operand.vmem [shape: f32[2,1,128], index: 11, kind: input, shape index: {}]   ;;  %s12462_s12 = inlined_call_operand.vmem [shape: bf16[2,128,512], index: 12, kind: input, shape index: {}]   ;;  %s12463_s13 = inlined_call_operand.vmem [shape: f32[2,1,512], index: 13, kind: input, shape index: {}]   ;;  %s12464_s14 = inlined_call_operand.vmem [shape: bf16[2,512,128], index: 14, kind: input, shape index: {}]   ;;  %s12465_s15 = inlined_call_operand.vmem [shape: f32[2,1,128], index: 15, kind: input, shape index: {}]   ;;  %s12466_s16 = inlined_call_operand.vmem [shape: f32[1,128], index: 16, kind: input, shape index: {}]   ;;  %s12467_s17 = inlined_call_operand.vmem [shape: f32[1,128], index: 17, kind: input, shape index: {}]   ;;  %s12468_s18 = inlined_call_operand.vmem [shape: f32[1,128], index: 18, kind: input, shape index: {}]   ;;  %s12469_s19 = inlined_call_operand.vmem [shape: f32[1,128], index: 19, kind: input, shape index: {}]   ;;  %s12470_s20 = inlined_call_operand.vmem [shape: bf16[256,128], index: 20, kind: input, shape index: {}]   ;;  %s12471_s21 = inlined_call_operand.vmem [shape: f32[1,128], index: 21, kind: input, shape index: {}]   ;;  %s12472_s22 = inlined_call_operand.hbm [shape: f32[2,128], index: 22, kind: output, shape index: {}]  }
   0x1   :  { %12479 = sst [smem:[#allocation5_spill]] %s12450_s0 }
   0x2   :  { %12480 = sst [smem:[#allocation6_spill]] %s12451_s1 }
   0x3   :  { %12481 = sst [smem:[#allocation7_spill]] %s12452_s2 }
   0x4   :  { %12482 = sst [smem:[#allocation8_spill]] %s12453_s3 }
   0x5   :  { %12483 = sst [smem:[#allocation9_spill]] %s12454_s4 }
   0x6   :  { %12484 = sst [smem:[#allocation10_spill]] %s12455_s5 }
   0x7   :  { %12485 = sst [smem:[#allocation11_spill]] %s12456_s6 }
   0x8   :  { %s12486_s29 = sld [smem:[#allocation6_spill]]  ;;  %v10388_v1 = vmov 0.0   ;;  %vm10389_vm0 = vmmov 0   ;;  %s12487_s1 = sld [smem:[#allocation5_spill]] }
   0x9   :  { %9110 = vmatprep.subr.bf16.mxu1 %v10388_v1  ;;  %9126 = vmatprep.mubr.msk.bf16.mxu1 %vm10389_vm0, %v10388_v1 }
   0xe   :  { %v9838_v0 = vld [vmem:[%s12486_s29 + $0x40] sm:$0xff]   ;;  %v9841_v4 = vld [vmem:[%s12486_s29 + $0x48] sm:$0xff]   ;;  %v9844_v7 = vld [vmem:[%s12486_s29 + $0x50] sm:$0xff]  }
   0xf   :  { %v9839_v2 = vld [vmem:[%s12486_s29] sm:$0xff]   ;;  %8665 = vmatprep.subr.bf16.mxu0 %v9838_v0  ;;  %v9842_v5 = vld [vmem:[%s12486_s29 + $0x8] sm:$0xff]   ;;  %v9845_v8 = vld [vmem:[%s12486_s29 + $0x10] sm:$0xff]  }
  0x10   :  { %v9840_v3 = vld [vmem:[%s12486_s29 + $0x80] sm:$0xff]   ;;  %8666 = vmatpush3.bf16.msra.mxu0 %v9839_v2  ;;  %v9843_v6 = vld [vmem:[%s12486_s29 + $0x88] sm:$0xff]   ;;  %v9846_v9 = vld [vmem:[%s12486_s29 + $0x90] sm:$0xff]  }
  0x11   :  { %9111 = vmatpush3.bf16.msra.mxu1 %v9840_v3  ;;  %8667 = vmatprep.subr.bf16.mxu0 %v9841_v4  ;;  %v9847_v10 = vld [vmem:[%s12486_s29 + $0x58] sm:$0xff]   ;;  %v9850_v13 = vld [vmem:[%s12486_s29 + $0x60] sm:$0xff]   ;;  %v9853_v16 = vld [vmem:[%s12486_s29 + $0x68] sm:$0xff]  }
  0x12   :  { %9112 = vmatprep.subr.bf16.mxu1 %v10388_v1  ;;  %v9848_v11 = vld [vmem:[%s12486_s29 + $0x18] sm:$0xff]   ;;  %v9851_v14 = vld [vmem:[%s12486_s29 + $0x20] sm:$0xff]   ;;  %v9854_v17 = vld [vmem:[%s12486_s29 + $0x28] sm:$0xff]  }
  0x13   :  { %v9849_v12 = vld [vmem:[%s12486_s29 + $0x98] sm:$0xff]   ;;  %v9852_v15 = vld [vmem:[%s12486_s29 + $0xa0] sm:$0xff]   ;;  %v9855_v18 = vld [vmem:[%s12486_s29 + $0xa8] sm:$0xff]  }
  0x14   :  { %8668 = vmatpush3.bf16.msra.mxu0 %v9842_v5  ;;  %v9856_v19 = vld [vmem:[%s12486_s29 + $0x70] sm:$0xff]   ;;  %v9859_v22 = vld [vmem:[%s12486_s29 + $0x78] sm:$0xff]   ;;  %v9862_v26 = vld [vmem:[%s12487_s1] ss:$12 sps:$4 sm:$0xff]  }
  0x15   :  { %9113 = vmatpush3.bf16.msra.mxu1 %v9843_v6  ;;  %8669 = vmatprep.subr.bf16.mxu0 %v9844_v7  ;;  %v9857_v20 = vld [vmem:[%s12486_s29 + $0x30] sm:$0xff]   ;;  %v9860_v23 = vld [vmem:[%s12486_s29 + $0x38] sm:$0xff]  }
  0x16   :  { %9114 = vmatprep.subr.bf16.mxu1 %v10388_v1  ;;  %v9858_v21 = vld [vmem:[%s12486_s29 + $0xb0] sm:$0xff]   ;;  %v9861_v25 = vld [vmem:[%s12486_s29 + $0xb8] sm:$0xff]  }
  0x17   :  { %v9864_v24 = vld [vmem:[%s12487_s1 + $0x4] ss:$12 sps:$4 sm:$0xff]   ;;  %v9865_v27 = vld [vmem:[%s12487_s1 + $0x8] ss:$12 sps:$4 sm:$0xff]  }
  0x18   :  { %8670 = vmatpush3.bf16.msra.mxu0 %v9845_v8  ;;  %317 = vmatprep.mubr.bf16.mxu0 %v9864_v24 }
  0x19   :  { %9115 = vmatpush3.bf16.msra.mxu1 %v9846_v9  ;;  %8671 = vmatprep.subr.bf16.mxu0 %v9847_v10 }
  0x1a   :  { %9116 = vmatprep.subr.bf16.mxu1 %v10388_v1 }
  0x1c   :  { %8672 = vmatpush3.bf16.msra.mxu0 %v9848_v11 }
  0x1d   :  { %9117 = vmatpush3.bf16.msra.mxu1 %v9849_v12  ;;  %8673 = vmatprep.subr.bf16.mxu0 %v9850_v13 }
  0x1e   :  { %9118 = vmatprep.subr.bf16.mxu1 %v10388_v1 }
  0x20   :  { %8674 = vmatpush3.bf16.msra.mxu0 %v9851_v14 }
  0x21   :  { %9119 = vmatpush3.bf16.msra.mxu1 %v9852_v15  ;;  %8675 = vmatprep.subr.bf16.mxu0 %v9853_v16 }
  0x22   :  { %9120 = vmatprep.subr.bf16.mxu1 %v10388_v1 }
  0x24   :  { %8676 = vmatpush3.bf16.msra.mxu0 %v9854_v17 }
  0x25   :  { %9121 = vmatpush3.bf16.msra.mxu1 %v9855_v18  ;;  %8677 = vmatprep.subr.bf16.mxu0 %v9856_v19 }
  0x26   :  { %9122 = vmatprep.subr.bf16.mxu1 %v10388_v1 }
  0x28   :  { %8678 = vmatpush3.bf16.msra.mxu0 %v9857_v20 }
  0x29   :  { %9123 = vmatpush3.bf16.msra.mxu1 %v9858_v21  ;;  %8679 = vmatprep.subr.bf16.mxu0 %v9859_v22 }
  0x2a   :  { %9124 = vmatprep.subr.bf16.mxu1 %v10388_v1 }
  0x2c   :  { %8680 = vmatpush3.bf16.msra.mxu0 %v9860_v23 }
  0x2d   :  { %9125 = vmatpush3.bf16.msra.mxu1 %v9861_v25  ;;  %9130 = vmatprep.subr.bf16.mxu0 %v10388_v1 }
  0x2e   :  { %9150 = vmatprep.subr.bf16.mxu1 %v10388_v1 }
  0x2f   :  { %318 = vmatmul.mubr.bf16.vlgmr.msra.gmra.mrb[0].mxu0 %v9862_v26 }
  0x30   :  { %9127 = vmatmul.mubr.bf16.vlgmr.msra.gmra.mrb[0].mxu1 %v9865_v27  ;;  %9146 = vmatprep.mubr.msk.bf16.mxu0 %vm10389_vm0, %v10388_v1 }
  0x31   :  { %9166 = vmatprep.mubr.msk.bf16.mxu1 %vm10389_vm0, %v10388_v1 }
  0x32   :  { %27 = vsyncpa [#allocation3], 0  ;;  %s12488_s3 = sld [smem:[#allocation7_spill]]  ;;  %s12489_s4 = sld [smem:[#allocation10_spill]]  ;;  %vm1672_vm1 = vcmask 261120   ;;  %vm2289_vm2 = vcmask 64512  }
  0x33   :  { %s12490_s24 = sld [smem:[#allocation8_spill]]  ;;  %s12491_s26 = sld [smem:[#allocation9_spill]]  ;;  %vm7631_vm3 = vcmask 1041409   ;;  %vm7634_vm4 = vcmask 1041408  }
  0x34   :  { %s12492_s6 = sld [smem:[#allocation11_spill]] }
  0x38   :  { %v367_v36 = vld [vmem:[%s12488_s3] sm:$0xff]  ;;  %v9868_v45 = vld [vmem:[%s12489_s4 + $0x8] sm:$0xff]   ;;  %v9870_v55 = vld [vmem:[%s12489_s4 + $0x10] sm:$0xff]  }
  0x39   :  { %v9866_v43 = vld [vmem:[%s12489_s4] sm:$0xff]   ;;  %v9869_v46 = vld [vmem:[%s12489_s4 + $0x48] sm:$0xff]   ;;  %v9871_v56 = vld [vmem:[%s12489_s4 + $0x50] sm:$0xff]  }
  0x3a   :  { %v9867_v44 = vld [vmem:[%s12489_s4 + $0x40] sm:$0xff]   ;;  %9131 = vmatpush3.bf16.msra.mxu0 %v9866_v43  ;;  %v9872_v57 = vld [vmem:[%s12489_s4 + $0x18] sm:$0xff]   ;;  %v9876_v61 = vld [vmem:[%s12489_s4 + $0x28] sm:$0xff]  }
  0x3b   :  { %9151 = vmatpush3.bf16.msra.mxu1 %v9867_v44  ;;  %9132 = vmatprep.subr.bf16.mxu0 %v10388_v1  ;;  %v9873_v58 = vld [vmem:[%s12489_s4 + $0x58] sm:$0xff]   ;;  %v9874_v59 = vld [vmem:[%s12489_s4 + $0x20] sm:$0xff]   ;;  %v9877_v62 = vld [vmem:[%s12489_s4 + $0x68] sm:$0xff]  }
  0x3c   :  { %9152 = vmatprep.subr.bf16.mxu1 %v10388_v1  ;;  %v9875_v60 = vld [vmem:[%s12489_s4 + $0x60] sm:$0xff]   ;;  %v9878_v63 = vld [vmem:[%s12489_s4 + $0x30] sm:$0xff]   ;;  %v9880_v2 = vld [vmem:[%s12489_s4 + $0x38] sm:$0xff]  }
  0x3d   :  { %v9879_v0 = vld [vmem:[%s12489_s4 + $0x70] sm:$0xff]   ;;  %v9881_v3 = vld [vmem:[%s12489_s4 + $0x78] sm:$0xff]   ;;  %v7929_v12 = vld [vmem:[%s12490_s24] ss:$0 sm:$0xff] }
  0x3e   :  { %9133 = vmatpush3.bf16.msra.mxu0 %v9868_v45  ;;  %v7930_v16 = vld [vmem:[%s12491_s26] ss:$0 sm:$0xff]  ;;  %v9884_v23 = vld [vmem:[%s12489_s4 + $0x88] sm:$0xff]   ;;  %v9886_v25 = vld [vmem:[%s12489_s4 + $0x90] sm:$0xff]  }
  0x3f   :  { %9153 = vmatpush3.bf16.msra.mxu1 %v9869_v46  ;;  %9134 = vmatprep.subr.bf16.mxu0 %v10388_v1  ;;  %v9882_v20 = vld [vmem:[%s12489_s4 + $0x80] sm:$0xff]   ;;  %v9885_v24 = vld [vmem:[%s12489_s4 + $0xc8] sm:$0xff]   ;;  %v9887_v26 = vld [vmem:[%s12489_s4 + $0xd0] sm:$0xff]  }
  0x40   :  { %9154 = vmatprep.subr.bf16.mxu1 %v10388_v1  ;;  %v9883_v21 = vld [vmem:[%s12489_s4 + $0xc0] sm:$0xff]   ;;  %v9888_v27 = vld [vmem:[%s12489_s4 + $0x98] sm:$0xff]   ;;  %v9902_v43 = vld [vmem:[%s12492_s6 + $0x10] sm:$0xff]  }
  0x41   :  { %v9903_v44 = vld [vmem:[%s12492_s6 + $0x50] sm:$0xff]   ;;  %v9904_v45 = vld [vmem:[%s12492_s6 + $0x18] sm:$0xff]  }
  0x42   :  { %9135 = vmatpush3.bf16.msra.mxu0 %v9870_v55  ;;  %v9905_v46 = vld [vmem:[%s12492_s6 + $0x58] sm:$0xff]   ;;  %v9914_v55 = vld [vmem:[%s12492_s6 + $0x80] sm:$0xff]  }
  0x43   :  { %9155 = vmatpush3.bf16.msra.mxu1 %v9871_v56  ;;  %9136 = vmatprep.subr.bf16.mxu0 %v10388_v1  ;;  %v9915_v56 = vld [vmem:[%s12492_s6 + $0xc0] sm:$0xff]  }
  0x44   :  { %9156 = vmatprep.subr.bf16.mxu1 %v10388_v1 }
  0x46   :  { %9137 = vmatpush3.bf16.msra.mxu0 %v9872_v57  ;;  %v9916_v57 = vld [vmem:[%s12492_s6 + $0x88] sm:$0xff]  }
  0x47   :  { %9157 = vmatpush3.bf16.msra.mxu1 %v9873_v58  ;;  %9138 = vmatprep.subr.bf16.mxu0 %v10388_v1  ;;  %v9917_v58 = vld [vmem:[%s12492_s6 + $0xc8] sm:$0xff]  }
  0x48   :  { %9158 = vmatprep.subr.bf16.mxu1 %v10388_v1 }
  0x4a   :  { %9139 = vmatpush3.bf16.msra.mxu0 %v9874_v59  ;;  %v9918_v59 = vld [vmem:[%s12492_s6 + $0x90] sm:$0xff]  }
  0x4b   :  { %9159 = vmatpush3.bf16.msra.mxu1 %v9875_v60  ;;  %9140 = vmatprep.subr.bf16.mxu0 %v10388_v1  ;;  %v9919_v60 = vld [vmem:[%s12492_s6 + $0xd0] sm:$0xff]  }
  0x4c   :  { %9160 = vmatprep.subr.bf16.mxu1 %v10388_v1 }
  0x4e   :  { %9141 = vmatpush3.bf16.msra.mxu0 %v9876_v61  ;;  %v9920_v61 = vld [vmem:[%s12492_s6 + $0x98] sm:$0xff]  }
  0x4f   :  { %9161 = vmatpush3.bf16.msra.mxu1 %v9877_v62  ;;  %9142 = vmatprep.subr.bf16.mxu0 %v10388_v1  ;;  %v9921_v62 = vld [vmem:[%s12492_s6 + $0xd8] sm:$0xff]  }
  0x50   :  { %9162 = vmatprep.subr.bf16.mxu1 %v10388_v1 }
  0x52   :  { %9143 = vmatpush3.bf16.msra.mxu0 %v9878_v63  ;;  %v9922_v63 = vld [vmem:[%s12492_s6 + $0xa0] sm:$0xff]  }
  0x53   :  { %9163 = vmatpush3.bf16.msra.mxu1 %v9879_v0  ;;  %9144 = vmatprep.subr.bf16.mxu0 %v10388_v1  ;;  %v9923_v0 = vld [vmem:[%s12492_s6 + $0xe0] sm:$0xff]  }
  0x54   :  { %9164 = vmatprep.subr.bf16.mxu1 %v10388_v1 }
  0x56   :  { %9145 = vmatpush3.bf16.msra.mxu0 %v9880_v2  ;;  %v9924_v2 = vld [vmem:[%s12492_s6 + $0xa8] sm:$0xff]  }
  0x57   :  { %9165 = vmatpush3.bf16.msra.mxu1 %v9881_v3  ;;  %9170 = vmatprep.subr.bf16.mxu0 %v10388_v1  ;;  %v9925_v3 = vld [vmem:[%s12492_s6 + $0xe8] sm:$0xff]  }
  0x58   :  { %9190 = vmatprep.subr.bf16.mxu1 %v10388_v1 }
 0x102   :  { %v8681_v28 = vpop.f32.mrb[0].mxu0 }
 0x103   :  { %v360_v29 = vpop.f32.mrb[0].mxu1  ;;  %v8682_v30 = vpop.f32.mrb[1].mxu0 }
 0x104   :  { %v8683_v31 = vadd.f32 %v8682_v30, %v8681_v28  ;;  %v9128_v32 = vpop.f32.mrb[1].mxu1  ;;  %v8684_v33 = vpop.f32.mrb[2].mxu0  ;;  %v9889_v28 = vld [vmem:[%s12489_s4 + $0xd8] sm:$0xff]   ;;  %v9891_v30 = vld [vmem:[%s12489_s4 + $0xe0] sm:$0xff]  }
 0x105   :  { %v363_v34 = vpop.f32.mrb[2].mxu1  ;;  %v8685_v35 = vpop.f32.mrb[3].mxu0  ;;  %v9893_v32 = vld [vmem:[%s12489_s4 + $0xe8] sm:$0xff]  }
 0x106   :  { %v361_v37 = vadd.f32 %v8683_v31, %v360_v29  ;;  %v8686_v38 = vadd.f32 %v8685_v35, %v8684_v33  ;;  %v9129_v39 = vpop.f32.mrb[3].mxu1  ;;  %v9890_v29 = vld [vmem:[%s12489_s4 + $0xa0] sm:$0xff]   ;;  %v9892_v31 = vld [vmem:[%s12489_s4 + $0xa8] sm:$0xff]   ;;  %v9894_v33 = vld [vmem:[%s12489_s4 + $0xb0] sm:$0xff]  }
 0x107   :  { %v9896_v35 = vld [vmem:[%s12489_s4 + $0xb8] sm:$0xff]   ;;  %v9900_v39 = vld [vmem:[%s12492_s6 + $0x8] sm:$0xff]  }
 0x108   :  { %v364_v40 = vadd.f32 %v8686_v38, %v363_v34  ;;  %v10607_v41 = vadd.f32 %v367_v36, %v361_v37  ;;  %v9895_v34 = vld [vmem:[%s12489_s4 + $0xf0] sm:$0xff]   ;;  %v9898_v37 = vld [vmem:[%s12492_s6] sm:$0xff]  }
 0x109   :  { %v9899_v38 = vld [vmem:[%s12492_s6 + $0x40] sm:$0xff]  }
 0x10a   :  { %372 = vadd.xlane.f32.xlu0 %v10607_v41  ;;  %v10610_v42 = vadd.f32 %v367_v36, %v364_v40  ;;  %v9897_v36 = vld [vmem:[%s12489_s4 + $0xf8] sm:$0xff]   ;;  %v9901_v40 = vld [vmem:[%s12492_s6 + $0x48] sm:$0xff]  }
 0x10e   :  { %374 = vadd.xlane.f32.xlu0 %v10610_v42 }
 0x197   :  { %v373_v47 = vpop.xlane.xlu0 %372 }
 0x198   :  { %v377_v48 = vmul.f32 0.0078125, %v373_v47  ;;  %v9906_v47 = vld [vmem:[%s12492_s6 + $0x20] sm:$0xff]  }
 0x19a   :  { %v379_v49 = vsub.f32 %v10607_v41, %v377_v48  ;;  %v9907_v48 = vld [vmem:[%s12492_s6 + $0x60] sm:$0xff]  }
 0x19b   :  { %v375_v50 = vpop.xlane.xlu0 %374 }
 0x19c   :  { %v378_v51 = vmul.f32 0.0078125, %v375_v50  ;;  %v381_v52 = vmul.f32 %v379_v49, %v379_v49  ;;  %v9909_v50 = vld [vmem:[%s12492_s6 + $0x68] sm:$0xff]  }
 0x19e   :  { %v380_v53 = vsub.f32 %v10610_v42, %v378_v51  ;;  %383 = vadd.xlane.f32.xlu1 %v381_v52  ;;  %v9910_v51 = vld [vmem:[%s12492_s6 + $0x30] sm:$0xff]  }
 0x19f   :  { %v9911_v52 = vld [vmem:[%s12492_s6 + $0x70] sm:$0xff]  }
 0x1a0   :  { %v382_v54 = vmul.f32 %v380_v53, %v380_v53 }
 0x1a2   :  { %385 = vadd.xlane.f32.xlu1 %v382_v54  ;;  %v9913_v54 = vld [vmem:[%s12492_s6 + $0x78] sm:$0xff]  }
 0x22b   :  { %v384_v4 = vpop.xlane.xlu1 %383 }
 0x22c   :  { %v387_v5 = vmul.f32 0.0078125, %v384_v4  ;;  %v9926_v4 = vld [vmem:[%s12492_s6 + $0xb0] sm:$0xff]  }
 0x22e   :  { %v389_v6 = vadd.f32 1e-05, %v387_v5  ;;  %v9927_v5 = vld [vmem:[%s12492_s6 + $0xf0] sm:$0xff]  }
 0x22f   :  { %v386_v7 = vpop.xlane.xlu1 %385 }
 0x230   :  { %10250 = vrsqrt.f32 %v389_v6  ;;  %v388_v8 = vmul.f32 0.0078125, %v386_v7  ;;  %v9928_v6 = vld [vmem:[%s12492_s6 + $0xb8] sm:$0xff]  }
 0x231   :  { %v9929_v7 = vld [vmem:[%s12492_s6 + $0xf8] sm:$0xff]  }
 0x232   :  { %v390_v9 = vadd.f32 1e-05, %v388_v8  ;;  %v9930_v8 = vld [vmem:[%s12457_s7] sm:$0xff]  }
 0x234   :  { %10252 = vrsqrt.f32 %v390_v9  ;;  %v9931_v9 = vld [vmem:[%s12457_s7 + $0x40] sm:$0xff]  }
 0x23a   :  { %v10251_v10 = vpop.eup %10250 }
 0x23b   :  { %v393_v11 = vmul.f32 %v10251_v10, %v379_v49  ;;  %v9908_v49 = vld [vmem:[%s12492_s6 + $0x28] sm:$0xff]  }
 0x23c   :  { %v9932_v10 = vld [vmem:[%s12457_s7 + $0x8] sm:$0xff]  }
 0x23d   :  { %v401_v14 = vmul.f32 %v7929_v12, %v393_v11  ;;  %v9933_v11 = vld [vmem:[%s12457_s7 + $0x48] sm:$0xff]  }
 0x23e   :  { %v10253_v13 = vpop.eup %10252 }
 0x23f   :  { %v394_v15 = vmul.f32 %v10253_v13, %v380_v53  ;;  %v409_v18 = vadd.f32 %v7930_v16, %v401_v14  ;;  %v9912_v53 = vld [vmem:[%s12492_s6 + $0x38] sm:$0xff]   ;;  %v9935_v13 = vld [vmem:[%s12457_s7 + $0x50] sm:$0xff]  }
 0x240   :  { %v9936_v14 = vld [vmem:[%s12457_s7 + $0x18] sm:$0xff]  }
 0x241   :  { %v402_v17 = vmul.f32 %v7929_v12, %v394_v15  ;;  %v9934_v12 = vld [vmem:[%s12457_s7 + $0x10] sm:$0xff]   ;;  %v9937_v15 = vld [vmem:[%s12457_s7 + $0x58] sm:$0xff]  }
 0x243   :  { %v410_v19 = vadd.f32 %v7930_v16, %v402_v17  ;;  %v9938_v16 = vld [vmem:[%s12457_s7 + $0x20] sm:$0xff]  }
 0x244   :  { %v9939_v17 = vld [vmem:[%s12457_s7 + $0x60] sm:$0xff]  }
 0x245   :  { %v10691_v22 = vpack.c.bf16 %v410_v19, %v409_v18  ;;  %v9940_v18 = vld [vmem:[%s12457_s7 + $0x28] sm:$0xff]  }
 0x246   :  { %v9941_v19 = vld [vmem:[%s12457_s7 + $0x68] sm:$0xff]  }
 0x247   :  { %9147 = vmatmul.mubr.bf16.vlgmr.msra.gmra.mrb[4].mxu0 %v10691_v22  ;;  %9167 = vmatmul.mubr.bf16.vlgmr.msra.gmra.mrb[4].mxu1 %v10691_v22 }
 0x248   :  { %9171 = vmatpush3.bf16.msra.mxu0 %v9882_v20  ;;  %9191 = vmatpush3.bf16.msra.mxu1 %v9883_v21  ;;  %v9942_v20 = vld [vmem:[%s12457_s7 + $0x30] sm:$0xff]  }
 0x249   :  { %9172 = vmatprep.subr.bf16.mxu0 %v10388_v1  ;;  %9192 = vmatprep.subr.bf16.mxu1 %v10388_v1  ;;  %v9943_v21 = vld [vmem:[%s12457_s7 + $0x70] sm:$0xff]  }
 0x24a   :  { %9186 = vmatprep.mubr.msk.bf16.mxu0 %vm10389_vm0, %v10388_v1  ;;  %9206 = vmatprep.mubr.msk.bf16.mxu1 %vm10389_vm0, %v10388_v1 }
 0x24c   :  { %9173 = vmatpush3.bf16.msra.mxu0 %v9884_v23  ;;  %9193 = vmatpush3.bf16.msra.mxu1 %v9885_v24  ;;  %v9944_v23 = vld [vmem:[%s12457_s7 + $0x38] sm:$0xff]  }
 0x24d   :  { %9174 = vmatprep.subr.bf16.mxu0 %v10388_v1  ;;  %9194 = vmatprep.subr.bf16.mxu1 %v10388_v1  ;;  %v9945_v24 = vld [vmem:[%s12457_s7 + $0x78] sm:$0xff]  }
 0x250   :  { %9175 = vmatpush3.bf16.msra.mxu0 %v9886_v25  ;;  %9195 = vmatpush3.bf16.msra.mxu1 %v9887_v26  ;;  %v9946_v25 = vld [vmem:[%s12457_s7 + $0x80] sm:$0xff]  }
 0x251   :  { %9176 = vmatprep.subr.bf16.mxu0 %v10388_v1  ;;  %9196 = vmatprep.subr.bf16.mxu1 %v10388_v1  ;;  %v9947_v26 = vld [vmem:[%s12457_s7 + $0xc0] sm:$0xff]  }
 0x254   :  { %9177 = vmatpush3.bf16.msra.mxu0 %v9888_v27  ;;  %9197 = vmatpush3.bf16.msra.mxu1 %v9889_v28  ;;  %v9948_v27 = vld [vmem:[%s12457_s7 + $0x88] sm:$0xff]  }
 0x255   :  { %9178 = vmatprep.subr.bf16.mxu0 %v10388_v1  ;;  %9198 = vmatprep.subr.bf16.mxu1 %v10388_v1  ;;  %v9949_v28 = vld [vmem:[%s12457_s7 + $0xc8] sm:$0xff]  }
 0x258   :  { %9179 = vmatpush3.bf16.msra.mxu0 %v9890_v29  ;;  %9199 = vmatpush3.bf16.msra.mxu1 %v9891_v30  ;;  %v9950_v29 = vld [vmem:[%s12457_s7 + $0x90] sm:$0xff]  }
 0x259   :  { %9180 = vmatprep.subr.bf16.mxu0 %v10388_v1  ;;  %9200 = vmatprep.subr.bf16.mxu1 %v10388_v1  ;;  %v9951_v30 = vld [vmem:[%s12457_s7 + $0xd0] sm:$0xff]  }
 0x25c   :  { %9181 = vmatpush3.bf16.msra.mxu0 %v9892_v31  ;;  %9201 = vmatpush3.bf16.msra.mxu1 %v9893_v32  ;;  %v9952_v31 = vld [vmem:[%s12457_s7 + $0x98] sm:$0xff]  }
 0x25d   :  { %9182 = vmatprep.subr.bf16.mxu0 %v10388_v1  ;;  %9202 = vmatprep.subr.bf16.mxu1 %v10388_v1  ;;  %v9953_v32 = vld [vmem:[%s12457_s7 + $0xd8] sm:$0xff]  }
 0x260   :  { %9183 = vmatpush3.bf16.msra.mxu0 %v9894_v33  ;;  %9203 = vmatpush3.bf16.msra.mxu1 %v9895_v34  ;;  %v9954_v33 = vld [vmem:[%s12457_s7 + $0xa0] sm:$0xff]  }
 0x261   :  { %9184 = vmatprep.subr.bf16.mxu0 %v10388_v1  ;;  %9204 = vmatprep.subr.bf16.mxu1 %v10388_v1  ;;  %v9955_v34 = vld [vmem:[%s12457_s7 + $0xe0] sm:$0xff]  }
 0x264   :  { %9185 = vmatpush3.bf16.msra.mxu0 %v9896_v35  ;;  %9205 = vmatpush3.bf16.msra.mxu1 %v9897_v36  ;;  %v9956_v35 = vld [vmem:[%s12457_s7 + $0xa8] sm:$0xff]  }
 0x265   :  { %9210 = vmatprep.subr.bf16.mxu0 %v10388_v1  ;;  %9230 = vmatprep.subr.bf16.mxu1 %v10388_v1  ;;  %v9957_v36 = vld [vmem:[%s12457_s7 + $0xe8] sm:$0xff]  }
 0x267   :  { %9187 = vmatmul.mubr.bf16.vlgmr.msra.gmra.mrb[8].mxu0 %v10691_v22  ;;  %9207 = vmatmul.mubr.bf16.vlgmr.msra.gmra.mrb[8].mxu1 %v10691_v22 }
 0x268   :  { %9211 = vmatpush3.bf16.msra.mxu0 %v9898_v37  ;;  %9231 = vmatpush3.bf16.msra.mxu1 %v9899_v38  ;;  %v9958_v37 = vld [vmem:[%s12457_s7 + $0xb0] sm:$0xff]  }
 0x269   :  { %9212 = vmatprep.subr.bf16.mxu0 %v10388_v1  ;;  %9232 = vmatprep.subr.bf16.mxu1 %v10388_v1  ;;  %v9959_v38 = vld [vmem:[%s12457_s7 + $0xf0] sm:$0xff]  }
 0x26a   :  { %9226 = vmatprep.mubr.msk.bf16.mxu0 %vm10389_vm0, %v10388_v1  ;;  %9246 = vmatprep.mubr.msk.bf16.mxu1 %vm10389_vm0, %v10388_v1 }
 0x26c   :  { %9213 = vmatpush3.bf16.msra.mxu0 %v9900_v39  ;;  %9233 = vmatpush3.bf16.msra.mxu1 %v9901_v40  ;;  %v9960_v39 = vld [vmem:[%s12457_s7 + $0xb8] sm:$0xff]  }
 0x26d   :  { %9214 = vmatprep.subr.bf16.mxu0 %v10388_v1  ;;  %9234 = vmatprep.subr.bf16.mxu1 %v10388_v1  ;;  %v9961_v40 = vld [vmem:[%s12457_s7 + $0xf8] sm:$0xff]  }
 0x270   :  { %9215 = vmatpush3.bf16.msra.mxu0 %v9902_v43  ;;  %9235 = vmatpush3.bf16.msra.mxu1 %v9903_v44 }
 0x271   :  { %9216 = vmatprep.subr.bf16.mxu0 %v10388_v1  ;;  %9236 = vmatprep.subr.bf16.mxu1 %v10388_v1 }
 0x274   :  { %9217 = vmatpush3.bf16.msra.mxu0 %v9904_v45  ;;  %9237 = vmatpush3.bf16.msra.mxu1 %v9905_v46 }
 0x275   :  { %9218 = vmatprep.subr.bf16.mxu0 %v10388_v1  ;;  %9238 = vmatprep.subr.bf16.mxu1 %v10388_v1 }
 0x278   :  { %9219 = vmatpush3.bf16.msra.mxu0 %v9906_v47  ;;  %9239 = vmatpush3.bf16.msra.mxu1 %v9907_v48 }
 0x279   :  { %9220 = vmatprep.subr.bf16.mxu0 %v10388_v1  ;;  %9240 = vmatprep.subr.bf16.mxu1 %v10388_v1 }
 0x27c   :  { %9221 = vmatpush3.bf16.msra.mxu0 %v9908_v49  ;;  %9241 = vmatpush3.bf16.msra.mxu1 %v9909_v50 }
 0x27d   :  { %9222 = vmatprep.subr.bf16.mxu0 %v10388_v1  ;;  %9242 = vmatprep.subr.bf16.mxu1 %v10388_v1 }
 0x280   :  { %9223 = vmatpush3.bf16.msra.mxu0 %v9910_v51  ;;  %9243 = vmatpush3.bf16.msra.mxu1 %v9911_v52 }
 0x281   :  { %9224 = vmatprep.subr.bf16.mxu0 %v10388_v1  ;;  %9244 = vmatprep.subr.bf16.mxu1 %v10388_v1 }
 0x284   :  { %9225 = vmatpush3.bf16.msra.mxu0 %v9912_v53  ;;  %9245 = vmatpush3.bf16.msra.mxu1 %v9913_v54 }
 0x285   :  { %9250 = vmatprep.subr.bf16.mxu0 %v10388_v1  ;;  %9270 = vmatprep.subr.bf16.mxu1 %v10388_v1 }
 0x287   :  { %9227 = vmatmul.mubr.bf16.vlgmr.msra.gmra.mrb[12].mxu0 %v10691_v22  ;;  %9247 = vmatmul.mubr.bf16.vlgmr.msra.gmra.mrb[12].mxu1 %v10691_v22 }
 0x288   :  { %9251 = vmatpush3.bf16.msra.mxu0 %v9914_v55  ;;  %9271 = vmatpush3.bf16.msra.mxu1 %v9915_v56 }
 0x289   :  { %9252 = vmatprep.subr.bf16.mxu0 %v10388_v1  ;;  %9272 = vmatprep.subr.bf16.mxu1 %v10388_v1 }
 0x28a   :  { %9266 = vmatprep.mubr.msk.bf16.mxu0 %vm10389_vm0, %v10388_v1  ;;  %9286 = vmatprep.mubr.msk.bf16.mxu1 %vm10389_vm0, %v10388_v1 }
 0x28c   :  { %9253 = vmatpush3.bf16.msra.mxu0 %v9916_v57  ;;  %9273 = vmatpush3.bf16.msra.mxu1 %v9917_v58 }
 0x28d   :  { %9254 = vmatprep.subr.bf16.mxu0 %v10388_v1  ;;  %9274 = vmatprep.subr.bf16.mxu1 %v10388_v1 }
 0x290   :  { %9255 = vmatpush3.bf16.msra.mxu0 %v9918_v59  ;;  %9275 = vmatpush3.bf16.msra.mxu1 %v9919_v60 }
 0x291   :  { %9256 = vmatprep.subr.bf16.mxu0 %v10388_v1  ;;  %9276 = vmatprep.subr.bf16.mxu1 %v10388_v1 }
 0x294   :  { %9257 = vmatpush3.bf16.msra.mxu0 %v9920_v61  ;;  %9277 = vmatpush3.bf16.msra.mxu1 %v9921_v62 }
 0x295   :  { %9258 = vmatprep.subr.bf16.mxu0 %v10388_v1  ;;  %9278 = vmatprep.subr.bf16.mxu1 %v10388_v1 }
 0x298   :  { %9259 = vmatpush3.bf16.msra.mxu0 %v9922_v63  ;;  %9279 = vmatpush3.bf16.msra.mxu1 %v9923_v0 }
 0x299   :  { %9260 = vmatprep.subr.bf16.mxu0 %v10388_v1  ;;  %9280 = vmatprep.subr.bf16.mxu1 %v10388_v1 }
 0x29c   :  { %9261 = vmatpush3.bf16.msra.mxu0 %v9924_v2  ;;  %9281 = vmatpush3.bf16.msra.mxu1 %v9925_v3 }
 0x29d   :  { %9262 = vmatprep.subr.bf16.mxu0 %v10388_v1  ;;  %9282 = vmatprep.subr.bf16.mxu1 %v10388_v1 }
 0x2a0   :  { %9263 = vmatpush3.bf16.msra.mxu0 %v9926_v4  ;;  %9283 = vmatpush3.bf16.msra.mxu1 %v9927_v5 }
 0x2a1   :  { %9264 = vmatprep.subr.bf16.mxu0 %v10388_v1  ;;  %9284 = vmatprep.subr.bf16.mxu1 %v10388_v1 }
 0x2a4   :  { %9265 = vmatpush3.bf16.msra.mxu0 %v9928_v6  ;;  %9285 = vmatpush3.bf16.msra.mxu1 %v9929_v7 }
 0x2a5   :  { %9290 = vmatprep.subr.bf16.mxu0 %v10388_v1  ;;  %9310 = vmatprep.subr.bf16.mxu1 %v10388_v1 }
 0x2a7   :  { %9267 = vmatmul.mubr.bf16.vlgmr.msra.gmra.mrb[16].mxu0 %v10691_v22  ;;  %9287 = vmatmul.mubr.bf16.vlgmr.msra.gmra.mrb[16].mxu1 %v10691_v22 }
 0x2a8   :  { %9291 = vmatpush3.bf16.msra.mxu0 %v9930_v8  ;;  %9311 = vmatpush3.bf16.msra.mxu1 %v9931_v9 }
 0x2a9   :  { %9292 = vmatprep.subr.bf16.mxu0 %v10388_v1  ;;  %9312 = vmatprep.subr.bf16.mxu1 %v10388_v1 }
 0x2aa   :  { %9306 = vmatprep.mubr.msk.bf16.mxu0 %vm10389_vm0, %v10388_v1  ;;  %9326 = vmatprep.mubr.msk.bf16.mxu1 %vm10389_vm0, %v10388_v1 }
 0x2ac   :  { %9293 = vmatpush3.bf16.msra.mxu0 %v9932_v10  ;;  %9313 = vmatpush3.bf16.msra.mxu1 %v9933_v11 }
 0x2ad   :  { %9294 = vmatprep.subr.bf16.mxu0 %v10388_v1  ;;  %9314 = vmatprep.subr.bf16.mxu1 %v10388_v1 }
 0x2b0   :  { %9295 = vmatpush3.bf16.msra.mxu0 %v9934_v12  ;;  %9315 = vmatpush3.bf16.msra.mxu1 %v9935_v13 }
 0x2b1   :  { %9296 = vmatprep.subr.bf16.mxu0 %v10388_v1  ;;  %9316 = vmatprep.subr.bf16.mxu1 %v10388_v1 }
 0x2b4   :  { %9297 = vmatpush3.bf16.msra.mxu0 %v9936_v14  ;;  %9317 = vmatpush3.bf16.msra.mxu1 %v9937_v15 }
 0x2b5   :  { %9298 = vmatprep.subr.bf16.mxu0 %v10388_v1  ;;  %9318 = vmatprep.subr.bf16.mxu1 %v10388_v1 }
 0x2b8   :  { %9299 = vmatpush3.bf16.msra.mxu0 %v9938_v16  ;;  %9319 = vmatpush3.bf16.msra.mxu1 %v9939_v17 }
 0x2b9   :  { %9300 = vmatprep.subr.bf16.mxu0 %v10388_v1  ;;  %9320 = vmatprep.subr.bf16.mxu1 %v10388_v1 }
 0x2bc   :  { %9301 = vmatpush3.bf16.msra.mxu0 %v9940_v18  ;;  %9321 = vmatpush3.bf16.msra.mxu1 %v9941_v19 }
 0x2bd   :  { %9302 = vmatprep.subr.bf16.mxu0 %v10388_v1  ;;  %9322 = vmatprep.subr.bf16.mxu1 %v10388_v1 }
 0x2c0   :  { %9303 = vmatpush3.bf16.msra.mxu0 %v9942_v20  ;;  %9323 = vmatpush3.bf16.msra.mxu1 %v9943_v21 }
 0x2c1   :  { %9304 = vmatprep.subr.bf16.mxu0 %v10388_v1  ;;  %9324 = vmatprep.subr.bf16.mxu1 %v10388_v1 }
 0x2c4   :  { %9305 = vmatpush3.bf16.msra.mxu0 %v9944_v23  ;;  %9325 = vmatpush3.bf16.msra.mxu1 %v9945_v24 }
 0x2c5   :  { %9330 = vmatprep.subr.bf16.mxu0 %v10388_v1  ;;  %9350 = vmatprep.subr.bf16.mxu1 %v10388_v1 }
 0x2c7   :  { %9307 = vmatmul.mubr.bf16.vlgmr.msra.gmra.mrb[20].mxu0 %v10691_v22  ;;  %9327 = vmatmul.mubr.bf16.vlgmr.msra.gmra.mrb[20].mxu1 %v10691_v22 }
 0x2c8   :  { %9331 = vmatpush3.bf16.msra.mxu0 %v9946_v25  ;;  %9351 = vmatpush3.bf16.msra.mxu1 %v9947_v26 }
 0x2c9   :  { %9332 = vmatprep.subr.bf16.mxu0 %v10388_v1  ;;  %9352 = vmatprep.subr.bf16.mxu1 %v10388_v1 }
 0x2ca   :  { %9346 = vmatprep.mubr.msk.bf16.mxu0 %vm10389_vm0, %v10388_v1  ;;  %9366 = vmatprep.mubr.msk.bf16.mxu1 %vm10389_vm0, %v10388_v1 }
 0x2cc   :  { %9333 = vmatpush3.bf16.msra.mxu0 %v9948_v27  ;;  %9353 = vmatpush3.bf16.msra.mxu1 %v9949_v28 }
 0x2cd   :  { %9334 = vmatprep.subr.bf16.mxu0 %v10388_v1  ;;  %9354 = vmatprep.subr.bf16.mxu1 %v10388_v1 }
 0x2d0   :  { %9335 = vmatpush3.bf16.msra.mxu0 %v9950_v29  ;;  %9355 = vmatpush3.bf16.msra.mxu1 %v9951_v30 }
 0x2d1   :  { %9336 = vmatprep.subr.bf16.mxu0 %v10388_v1  ;;  %9356 = vmatprep.subr.bf16.mxu1 %v10388_v1 }
 0x2d4   :  { %9337 = vmatpush3.bf16.msra.mxu0 %v9952_v31  ;;  %9357 = vmatpush3.bf16.msra.mxu1 %v9953_v32 }
 0x2d5   :  { %9338 = vmatprep.subr.bf16.mxu0 %v10388_v1  ;;  %9358 = vmatprep.subr.bf16.mxu1 %v10388_v1 }
 0x2d8   :  { %9339 = vmatpush3.bf16.msra.mxu0 %v9954_v33  ;;  %9359 = vmatpush3.bf16.msra.mxu1 %v9955_v34 }
 0x2d9   :  { %9340 = vmatprep.subr.bf16.mxu0 %v10388_v1  ;;  %9360 = vmatprep.subr.bf16.mxu1 %v10388_v1 }
 0x2dc   :  { %9341 = vmatpush3.bf16.msra.mxu0 %v9956_v35  ;;  %9361 = vmatpush3.bf16.msra.mxu1 %v9957_v36 }
 0x2dd   :  { %9342 = vmatprep.subr.bf16.mxu0 %v10388_v1  ;;  %9362 = vmatprep.subr.bf16.mxu1 %v10388_v1 }
 0x2e0   :  { %9343 = vmatpush3.bf16.msra.mxu0 %v9958_v37  ;;  %9363 = vmatpush3.bf16.msra.mxu1 %v9959_v38 }
 0x2e1   :  { %9344 = vmatprep.subr.bf16.mxu0 %v10388_v1  ;;  %9364 = vmatprep.subr.bf16.mxu1 %v10388_v1 }
 0x2e4   :  { %9345 = vmatpush3.bf16.msra.mxu0 %v9960_v39  ;;  %9365 = vmatpush3.bf16.msra.mxu1 %v9961_v40 }
 0x2e5   :  { %9370 = vmatprep.subr.mxu0 %v10388_v1  ;;  %9375 = vmatprep.subr.mxu1 %v10388_v1 }
 0x2e7   :  { %9347 = vmatmul.mubr.bf16.vlgmr.msra.gmra.mrb[24].mxu0 %v10691_v22  ;;  %9367 = vmatmul.mubr.bf16.vlgmr.msra.gmra.mrb[24].mxu1 %v10691_v22 }
 0x2e8   :  { %9372 = vmatprep.mubr.msk.f32.mxu0 %vm10389_vm0, %v10388_v1  ;;  %9377 = vmatprep.mubr.msk.f32.mxu1 %vm10389_vm0, %v10388_v1 }
 0x31a   :  { %v558_v43 = vpop.f32.mrb[4].mxu0  ;;  %v647_v44 = vpop.f32.mrb[4].mxu1 }
 0x31b   :  { %v9148_v45 = vpop.f32.mrb[5].mxu0  ;;  %v9168_v46 = vpop.f32.mrb[5].mxu1 }
 0x31c   :  { %v561_v47 = vpop.f32.mrb[6].mxu0  ;;  %v650_v48 = vpop.f32.mrb[6].mxu1 }
 0x31d   :  { %v9149_v49 = vpop.f32.mrb[7].mxu0  ;;  %v9169_v50 = vpop.f32.mrb[7].mxu1 }
 0x33a   :  { %v736_v51 = vpop.f32.mrb[8].mxu0  ;;  %v825_v52 = vpop.f32.mrb[8].mxu1 }
 0x33b   :  { %v9188_v53 = vpop.f32.mrb[9].mxu0  ;;  %v9208_v54 = vpop.f32.mrb[9].mxu1 }
 0x33c   :  { %v739_v55 = vpop.f32.mrb[10].mxu0  ;;  %v828_v22 = vpop.f32.mrb[10].mxu1 }
 0x33d   :  { %v9189_v56 = vpop.f32.mrb[11].mxu0  ;;  %v9209_v57 = vpop.f32.mrb[11].mxu1 }
 0x35a   :  { %v978_v58 = vpop.f32.mrb[12].mxu0  ;;  %v1067_v59 = vpop.f32.mrb[12].mxu1 }
 0x35b   :  { %v9228_v60 = vpop.f32.mrb[13].mxu0  ;;  %v9248_v61 = vpop.f32.mrb[13].mxu1  ;;  %9371 = vmatpush3.xpose.msk.msra.mxu0 %vm1672_vm1, %v978_v58 }
 0x35c   :  { %v981_v62 = vpop.f32.mrb[14].mxu0  ;;  %v1070_v63 = vpop.f32.mrb[14].mxu1  ;;  %9380 = vmatprep.subr.mxu0 %v10388_v1 }
 0x35d   :  { %v9229_v0 = vpop.f32.mrb[15].mxu0  ;;  %v9249_v2 = vpop.f32.mrb[15].mxu1  ;;  %9376 = vmatpush3.xpose.msk.msra.mxu1 %vm1672_vm1, %v981_v62 }
 0x35e   :  { %9373 = vmatmul.mubr.msk.f32.vlgmr.msra.gmra.mrb[28].mxu0 %vm1672_vm1, %v558_v43  ;;  %9385 = vmatprep.subr.mxu1 %v10388_v1 }
 0x35f   :  { %9381 = vmatpush3.xpose.msk.msra.mxu0 %vm1672_vm1, %v1067_v59  ;;  %9382 = vmatprep.mubr.msk.f32.mxu0 %vm10389_vm0, %v10388_v1 }
 0x360   :  { %9378 = vmatmul.mubr.msk.f32.vlgmr.msra.gmra.mrb[28].mxu1 %vm1672_vm1, %v561_v47  ;;  %9390 = vmatprep.subr.mxu0 %v10388_v1 }
 0x361   :  { %9386 = vmatpush3.xpose.msk.msra.mxu1 %vm1672_vm1, %v1070_v63  ;;  %9387 = vmatprep.mubr.msk.f32.mxu1 %vm10389_vm0, %v10388_v1 }
 0x362   :  { %9383 = vmatmul.mubr.msk.f32.vlgmr.msra.gmra.mrb[30].mxu0 %vm1672_vm1, %v647_v44  ;;  %9395 = vmatprep.subr.mxu1 %v10388_v1 }
 0x363   :  { %9392 = vmatprep.mubr.msk.f32.mxu0 %vm10389_vm0, %v10388_v1 }
 0x364   :  { %9388 = vmatmul.mubr.msk.f32.vlgmr.msra.gmra.mrb[30].mxu1 %vm1672_vm1, %v650_v48 }
 0x365   :  { %9397 = vmatprep.mubr.msk.f32.mxu1 %vm10389_vm0, %v10388_v1 }
 0x37a   :  { %v1156_v3 = vpop.f32.mrb[16].mxu0  ;;  %v1245_v4 = vpop.f32.mrb[16].mxu1 }
 0x37b   :  { %v9268_v5 = vpop.f32.mrb[17].mxu0  ;;  %v9288_v6 = vpop.f32.mrb[17].mxu1  ;;  %9391 = vmatpush3.xpose.msk.msra.mxu0 %vm1672_vm1, %v1156_v3 }
 0x37c   :  { %v1159_v7 = vpop.f32.mrb[18].mxu0  ;;  %v1248_v8 = vpop.f32.mrb[18].mxu1  ;;  %9400 = vmatprep.subr.mxu0 %v10388_v1 }
 0x37d   :  { %v9269_v9 = vpop.f32.mrb[19].mxu0  ;;  %v9289_v10 = vpop.f32.mrb[19].mxu1  ;;  %9396 = vmatpush3.xpose.msk.msra.mxu1 %vm1672_vm1, %v1159_v7 }
 0x37e   :  { %9393 = vmatmul.mubr.msk.f32.vlgmr.msra.gmra.mrb[32].mxu0 %vm1672_vm1, %v736_v51  ;;  %9405 = vmatprep.subr.mxu1 %v10388_v1 }
 0x37f   :  { %9401 = vmatpush3.xpose.msk.msra.mxu0 %vm1672_vm1, %v1245_v4  ;;  %9402 = vmatprep.mubr.msk.f32.mxu0 %vm10389_vm0, %v10388_v1 }
 0x380   :  { %9398 = vmatmul.mubr.msk.f32.vlgmr.msra.gmra.mrb[32].mxu1 %vm1672_vm1, %v739_v55  ;;  %9410 = vmatprep.subr.mxu0 %v10388_v1 }
 0x381   :  { %9406 = vmatpush3.xpose.msk.msra.mxu1 %vm1672_vm1, %v1248_v8  ;;  %9407 = vmatprep.mubr.msk.f32.mxu1 %vm10389_vm0, %v10388_v1 }
 0x382   :  { %9403 = vmatmul.mubr.msk.f32.vlgmr.msra.gmra.mrb[34].mxu0 %vm1672_vm1, %v825_v52  ;;  %9415 = vmatprep.subr.mxu1 %v10388_v1 }
 0x383   :  { %9412 = vmatprep.mubr.msk.f32.mxu0 %vm10389_vm0, %v10388_v1 }
 0x384   :  { %9408 = vmatmul.mubr.msk.f32.vlgmr.msra.gmra.mrb[34].mxu1 %vm1672_vm1, %v828_v22 }
 0x385   :  { %9417 = vmatprep.mubr.msk.f32.mxu1 %vm10389_vm0, %v10388_v1 }
 0x39a   :  { %v1398_v11 = vpop.f32.mrb[20].mxu0  ;;  %v11083_v12 = vpop.f32.mrb[20].mxu1 }
 0x39b   :  { %v9308_v13 = vpop.f32.mrb[21].mxu0  ;;  %v9328_v14 = vpop.f32.mrb[21].mxu1  ;;  %9411 = vmatpush3.msra.mxu0 %v1398_v11 }
 0x39c   :  { %v1401_v15 = vpop.f32.mrb[22].mxu0  ;;  %v11085_v16 = vpop.f32.mrb[22].mxu1  ;;  %9420 = vmatprep.subr.mxu0 %v10388_v1 }
 0x39d   :  { %v9309_v17 = vpop.f32.mrb[23].mxu0  ;;  %v9329_v18 = vpop.f32.mrb[23].mxu1  ;;  %9416 = vmatpush3.msra.mxu1 %v1401_v15 }
 0x39e   :  { %9425 = vmatprep.subr.mxu1 %v10388_v1 }
 0x3ba   :  { %v11089_v19 = vpop.f32.mrb[24].mxu0  ;;  %v11091_v20 = vpop.f32.mrb[24].mxu1 }
 0x3bb   :  { %v9348_v21 = vpop.f32.mrb[25].mxu0  ;;  %v9368_v23 = vpop.f32.mrb[25].mxu1 }
 0x3bc   :  { %v11093_v24 = vpop.f32.mrb[26].mxu0  ;;  %v11095_v25 = vpop.f32.mrb[26].mxu1 }
 0x3bd   :  { %v9349_v26 = vpop.f32.mrb[27].mxu0  ;;  %v9369_v27 = vpop.f32.mrb[27].mxu1 }
 0x431   :  { %v1745_v28 = vpop.f32.mrb[28].mxu0 }
 0x432   :  { %v2281_v29 = vmul.f32 0.17677669, %v1745_v28  ;;  %v9374_v30 = vpop.f32.mrb[29].mxu0 }
 0x433   :  { %v1821_v31 = vpop.f32.mrb[28].mxu1 }
 0x434   :  { %v2282_v32 = vmul.f32 0.17677669, %v1821_v31  ;;  %v9379_v33 = vpop.f32.mrb[29].mxu1  ;;  %v2290_v34 = vsel %vm2289_vm2, %v2281_v29, -inf }
 0x435   :  { %2291 = vmax.xlane.f32.xlu0 %v2290_v34  ;;  %v1897_v35 = vpop.f32.mrb[30].mxu0 }
 0x436   :  { %v2283_v36 = vmul.f32 0.17677669, %v1897_v35  ;;  %v9384_v37 = vpop.f32.mrb[31].mxu0  ;;  %v2293_v38 = vsel %vm2289_vm2, %v2282_v32, -inf }
 0x437   :  { %2294 = vmax.xlane.f32.xlu1 %v2293_v38  ;;  %v1973_v39 = vpop.f32.mrb[30].mxu1 }
 0x438   :  { %v2284_v40 = vmul.f32 0.17677669, %v1973_v39  ;;  %v9389_v43 = vpop.f32.mrb[31].mxu1  ;;  %v2296_v44 = vsel %vm2289_vm2, %v2283_v36, -inf }
 0x439   :  { %2297 = vmax.xlane.f32.xlu0 %v2296_v44 }
 0x43a   :  { %v2299_v45 = vsel %vm2289_vm2, %v2284_v40, -inf }
 0x43b   :  { %2300 = vmax.xlane.f32.xlu1 %v2299_v45 }
 0x451   :  { %v2049_v46 = vpop.f32.mrb[32].mxu0 }
 0x452   :  { %v2285_v47 = vmul.f32 0.17677669, %v2049_v46  ;;  %v9394_v48 = vpop.f32.mrb[33].mxu0 }
 0x453   :  { %v2125_v49 = vpop.f32.mrb[32].mxu1 }
 0x454   :  { %v2286_v50 = vmul.f32 0.17677669, %v2125_v49  ;;  %v9399_v51 = vpop.f32.mrb[33].mxu1  ;;  %v2302_v52 = vsel %vm2289_vm2, %v2285_v47, -inf }
 0x455   :  { %2303 = vmax.xlane.f32.xlu0 %v2302_v52  ;;  %v2201_v53 = vpop.f32.mrb[34].mxu0 }
 0x456   :  { %v2287_v54 = vmul.f32 0.17677669, %v2201_v53  ;;  %v9404_v55 = vpop.f32.mrb[35].mxu0  ;;  %v2305_v22 = vsel %vm2289_vm2, %v2286_v50, -inf }
 0x457   :  { %2306 = vmax.xlane.f32.xlu1 %v2305_v22  ;;  %v2277_v56 = vpop.f32.mrb[34].mxu1 }
 0x458   :  { %v2288_v57 = vmul.f32 0.17677669, %v2277_v56  ;;  %v9409_v58 = vpop.f32.mrb[35].mxu1  ;;  %v2308_v59 = vsel %vm2289_vm2, %v2287_v54, -inf }
 0x459   :  { %2309 = vmax.xlane.f32.xlu0 %v2308_v59 }
 0x45a   :  { %v2311_v60 = vsel %vm2289_vm2, %v2288_v57, -inf }
 0x45b   :  { %2312 = vmax.xlane.f32.xlu1 %v2311_v60 }
 0x4c2   :  { %v2292_v61 = vpop.xlane.xlu0 %2291 }
 0x4c3   :  { %v2314_v62 = vsub.f32 %v2281_v29, %v2292_v61 }
 0x4c4   :  { %v2295_v63 = vpop.xlane.xlu1 %2294 }
 0x4c5   :  { %v2322_v0 = vmul.f32 1.442695, %v2314_v62  ;;  %v2315_v2 = vsub.f32 %v2282_v32, %v2295_v63 }
 0x4c6   :  { %v2298_v3 = vpop.xlane.xlu0 %2297 }
 0x4c7   :  { %10254 = vpow2.f32 %v2322_v0  ;;  %v2324_v4 = vmul.f32 1.442695, %v2315_v2  ;;  %v2316_v5 = vsub.f32 %v2283_v36, %v2298_v3  ;;  %v9962_v2 = vld [vmem:[%s12458_s8] sm:$0xff]  }
 0x4c8   :  { %v2301_v6 = vpop.xlane.xlu1 %2300 }
 0x4c9   :  { %10256 = vpow2.f32 %v2324_v4  ;;  %v2326_v7 = vmul.f32 1.442695, %v2316_v5  ;;  %v2317_v8 = vsub.f32 %v2284_v40, %v2301_v6  ;;  %v9964_v6 = vld [vmem:[%s12458_s8 + $0x10] sm:$0xff]  }
 0x4cb   :  { %10258 = vpow2.f32 %v2326_v7  ;;  %v2328_v9 = vmul.f32 1.442695, %v2317_v8 }
 0x4cd   :  { %10260 = vpow2.f32 %v2328_v9 }
 0x4d1   :  { %v10255_v10 = vpop.eup %10254 }
 0x4d2   :  { %v2338_v11 = vsel %vm2289_vm2, %v10255_v10, 0.0 }
 0x4d3   :  { %v10257_v13 = vpop.eup %10256  ;;  %2339 = vadd.xlane.f32.xlu0 %v2338_v11 }
 0x4d4   :  { %v2341_v14 = vsel %vm2289_vm2, %v10257_v13, 0.0 }
 0x4d5   :  { %v10259_v15 = vpop.eup %10258  ;;  %2342 = vadd.xlane.f32.xlu1 %v2341_v14 }
 0x4d6   :  { %v2344_v17 = vsel %vm2289_vm2, %v10259_v15, 0.0 }
 0x4d7   :  { %v10261_v18 = vpop.eup %10260  ;;  %2345 = vadd.xlane.f32.xlu0 %v2344_v17  ;;  %v9966_v17 = vld [vmem:[%s12458_s8 + $0x20] sm:$0xff]  }
 0x4d8   :  { %v2347_v21 = vsel %vm2289_vm2, %v10261_v18, 0.0 }
 0x4d9   :  { %2348 = vadd.xlane.f32.xlu1 %v2347_v21 }
 0x4e2   :  { %v2304_v23 = vpop.xlane.xlu0 %2303 }
 0x4e3   :  { %v2318_v26 = vsub.f32 %v2285_v47, %v2304_v23 }
 0x4e4   :  { %v2307_v27 = vpop.xlane.xlu1 %2306 }
 0x4e5   :  { %v2330_v28 = vmul.f32 1.442695, %v2318_v26  ;;  %v2319_v29 = vsub.f32 %v2286_v50, %v2307_v27  ;;  %v9968_v27 = vld [vmem:[%s12458_s8 + $0x30] sm:$0xff]  }
 0x4e6   :  { %v2310_v30 = vpop.xlane.xlu0 %2309 }
 0x4e7   :  { %10262 = vpow2.f32 %v2330_v28  ;;  %v2332_v31 = vmul.f32 1.442695, %v2319_v29  ;;  %v2320_v32 = vsub.f32 %v2287_v54, %v2310_v30 }
 0x4e8   :  { %v2313_v33 = vpop.xlane.xlu1 %2312 }
 0x4e9   :  { %10264 = vpow2.f32 %v2332_v31  ;;  %v2334_v34 = vmul.f32 1.442695, %v2320_v32  ;;  %v2321_v35 = vsub.f32 %v2288_v57, %v2313_v33  ;;  %v9969_v33 = vld [vmem:[%s12458_s8 + $0x38] sm:$0xff]  }
 0x4eb   :  { %10266 = vpow2.f32 %v2334_v34  ;;  %v2336_v36 = vmul.f32 1.442695, %v2321_v35 }
 0x4ed   :  { %10268 = vpow2.f32 %v2336_v36 }
 0x4f1   :  { %v10263_v37 = vpop.eup %10262 }
 0x4f2   :  { %v2350_v38 = vsel %vm2289_vm2, %v10263_v37, 0.0 }
 0x4f3   :  { %v10265_v39 = vpop.eup %10264  ;;  %2351 = vadd.xlane.f32.xlu0 %v2350_v38 }
 0x4f4   :  { %v2353_v40 = vsel %vm2289_vm2, %v10265_v39, 0.0 }
 0x4f5   :  { %v10267_v43 = vpop.eup %10266  ;;  %2354 = vadd.xlane.f32.xlu1 %v2353_v40 }
 0x4f6   :  { %v2356_v44 = vsel %vm2289_vm2, %v10267_v43, 0.0 }
 0x4f7   :  { %v10269_v45 = vpop.eup %10268  ;;  %2357 = vadd.xlane.f32.xlu0 %v2356_v44 }
 0x4f8   :  { %v2359_v46 = vsel %vm2289_vm2, %v10269_v45, 0.0 }
 0x4f9   :  { %2360 = vadd.xlane.f32.xlu1 %v2359_v46 }
 0x560   :  { %v2340_v47 = vpop.xlane.xlu0 %2339 }
 0x561   :  { %10270 = vrcp.f32 %v2340_v47 }
 0x562   :  { %v2343_v48 = vpop.xlane.xlu1 %2342 }
 0x563   :  { %10272 = vrcp.f32 %v2343_v48 }
 0x564   :  { %v2346_v49 = vpop.xlane.xlu0 %2345 }
 0x565   :  { %10274 = vrcp.f32 %v2346_v49 }
 0x566   :  { %v2349_v50 = vpop.xlane.xlu1 %2348 }
 0x567   :  { %10276 = vrcp.f32 %v2349_v50 }
 0x56b   :  { %v10271_v51 = vpop.eup %10270 }
 0x56c   :  { %v2363_v52 = vmul.f32 %v10271_v51, %v10255_v10 }
 0x56d   :  { %v10273_v53 = vpop.eup %10272 }
 0x56e   :  { %v2365_v54 = vmul.f32 %v10273_v53, %v10257_v13  ;;  %9413 = vmatmul.mubr.msk.f32.vlgmr.msra.gmra.mrb[36].mxu0 %vm2289_vm2, %v2363_v52  ;;  %v9965_v13 = vld [vmem:[%s12458_s8 + $0x18] sm:$0xff]  }
 0x56f   :  { %v10275_v55 = vpop.eup %10274  ;;  %9421 = vmatpush3.msra.mxu0 %v11083_v12  ;;  %9422 = vmatprep.mubr.msk.f32.mxu0 %vm10389_vm0, %v10388_v1 }
 0x570   :  { %v2367_v22 = vmul.f32 %v10275_v55, %v10259_v15  ;;  %9418 = vmatmul.mubr.msk.f32.vlgmr.msra.gmra.mrb[36].mxu1 %vm2289_vm2, %v2365_v54  ;;  %9430 = vmatprep.subr.mxu0 %v10388_v1  ;;  %v8063_v55 = vld [vmem:[%s12459_s9] ss:$0 sm:$0xff] }
 0x571   :  { %v10277_v56 = vpop.eup %10276  ;;  %9426 = vmatpush3.msra.mxu1 %v11085_v16  ;;  %9427 = vmatprep.mubr.msk.f32.mxu1 %vm10389_vm0, %v10388_v1 }
 0x572   :  { %v2369_v57 = vmul.f32 %v10277_v56, %v10261_v18  ;;  %9423 = vmatmul.mubr.msk.f32.vlgmr.msra.gmra.mrb[38].mxu0 %vm2289_vm2, %v2367_v22  ;;  %9435 = vmatprep.subr.mxu1 %v10388_v1  ;;  %v9967_v18 = vld [vmem:[%s12458_s8 + $0x28] sm:$0xff]  }
 0x573   :  { %9431 = vmatpush3.msra.mxu0 %v11089_v19  ;;  %9432 = vmatprep.mubr.msk.f32.mxu0 %vm10389_vm0, %v10388_v1 }
 0x574   :  { %9428 = vmatmul.mubr.msk.f32.vlgmr.msra.gmra.mrb[38].mxu1 %vm2289_vm2, %v2369_v57  ;;  %9440 = vmatprep.subr.mxu0 %v10388_v1 }
 0x575   :  { %9436 = vmatpush3.msra.mxu1 %v11093_v24  ;;  %9437 = vmatprep.mubr.msk.f32.mxu1 %vm10389_vm0, %v10388_v1 }
 0x576   :  { %9445 = vmatprep.subr.mxu1 %v10388_v1 }
 0x580   :  { %v2352_v12 = vpop.xlane.xlu0 %2351 }
 0x581   :  { %10278 = vrcp.f32 %v2352_v12 }
 0x582   :  { %v2355_v16 = vpop.xlane.xlu1 %2354 }
 0x583   :  { %10280 = vrcp.f32 %v2355_v16 }
 0x584   :  { %v2358_v58 = vpop.xlane.xlu0 %2357 }
 0x585   :  { %10282 = vrcp.f32 %v2358_v58 }
 0x586   :  { %v2361_v19 = vpop.xlane.xlu1 %2360 }
 0x587   :  { %10284 = vrcp.f32 %v2361_v19 }
 0x58b   :  { %v10279_v59 = vpop.eup %10278 }
 0x58c   :  { %v2371_v60 = vmul.f32 %v10279_v59, %v10263_v37 }
 0x58d   :  { %v10281_v61 = vpop.eup %10280 }
 0x58e   :  { %v2373_v62 = vmul.f32 %v10281_v61, %v10265_v39  ;;  %9433 = vmatmul.mubr.msk.f32.vlgmr.msra.gmra.mrb[40].mxu0 %vm2289_vm2, %v2371_v60  ;;  %v9970_v61 = vld [vmem:[%s12462_s12] ss:$16 sps:$4 sm:$0xff]  }
 0x58f   :  { %v10283_v24 = vpop.eup %10282  ;;  %9441 = vmatpush3.msra.mxu0 %v11091_v20  ;;  %9442 = vmatprep.mubr.msk.f32.mxu0 %vm10389_vm0, %v10388_v1  ;;  %v9963_v20 = vld [vmem:[%s12458_s8 + $0x8] sm:$0xff]  }
 0x590   :  { %v2375_v63 = vmul.f32 %v10283_v24, %v10267_v43  ;;  %9438 = vmatmul.mubr.msk.f32.vlgmr.msra.gmra.mrb[40].mxu1 %vm2289_vm2, %v2373_v62  ;;  %v9972_v62 = vld [vmem:[%s12462_s12 + $0x4] ss:$16 sps:$4 sm:$0xff]   ;;  %v9975_v24 = vld [vmem:[%s12462_s12 + $0xc] ss:$16 sps:$4 sm:$0xff]  }
 0x591   :  { %v10285_v0 = vpop.eup %10284  ;;  %9446 = vmatpush3.msra.mxu1 %v11095_v25  ;;  %9447 = vmatprep.mubr.msk.f32.mxu1 %vm10389_vm0, %v10388_v1 }
 0x592   :  { %v2377_v3 = vmul.f32 %v10285_v0, %v10269_v45  ;;  %9443 = vmatmul.mubr.msk.f32.vlgmr.msra.gmra.mrb[42].mxu0 %vm2289_vm2, %v2375_v63  ;;  %9450 = vmatprep.subr.bf16.mxu1 %v10388_v1  ;;  %v9981_v63 = vld [vmem:[%s12462_s12 + $0x2c] ss:$16 sps:$4 sm:$0xff]   ;;  %v9976_v0 = vld [vmem:[%s12462_s12 + $0x20] ss:$16 sps:$4 sm:$0xff]  }
 0x593   :  { %3478 = vmatprep.subr.bf16.mxu0 %v9972_v62  ;;  %v10022_v62 = vld [vmem:[%s12464_s14 + $0x48] sm:$0xff]  }
 0x594   :  { %9448 = vmatmul.mubr.msk.f32.vlgmr.msra.gmra.mrb[42].mxu1 %vm2289_vm2, %v2377_v3  ;;  %3479 = vmatpush1.bf16.msra.mxu0 %v9970_v61  ;;  %v10021_v61 = vld [vmem:[%s12464_s14 + $0x80] sm:$0xff]  }
 0x595   :  { %9451 = vmatpush3.bf16.msra.mxu1 %v9962_v2  ;;  %9454 = vmatprep.mubr.msk.bf16.mxu1 %vm10389_vm0, %v10388_v1  ;;  %v9979_v2 = vld [vmem:[%s12462_s12 + $0x28] ss:$16 sps:$4 sm:$0xff]  }
 0x596   :  { %9452 = vmatprep.subr.bf16.mxu1 %v10388_v1 }
 0x599   :  { %9453 = vmatpush3.bf16.msra.mxu1 %v9963_v20 }
 0x59a   :  { %9458 = vmatprep.subr.bf16.mxu1 %v10388_v1 }
 0x641   :  { %v2447_v25 = vpop.f32.mrb[36].mxu0 }
 0x642   :  { %v9414_v4 = vpop.f32.mrb[37].mxu0 }
 0x643   :  { %v2520_v5 = vpop.f32.mrb[36].mxu1 }
 0x644   :  { %v2962_v7 = vpack.c.bf16 %v2520_v5, %v2447_v25  ;;  %v9419_v8 = vpop.f32.mrb[37].mxu1 }
 0x645   :  { %v2593_v9 = vpop.f32.mrb[38].mxu0 }
 0x646   :  { %v9424_v10 = vpop.f32.mrb[39].mxu0  ;;  %9455 = vmatmul.mubr.msk.bf16.vlgmr.msra.gmra.mrb[44].mxu1 %vm1672_vm1, %v2962_v7 }
 0x647   :  { %v2666_v11 = vpop.f32.mrb[38].mxu1  ;;  %9459 = vmatpush3.bf16.msra.mxu1 %v9964_v6  ;;  %9462 = vmatprep.mubr.msk.bf16.mxu1 %vm10389_vm0, %v10388_v1  ;;  %v9987_v10 = vld [vmem:[%s12462_s12 + $0x4c] ss:$16 sps:$4 sm:$0xff]  }
 0x648   :  { %v2963_v14 = vpack.c.bf16 %v2666_v11, %v2593_v9  ;;  %v9429_v15 = vpop.f32.mrb[39].mxu1  ;;  %9460 = vmatprep.subr.bf16.mxu1 %v10388_v1  ;;  %v9984_v9 = vld [vmem:[%s12462_s12 + $0x44] ss:$16 sps:$4 sm:$0xff]   ;;  %v9982_v11 = vld [vmem:[%s12462_s12 + $0x40] ss:$16 sps:$4 sm:$0xff]  }
 0x649   :  { %v9993_v15 = vld [vmem:[%s12462_s12 + $0x6c] ss:$16 sps:$4 sm:$0xff]  }
 0x64b   :  { %9461 = vmatpush3.bf16.msra.mxu1 %v9965_v13  ;;  %v9985_v13 = vld [vmem:[%s12462_s12 + $0x48] ss:$16 sps:$4 sm:$0xff]  }
 0x64c   :  { %9466 = vmatprep.subr.bf16.mxu1 %v10388_v1 }
 0x64e   :  { %9463 = vmatmul.mubr.msk.bf16.vlgmr.msra.gmra.mrb[48].mxu1 %vm1672_vm1, %v2963_v14  ;;  %v9990_v14 = vld [vmem:[%s12462_s12 + $0x64] ss:$16 sps:$4 sm:$0xff]  }
 0x64f   :  { %9467 = vmatpush3.bf16.msra.mxu1 %v9966_v17  ;;  %9470 = vmatprep.mubr.msk.bf16.mxu1 %vm10389_vm0, %v10388_v1  ;;  %v9988_v17 = vld [vmem:[%s12462_s12 + $0x60] ss:$16 sps:$4 sm:$0xff]  }
 0x650   :  { %9468 = vmatprep.subr.bf16.mxu1 %v10388_v1 }
 0x653   :  { %9469 = vmatpush3.bf16.msra.mxu1 %v9967_v18  ;;  %v9991_v18 = vld [vmem:[%s12462_s12 + $0x68] ss:$16 sps:$4 sm:$0xff]  }
 0x654   :  { %9474 = vmatprep.subr.bf16.mxu1 %v10388_v1 }
 0x661   :  { %v2739_v21 = vpop.f32.mrb[40].mxu0 }
 0x662   :  { %v9434_v23 = vpop.f32.mrb[41].mxu0 }
 0x663   :  { %v2812_v26 = vpop.f32.mrb[40].mxu1  ;;  %v9999_v23 = vld [vmem:[%s12462_s12 + $0x8c] ss:$16 sps:$4 sm:$0xff]  }
 0x664   :  { %v2964_v28 = vpack.c.bf16 %v2812_v26, %v2739_v21  ;;  %v9439_v29 = vpop.f32.mrb[41].mxu1  ;;  %v9996_v21 = vld [vmem:[%s12462_s12 + $0x84] ss:$16 sps:$4 sm:$0xff]   ;;  %v9994_v26 = vld [vmem:[%s12462_s12 + $0x80] ss:$16 sps:$4 sm:$0xff]  }
 0x665   :  { %v2885_v30 = vpop.f32.mrb[42].mxu0  ;;  %v10005_v29 = vld [vmem:[%s12462_s12 + $0xac] ss:$16 sps:$4 sm:$0xff]  }
 0x666   :  { %v9444_v31 = vpop.f32.mrb[43].mxu0  ;;  %9471 = vmatmul.mubr.msk.bf16.vlgmr.msra.gmra.mrb[52].mxu1 %vm1672_vm1, %v2964_v28  ;;  %v10002_v28 = vld [vmem:[%s12462_s12 + $0xa4] ss:$16 sps:$4 sm:$0xff]  }
 0x667   :  { %v2958_v32 = vpop.f32.mrb[42].mxu1  ;;  %9475 = vmatpush3.bf16.msra.mxu1 %v9968_v27  ;;  %9478 = vmatprep.mubr.msk.bf16.mxu1 %vm10389_vm0, %v10388_v1  ;;  %v9997_v27 = vld [vmem:[%s12462_s12 + $0x88] ss:$16 sps:$4 sm:$0xff]  }
 0x668   :  { %v2965_v34 = vpack.c.bf16 %v2958_v32, %v2885_v30  ;;  %v9449_v35 = vpop.f32.mrb[43].mxu1  ;;  %9476 = vmatprep.subr.bf16.mxu1 %v10388_v1  ;;  %v10000_v30 = vld [vmem:[%s12462_s12 + $0xa0] ss:$16 sps:$4 sm:$0xff]   ;;  %v10003_v31 = vld [vmem:[%s12462_s12 + $0xa8] ss:$16 sps:$4 sm:$0xff]  }
 0x669   :  { %v10008_v32 = vld [vmem:[%s12462_s12 + $0xc4] ss:$16 sps:$4 sm:$0xff]   ;;  %v10009_v35 = vld [vmem:[%s12462_s12 + $0xc8] ss:$16 sps:$4 sm:$0xff]  }
 0x66b   :  { %9477 = vmatpush3.bf16.msra.mxu1 %v9969_v33  ;;  %v10011_v33 = vld [vmem:[%s12462_s12 + $0xcc] ss:$16 sps:$4 sm:$0xff]  }
 0x66c   :  { %3521 = vmatprep.subr.bf16.mxu1 %v9975_v24  ;;  %v10024_v24 = vld [vmem:[%s12464_s14 + $0x8] sm:$0xff]  }
 0x66e   :  { %9479 = vmatmul.mubr.msk.bf16.vlgmr.msra.gmra.mrb[56].mxu1 %vm1672_vm1, %v2965_v34  ;;  %v10006_v34 = vld [vmem:[%s12462_s12 + $0xc0] ss:$16 sps:$4 sm:$0xff]  }
 0x719   :  { %v3031_v36 = vpop.f32.mrb[44].mxu1 }
 0x71a   :  { %v9456_v37 = vpop.f32.mrb[45].mxu1 }
 0x71b   :  { %v3034_v38 = vpop.f32.mrb[46].mxu1  ;;  %v10017_v37 = vld [vmem:[%s12462_s12 + $0xec] ss:$16 sps:$4 sm:$0xff]  }
 0x71c   :  { %v9457_v39 = vpop.f32.mrb[47].mxu1 }
 0x71d   :  { %v10015_v39 = vld [vmem:[%s12462_s12 + $0xe8] ss:$16 sps:$4 sm:$0xff]  }
 0x721   :  { %v3087_v40 = vpop.f32.mrb[48].mxu1 }
 0x722   :  { %v3206_v43 = vadd.f32 %v3087_v40, %v3031_v36  ;;  %v9464_v44 = vpop.f32.mrb[49].mxu1  ;;  %v10014_v36 = vld [vmem:[%s12462_s12 + $0xe4] ss:$16 sps:$4 sm:$0xff]   ;;  %v10390_v40 = vmov 0  }
 0x723   :  { %v3090_v45 = vpop.f32.mrb[50].mxu1  ;;  %3510 = vmatprep.mubr.bf16.mxu0 %v10390_v40  ;;  %3553 = vmatprep.mubr.bf16.mxu1 %v10390_v40 }
 0x724   :  { %v3209_v46 = vadd.f32 %v3090_v45, %v3034_v38  ;;  %v9465_v47 = vpop.f32.mrb[51].mxu1  ;;  %v10012_v38 = vld [vmem:[%s12462_s12 + $0xe0] ss:$16 sps:$4 sm:$0xff]  }
 0x739   :  { %v3143_v48 = vpop.f32.mrb[52].mxu1 }
 0x73a   :  { %v3207_v49 = vadd.f32 %v3206_v43, %v3143_v48  ;;  %v9472_v50 = vpop.f32.mrb[53].mxu1 }
 0x73b   :  { %v3146_v51 = vpop.f32.mrb[54].mxu1  ;;  %v8064_v50 = vld [vmem:[%s12460_s10] ss:$0 sm:$0xff] }
 0x73c   :  { %v3210_v52 = vadd.f32 %v3209_v46, %v3146_v51  ;;  %v9473_v53 = vpop.f32.mrb[55].mxu1 }
 0x741   :  { %v3199_v54 = vpop.f32.mrb[56].mxu1 }
 0x742   :  { %v3208_v22 = vadd.f32 %v3207_v49, %v3199_v54  ;;  %v9480_v56 = vpop.f32.mrb[57].mxu1 }
 0x743   :  { %v3202_v57 = vpop.f32.mrb[58].mxu1 }
 0x744   :  { %v3219_v12 = vadd.f32 %v8063_v55, %v3208_v22  ;;  %v3211_v16 = vadd.f32 %v3210_v52, %v3202_v57  ;;  %v9481_v58 = vpop.f32.mrb[59].mxu1 }
 0x745   :  { %v10019_v58 = vld [vmem:[%s12464_s14 + $0xc0] sm:$0xff]  }
 0x746   :  { %v3220_v19 = vadd.f32 %v8063_v55, %v3211_v16  ;;  %v11191_v59 = vadd.f32 %v3219_v12, %v10607_v41  ;;  %v9973_v41 = vld [vmem:[%s12462_s12 + $0x8] ss:$16 sps:$4 sm:$0xff]   ;;  %v8065_v55 = vld [vmem:[%s12461_s11] ss:$0 sm:$0xff] }
 0x747   :  { %3522 = vmatpush1.bf16.msra.mxu1 %v9973_v41  ;;  %v10018_v16 = vld [vmem:[%s12464_s14 + $0x40] sm:$0xff]   ;;  %v10023_v41 = vld [vmem:[%s12464_s14 + $0xc8] sm:$0xff]  }
 0x748   :  { %3225 = vadd.xlane.f32.xlu0 %v11191_v59  ;;  %v11195_v60 = vadd.f32 %v3220_v19, %v10610_v42  ;;  %v9978_v42 = vld [vmem:[%s12462_s12 + $0x24] ss:$16 sps:$4 sm:$0xff]   ;;  %3523 = vmatprep.subr.bf16.mxu1 %v9981_v63 }
 0x749   :  { %3480 = vmatprep.subr.bf16.mxu0 %v9978_v42  ;;  %v10020_v19 = vld [vmem:[%s12464_s14] sm:$0xff]   ;;  %v10025_v42 = vld [vmem:[%s12464_s14 + $0x88] sm:$0xff]   ;;  %v10026_v63 = vld [vmem:[%s12464_s14 + $0x50] sm:$0xff]  }
 0x74a   :  { %3227 = vadd.xlane.f32.xlu1 %v11195_v60  ;;  %3481 = vmatpush1.bf16.msra.mxu0 %v9976_v0  ;;  %v10027_v0 = vld [vmem:[%s12464_s14 + $0xd0] sm:$0xff]  }
 0x74b   :  { %3524 = vmatpush1.bf16.msra.mxu1 %v9979_v2  ;;  %3482 = vmatprep.subr.bf16.mxu0 %v9984_v9  ;;  %v10028_v2 = vld [vmem:[%s12464_s14 + $0x10] sm:$0xff]   ;;  %v10037_v9 = vld [vmem:[%s12464_s14 + $0xa0] sm:$0xff]  }
 0x74c   :  { %3525 = vmatprep.subr.bf16.mxu1 %v9987_v10  ;;  %v10038_v10 = vld [vmem:[%s12464_s14 + $0x68] sm:$0xff]  }
 0x74e   :  { %3483 = vmatpush1.bf16.msra.mxu0 %v9982_v11  ;;  %v10039_v11 = vld [vmem:[%s12464_s14 + $0xe8] sm:$0xff]  }
 0x74f   :  { %3526 = vmatpush1.bf16.msra.mxu1 %v9985_v13  ;;  %3484 = vmatprep.subr.bf16.mxu0 %v9990_v14  ;;  %v10040_v13 = vld [vmem:[%s12464_s14 + $0x28] sm:$0xff]  }
 0x750   :  { %3527 = vmatprep.subr.bf16.mxu1 %v9993_v15  ;;  %v10041_v14 = vld [vmem:[%s12464_s14 + $0xa8] sm:$0xff]   ;;  %v10042_v15 = vld [vmem:[%s12464_s14 + $0x70] sm:$0xff]  }
 0x752   :  { %3485 = vmatpush1.bf16.msra.mxu0 %v9988_v17  ;;  %v10043_v17 = vld [vmem:[%s12464_s14 + $0xf0] sm:$0xff]  }
 0x753   :  { %3528 = vmatpush1.bf16.msra.mxu1 %v9991_v18  ;;  %3486 = vmatprep.subr.bf16.mxu0 %v9996_v21  ;;  %v10044_v18 = vld [vmem:[%s12464_s14 + $0x30] sm:$0xff]  }
 0x754   :  { %3529 = vmatprep.subr.bf16.mxu1 %v9999_v23  ;;  %v10045_v21 = vld [vmem:[%s12464_s14 + $0xb0] sm:$0xff]   ;;  %v10046_v23 = vld [vmem:[%s12464_s14 + $0x78] sm:$0xff]  }
 0x756   :  { %3487 = vmatpush1.bf16.msra.mxu0 %v9994_v26  ;;  %v10047_v26 = vld [vmem:[%s12464_s14 + $0xf8] sm:$0xff]  }
 0x757   :  { %3530 = vmatpush1.bf16.msra.mxu1 %v9997_v27  ;;  %3488 = vmatprep.subr.bf16.mxu0 %v10002_v28  ;;  %v10048_v27 = vld [vmem:[%s12464_s14 + $0x38] sm:$0xff]  }
 0x758   :  { %3531 = vmatprep.subr.bf16.mxu1 %v10005_v29  ;;  %v10049_v28 = vld [vmem:[%s12464_s14 + $0xb8] sm:$0xff]   ;;  %v3298_v29 = vlaneseq }
 0x75a   :  { %3489 = vmatpush1.bf16.msra.mxu0 %v10000_v30  ;;  %v11412_v30 = vshrl.u32 %v3298_v29, 7 }
 0x75b   :  { %3532 = vmatpush1.bf16.msra.mxu1 %v10003_v31  ;;  %3490 = vmatprep.subr.bf16.mxu0 %v10008_v32 }
 0x75c   :  { %3533 = vmatprep.subr.bf16.mxu1 %v10011_v33  ;;  %v3300_v31 = vsub.s32 0, %v11412_v30  ;;  %v3308_v32 = vsub.s32 2, %v11412_v30  ;;  %v3296_v33 = vld [vmem:[%s12463_s13] sm:$0xf] }
 0x75e   :  { %3491 = vmatpush1.bf16.msra.mxu0 %v10006_v34  ;;  %v3304_v34 = vsub.s32 1, %v11412_v30 }
 0x75f   :  { %3534 = vmatpush1.bf16.msra.mxu1 %v10009_v35  ;;  %3492 = vmatprep.subr.bf16.mxu0 %v10014_v36  ;;  %v3312_v35 = vsub.s32 3, %v11412_v30  ;;  %v3301_v36 = vrot.slane %v3296_v33, %v3300_v31 }
 0x760   :  { %3535 = vmatprep.subr.bf16.mxu1 %v10017_v37  ;;  %v3309_v37 = vrot.slane %v3296_v33, %v3308_v32 }
 0x762   :  { %3493 = vmatpush1.bf16.msra.mxu0 %v10012_v38  ;;  %v3305_v38 = vrot.slane %v3296_v33, %v3304_v34 }
 0x763   :  { %3536 = vmatpush1.bf16.msra.mxu1 %v10015_v39  ;;  %8848 = vmatprep.subr.bf16.mxu0 %v10018_v16  ;;  %v3313_v39 = vrot.slane %v3296_v33, %v3312_v35 }
 0x764   :  { %8870 = vmatprep.subr.bf16.mxu1 %v10019_v58 }
 0x7d5   :  { %v3226_v3 = vpop.xlane.xlu0 %3225 }
 0x7d6   :  { %v3229_v20 = vmul.f32 0.0078125, %v3226_v3  ;;  %v10029_v3 = vld [vmem:[%s12464_s14 + $0x90] sm:$0xff]  }
 0x7d7   :  { %v3228_v25 = vpop.xlane.xlu1 %3227 }
 0x7d8   :  { %v11223_v4 = vsub.f32 %v11191_v59, %v3229_v20  ;;  %v3230_v5 = vmul.f32 0.0078125, %v3228_v25  ;;  %v10030_v20 = vld [vmem:[%s12464_s14 + $0x58] sm:$0xff]  }
 0x7d9   :  { %v10031_v25 = vld [vmem:[%s12464_s14 + $0xd8] sm:$0xff]  }
 0x7da   :  { %v11226_v6 = vsub.f32 %v11195_v60, %v3230_v5  ;;  %v3233_v7 = vmul.f32 %v11223_v4, %v11223_v4  ;;  %v10033_v5 = vld [vmem:[%s12464_s14 + $0x98] sm:$0xff]  }
 0x7dc   :  { %3235 = vadd.xlane.f32.xlu0 %v3233_v7  ;;  %v3234_v8 = vmul.f32 %v11226_v6, %v11226_v6  ;;  %v10035_v7 = vld [vmem:[%s12464_s14 + $0xe0] sm:$0xff]  }
 0x7de   :  { %3237 = vadd.xlane.f32.xlu1 %v3234_v8  ;;  %v10036_v8 = vld [vmem:[%s12464_s14 + $0x20] sm:$0xff]  }
 0x869   :  { %v3236_v43 = vpop.xlane.xlu0 %3235 }
 0x86a   :  { %v3239_v44 = vmul.f32 0.0078125, %v3236_v43 }
 0x86b   :  { %v3238_v45 = vpop.xlane.xlu1 %3237 }
 0x86c   :  { %v3241_v46 = vadd.f32 1e-05, %v3239_v44  ;;  %v3240_v47 = vmul.f32 0.0078125, %v3238_v45 }
 0x86e   :  { %10286 = vrsqrt.f32 %v3241_v46  ;;  %v3242_v48 = vadd.f32 1e-05, %v3240_v47 }
 0x870   :  { %10288 = vrsqrt.f32 %v3242_v48 }
 0x878   :  { %v10287_v49 = vpop.eup %10286 }
 0x879   :  { %v3245_v51 = vmul.f32 %v10287_v49, %v11223_v4  ;;  %v10032_v4 = vld [vmem:[%s12464_s14 + $0x18] sm:$0xff]  }
 0x87a   :  { %v10289_v52 = vpop.eup %10288 }
 0x87b   :  { %v3246_v53 = vmul.f32 %v10289_v52, %v11226_v6  ;;  %v3253_v54 = vmul.f32 %v8064_v50, %v3245_v51  ;;  %v10034_v6 = vld [vmem:[%s12464_s14 + $0x60] sm:$0xff]  }
 0x87d   :  { %v3254_v22 = vmul.f32 %v8064_v50, %v3246_v53  ;;  %v3261_v56 = vadd.f32 %v8065_v55, %v3253_v54 }
 0x87f   :  { %v3262_v57 = vadd.f32 %v8065_v55, %v3254_v22 }
 0x881   :  { %v3263_v12 = vpack.c.bf16 %v3262_v57, %v3261_v56 }
 0x883   :  { %3511 = vmatmul.mubr.bf16.vlgmr.msra.gmra.mrb[44].mxu0 %v3263_v12  ;;  %3554 = vmatmul.mubr.bf16.vlgmr.msra.gmra.mrb[60].mxu1 %v3263_v12 }
 0x884   :  { %8849 = vmatpush3.bf16.msra.mxu0 %v10020_v19  ;;  %8871 = vmatpush3.bf16.msra.mxu1 %v10021_v61 }
 0x885   :  { %8850 = vmatprep.subr.bf16.mxu0 %v10022_v62  ;;  %8872 = vmatprep.subr.bf16.mxu1 %v10023_v41 }
 0x888   :  { %8851 = vmatpush3.bf16.msra.mxu0 %v10024_v24  ;;  %8873 = vmatpush3.bf16.msra.mxu1 %v10025_v42 }
 0x889   :  { %8852 = vmatprep.subr.bf16.mxu0 %v10026_v63  ;;  %8874 = vmatprep.subr.bf16.mxu1 %v10027_v0 }
 0x88c   :  { %8853 = vmatpush3.bf16.msra.mxu0 %v10028_v2  ;;  %8875 = vmatpush3.bf16.msra.mxu1 %v10029_v3 }
 0x88d   :  { %8854 = vmatprep.subr.bf16.mxu0 %v10030_v20  ;;  %8876 = vmatprep.subr.bf16.mxu1 %v10031_v25 }
 0x890   :  { %8855 = vmatpush3.bf16.msra.mxu0 %v10032_v4  ;;  %8877 = vmatpush3.bf16.msra.mxu1 %v10033_v5 }
 0x891   :  { %8856 = vmatprep.subr.bf16.mxu0 %v10034_v6  ;;  %8878 = vmatprep.subr.bf16.mxu1 %v10035_v7 }
 0x894   :  { %8857 = vmatpush3.bf16.msra.mxu0 %v10036_v8  ;;  %8879 = vmatpush3.bf16.msra.mxu1 %v10037_v9 }
 0x895   :  { %8858 = vmatprep.subr.bf16.mxu0 %v10038_v10  ;;  %8880 = vmatprep.subr.bf16.mxu1 %v10039_v11 }
 0x898   :  { %8859 = vmatpush3.bf16.msra.mxu0 %v10040_v13  ;;  %8881 = vmatpush3.bf16.msra.mxu1 %v10041_v14 }
 0x899   :  { %8860 = vmatprep.subr.bf16.mxu0 %v10042_v15  ;;  %8882 = vmatprep.subr.bf16.mxu1 %v10043_v17 }
 0x89c   :  { %8861 = vmatpush3.bf16.msra.mxu0 %v10044_v18  ;;  %8883 = vmatpush3.bf16.msra.mxu1 %v10045_v21 }
 0x89d   :  { %8862 = vmatprep.subr.bf16.mxu0 %v10046_v23  ;;  %8884 = vmatprep.subr.bf16.mxu1 %v10047_v26 }
 0x8a0   :  { %8863 = vmatpush3.bf16.msra.mxu0 %v10048_v27  ;;  %8885 = vmatpush3.bf16.msra.mxu1 %v10049_v28 }
 0x8a1   :  { %9482 = vmatprep.subr.bf16.mxu0 %v10388_v1  ;;  %9502 = vmatprep.subr.bf16.mxu1 %v10388_v1 }
 0x956   :  { %v3512_v43 = vpop.f32.mrb[44].mxu0  ;;  %v3555_v44 = vpop.f32.mrb[60].mxu1 }
 0x957   :  { %v11429_v45 = vadd.f32 %v3512_v43, %v3301_v36  ;;  %v11431_v46 = vadd.f32 %v3555_v44, %v3309_v37  ;;  %v3514_v47 = vpop.f32.mrb[45].mxu0  ;;  %v3557_v48 = vpop.f32.mrb[61].mxu1 }
 0x958   :  { %v11433_v49 = vadd.f32 %v3514_v47, %v3305_v38  ;;  %v11435_v50 = vadd.f32 %v3557_v48, %v3313_v39  ;;  %v3516_v51 = vpop.f32.mrb[46].mxu0  ;;  %v3559_v52 = vpop.f32.mrb[62].mxu1 }
 0x959   :  { %v3564_v53 = vmul.f32 %v11429_v45, %v11429_v45  ;;  %v3566_v54 = vmul.f32 %v11431_v46, %v11431_v46  ;;  %v11441_v55 = vadd.f32 %v3516_v51, %v3301_v36  ;;  %v11443_v22 = vadd.f32 %v3559_v52, %v3309_v37  ;;  %v3518_v56 = vpop.f32.mrb[47].mxu0  ;;  %v3561_v57 = vpop.f32.mrb[63].mxu1 }
 0x95a   :  { %v3565_v12 = vmul.f32 %v11433_v49, %v11433_v49  ;;  %v3567_v16 = vmul.f32 %v11435_v50, %v11435_v50  ;;  %v11449_v58 = vadd.f32 %v3518_v56, %v3305_v38  ;;  %v11451_v19 = vadd.f32 %v3561_v57, %v3313_v39 }
 0x95b   :  { %v3572_v61 = vmul.f32 %v3564_v53, %v11429_v45  ;;  %v3574_v62 = vmul.f32 %v3566_v54, %v11431_v46  ;;  %v3568_v41 = vmul.f32 %v11441_v55, %v11441_v55  ;;  %v3570_v24 = vmul.f32 %v11443_v22, %v11443_v22 }
 0x95c   :  { %v3573_v42 = vmul.f32 %v3565_v12, %v11433_v49  ;;  %v3575_v63 = vmul.f32 %v3567_v16, %v11435_v50  ;;  %v3569_v0 = vmul.f32 %v11449_v58, %v11449_v58  ;;  %v3571_v2 = vmul.f32 %v11451_v19, %v11451_v19 }
 0x95d   :  { %v3580_v3 = vmul.f32 0.044715, %v3572_v61  ;;  %v3582_v20 = vmul.f32 0.044715, %v3574_v62  ;;  %v3576_v25 = vmul.f32 %v3568_v41, %v11441_v55  ;;  %v3578_v4 = vmul.f32 %v3570_v24, %v11443_v22 }
 0x95e   :  { %v3581_v5 = vmul.f32 0.044715, %v3573_v42  ;;  %v3583_v6 = vmul.f32 0.044715, %v3575_v63  ;;  %v3577_v7 = vmul.f32 %v3569_v0, %v11449_v58  ;;  %v3579_v8 = vmul.f32 %v3571_v2, %v11451_v19 }
 0x95f   :  { %v3588_v9 = vadd.f32 %v3580_v3, %v11429_v45  ;;  %v3590_v10 = vadd.f32 %v3582_v20, %v11431_v46  ;;  %v3584_v11 = vmul.f32 0.044715, %v3576_v25  ;;  %v3586_v13 = vmul.f32 0.044715, %v3578_v4 }
 0x960   :  { %v3589_v14 = vadd.f32 %v3581_v5, %v11433_v49  ;;  %v3591_v15 = vadd.f32 %v3583_v6, %v11435_v50  ;;  %v3585_v17 = vmul.f32 0.044715, %v3577_v7  ;;  %v3587_v18 = vmul.f32 0.044715, %v3579_v8 }
 0x961   :  { %v3596_v21 = vmul.f32 0.7978846, %v3588_v9  ;;  %v3598_v23 = vmul.f32 0.7978846, %v3590_v10  ;;  %v3592_v26 = vadd.f32 %v3584_v11, %v11441_v55  ;;  %v3594_v27 = vadd.f32 %v3586_v13, %v11443_v22 }
 0x962   :  { %v3597_v28 = vmul.f32 0.7978846, %v3589_v14  ;;  %v3599_v29 = vmul.f32 0.7978846, %v3591_v15  ;;  %v3593_v33 = vadd.f32 %v3585_v17, %v11449_v58  ;;  %v3595_v36 = vadd.f32 %v3587_v18, %v11451_v19 }
 0x963   :  { %10290 = vtanh.f32 %v3596_v21  ;;  %v3600_v37 = vmul.f32 0.7978846, %v3592_v26  ;;  %v3602_v38 = vmul.f32 0.7978846, %v3594_v27 }
 0x964   :  { %10292 = vtanh.f32 %v3598_v23  ;;  %v3601_v39 = vmul.f32 0.7978846, %v3593_v33  ;;  %v3603_v43 = vmul.f32 0.7978846, %v3595_v36 }
 0x965   :  { %10294 = vtanh.f32 %v3597_v28 }
 0x966   :  { %10296 = vtanh.f32 %v3599_v29 }
 0x967   :  { %10298 = vtanh.f32 %v3600_v37 }
 0x968   :  { %10300 = vtanh.f32 %v3602_v38 }
 0x969   :  { %10302 = vtanh.f32 %v3601_v39 }
 0x96a   :  { %10304 = vtanh.f32 %v3603_v43 }
 0x96d   :  { %v10291_v44 = vpop.eup %10290 }
 0x96e   :  { %v10293_v47 = vpop.eup %10292  ;;  %v3612_v48 = vadd.f32 1.0, %v10291_v44  ;;  %v10050_v44 = vld [vmem:[%s12489_s4 + $0x100] sm:$0xff]  }
 0x96f   :  { %v10295_v51 = vpop.eup %10294  ;;  %v3614_v52 = vadd.f32 1.0, %v10293_v47  ;;  %v10051_v47 = vld [vmem:[%s12489_s4 + $0x140] sm:$0xff]  }
 0x970   :  { %v10297_v53 = vpop.eup %10296  ;;  %v3613_v54 = vadd.f32 1.0, %v10295_v51  ;;  %v3620_v16 = vmul.f32 0.5, %v3612_v48 }
 0x971   :  { %v10299_v56 = vpop.eup %10298  ;;  %v3615_v57 = vadd.f32 1.0, %v10297_v53  ;;  %v3622_v41 = vmul.f32 0.5, %v3614_v52 }
 0x972   :  { %v10301_v12 = vpop.eup %10300  ;;  %v3616_v61 = vadd.f32 1.0, %v10299_v56  ;;  %v3621_v2 = vmul.f32 0.5, %v3613_v54  ;;  %v3628_v4 = vmul.f32 %v3620_v16, %v11429_v45  ;;  %v10054_v16 = vld [vmem:[%s12489_s4 + $0x110] sm:$0xff]  }
 0x973   :  { %v10303_v62 = vpop.eup %10302  ;;  %v3618_v24 = vadd.f32 1.0, %v10301_v12  ;;  %v3623_v25 = vmul.f32 0.5, %v3615_v57  ;;  %v3630_v7 = vmul.f32 %v3622_v41, %v11431_v46  ;;  %v10057_v41 = vld [vmem:[%s12489_s4 + $0x158] sm:$0xff]  }
 0x974   :  { %v10305_v42 = vpop.eup %10304  ;;  %v3624_v63 = vmul.f32 0.5, %v3616_v61  ;;  %v3617_v0 = vadd.f32 1.0, %v10303_v62  ;;  %v3629_v10 = vmul.f32 %v3621_v2, %v11433_v49  ;;  %v10055_v61 = vld [vmem:[%s12489_s4 + $0x150] sm:$0xff]   ;;  %v10056_v62 = vld [vmem:[%s12489_s4 + $0x118] sm:$0xff]  }
 0x975   :  { %v3626_v3 = vmul.f32 0.5, %v3618_v24  ;;  %v3619_v20 = vadd.f32 1.0, %v10305_v42  ;;  %v3631_v14 = vmul.f32 %v3623_v25, %v11435_v50  ;;  %v8098_v50 = vld [vmem:[%s12465_s15] ss:$0 sm:$0xff]  ;;  %v10062_v2 = vld [vmem:[%s12489_s4 + $0x130] sm:$0xff]   ;;  %v10065_v25 = vld [vmem:[%s12489_s4 + $0x178] sm:$0xff]  }
 0x976   :  { %v3632_v5 = vmul.f32 %v3624_v63, %v11441_v55  ;;  %v3625_v6 = vmul.f32 0.5, %v3617_v0  ;;  %v10058_v24 = vld [vmem:[%s12489_s4 + $0x120] sm:$0xff]   ;;  %v10060_v63 = vld [vmem:[%s12489_s4 + $0x128] sm:$0xff]  }
 0x977   :  { %v3634_v8 = vmul.f32 %v3626_v3, %v11443_v22  ;;  %v3627_v9 = vmul.f32 0.5, %v3619_v20  ;;  %v10059_v42 = vld [vmem:[%s12489_s4 + $0x160] sm:$0xff]   ;;  %v10061_v0 = vld [vmem:[%s12489_s4 + $0x168] sm:$0xff]   ;;  %v10063_v3 = vld [vmem:[%s12489_s4 + $0x170] sm:$0xff]  }
 0x978   :  { %v3633_v11 = vmul.f32 %v3625_v6, %v11449_v58  ;;  %v3636_v13 = vpack.c.bf16 %v3632_v5, %v3628_v4  ;;  %v10064_v20 = vld [vmem:[%s12489_s4 + $0x138] sm:$0xff]  }
 0x979   :  { %v3635_v15 = vmul.f32 %v3627_v9, %v11451_v19  ;;  %v3638_v17 = vpack.c.bf16 %v3634_v8, %v3630_v7 }
 0x97a   :  { %v3637_v18 = vpack.c.bf16 %v3633_v11, %v3629_v10  ;;  %v8133_v11 = vld [vmem:[%s12490_s24 + $0x1] ss:$0 sm:$0xff] }
 0x97b   :  { %v3639_v45 = vpack.c.bf16 %v3635_v15, %v3631_v14 }
 0x97c   :  { %3935 = vmatprep.mubr.bf16.mxu0 %v3637_v18  ;;  %v8134_v18 = vld [vmem:[%s12491_s26 + $0x1] ss:$0 sm:$0xff] }
 0x97d   :  { %3976 = vmatprep.mubr.bf16.mxu1 %v3639_v45  ;;  %3936 = vmatmul.mubr.bf16.vlgmr.msra.gmra.mrb[48].mxu0 %v3636_v13 }
 0x97e   :  { %3977 = vmatmul.mubr.bf16.vlgmr.msra.gmra.mrb[64].mxu1 %v3638_v17  ;;  %9498 = vmatprep.mubr.msk.bf16.mxu0 %vm10389_vm0, %v10388_v1 }
 0x97f   :  { %9518 = vmatprep.mubr.msk.bf16.mxu1 %vm10389_vm0, %v10388_v1  ;;  %9483 = vmatpush3.bf16.msra.mxu0 %v10050_v44  ;;  %v10080_v44 = vld [vmem:[%s12489_s4 + $0x1b8] sm:$0xff]  }
 0x980   :  { %9503 = vmatpush3.bf16.msra.mxu1 %v10051_v47  ;;  %9484 = vmatprep.subr.bf16.mxu0 %v10388_v1  ;;  %v10081_v47 = vld [vmem:[%s12489_s4 + $0x1f8] sm:$0xff]  }
 0x981   :  { %9504 = vmatprep.subr.bf16.mxu1 %v10388_v1 }
 0xa50   :  { %v8864_v46 = vpop.f32.mrb[48].mxu0 }
 0xa51   :  { %v8886_v49 = vpop.f32.mrb[64].mxu1  ;;  %v8865_v55 = vpop.f32.mrb[49].mxu0 }
 0xa52   :  { %v8866_v22 = vadd.f32 %v8865_v55, %v8864_v46  ;;  %v8887_v58 = vpop.f32.mrb[65].mxu1  ;;  %v8867_v19 = vpop.f32.mrb[50].mxu0  ;;  %v10067_v55 = vld [vmem:[%s12489_s4 + $0x1c0] sm:$0xff]  }
 0xa53   :  { %v8888_v21 = vadd.f32 %v8887_v58, %v8886_v49  ;;  %v8889_v23 = vpop.f32.mrb[66].mxu1  ;;  %v8868_v26 = vpop.f32.mrb[51].mxu0  ;;  %v10068_v58 = vld [vmem:[%s12489_s4 + $0x188] sm:$0xff]  }
 0xa54   :  { %v3938_v27 = vadd.f32 %v8866_v22, %v8098_v50  ;;  %v8869_v28 = vadd.f32 %v8868_v26, %v8867_v19  ;;  %v8890_v29 = vpop.f32.mrb[67].mxu1  ;;  %v10069_v19 = vld [vmem:[%s12489_s4 + $0x1c8] sm:$0xff]   ;;  %v10072_v26 = vld [vmem:[%s12489_s4 + $0x198] sm:$0xff]  }
 0xa55   :  { %v8891_v33 = vadd.f32 %v8890_v29, %v8889_v23  ;;  %v10071_v23 = vld [vmem:[%s12489_s4 + $0x1d0] sm:$0xff]   ;;  %v10075_v29 = vld [vmem:[%s12489_s4 + $0x1e0] sm:$0xff]  }
 0xa56   :  { %v3979_v36 = vadd.f32 %v8888_v21, %v3938_v27  ;;  %v3941_v37 = vadd.f32 %v8869_v28, %v8098_v50  ;;  %v10066_v50 = vld [vmem:[%s12489_s4 + $0x180] sm:$0xff]   ;;  %v10070_v21 = vld [vmem:[%s12489_s4 + $0x190] sm:$0xff]   ;;  %v10073_v27 = vld [vmem:[%s12489_s4 + $0x1d8] sm:$0xff]  }
 0xa57   :  { %v10074_v28 = vld [vmem:[%s12489_s4 + $0x1a0] sm:$0xff]  }
 0xa58   :  { %v3982_v38 = vadd.f32 %v8891_v33, %v3941_v37  ;;  %v11493_v39 = vadd.f32 %v3979_v36, %v11191_v59  ;;  %v10052_v59 = vld [vmem:[%s12489_s4 + $0x108] sm:$0xff]   ;;  %v10078_v37 = vld [vmem:[%s12489_s4 + $0x1b0] sm:$0xff]  }
 0xa59   :  { %9485 = vmatpush3.bf16.msra.mxu0 %v10052_v59  ;;  %v10076_v33 = vld [vmem:[%s12489_s4 + $0x1a8] sm:$0xff]   ;;  %v10082_v59 = vld [vmem:[%s12492_s6 + $0x100] sm:$0xff]  }
 0xa5a   :  { %3991 = vadd.xlane.f32.xlu0 %v11493_v39  ;;  %v11497_v43 = vadd.f32 %v3982_v38, %v11195_v60  ;;  %v10053_v60 = vld [vmem:[%s12489_s4 + $0x148] sm:$0xff]   ;;  %9486 = vmatprep.subr.bf16.mxu0 %v10388_v1  ;;  %v10079_v38 = vld [vmem:[%s12489_s4 + $0x1f0] sm:$0xff]  }
 0xa5b   :  { %9505 = vmatpush3.bf16.msra.mxu1 %v10053_v60  ;;  %v10077_v36 = vld [vmem:[%s12489_s4 + $0x1e8] sm:$0xff]   ;;  %v10083_v60 = vld [vmem:[%s12492_s6 + $0x140] sm:$0xff]  }
 0xa5c   :  { %3993 = vadd.xlane.f32.xlu1 %v11497_v43  ;;  %9506 = vmatprep.subr.bf16.mxu1 %v10388_v1 }
 0xa5d   :  { %9487 = vmatpush3.bf16.msra.mxu0 %v10054_v16  ;;  %v10092_v16 = vld [vmem:[%s12492_s6 + $0x128] sm:$0xff]  }
 0xa5e   :  { %9488 = vmatprep.subr.bf16.mxu0 %v10388_v1 }
 0xa5f   :  { %9507 = vmatpush3.bf16.msra.mxu1 %v10055_v61  ;;  %v10093_v61 = vld [vmem:[%s12492_s6 + $0x168] sm:$0xff]  }
 0xa60   :  { %9508 = vmatprep.subr.bf16.mxu1 %v10388_v1 }
 0xa61   :  { %9489 = vmatpush3.bf16.msra.mxu0 %v10056_v62  ;;  %v10094_v62 = vld [vmem:[%s12492_s6 + $0x130] sm:$0xff]  }
 0xa62   :  { %9490 = vmatprep.subr.bf16.mxu0 %v10388_v1 }
 0xa63   :  { %9509 = vmatpush3.bf16.msra.mxu1 %v10057_v41  ;;  %v10095_v41 = vld [vmem:[%s12492_s6 + $0x170] sm:$0xff]  }
 0xa64   :  { %9510 = vmatprep.subr.bf16.mxu1 %v10388_v1 }
 0xa65   :  { %9491 = vmatpush3.bf16.msra.mxu0 %v10058_v24  ;;  %v10096_v24 = vld [vmem:[%s12492_s6 + $0x138] sm:$0xff]  }
 0xa66   :  { %9492 = vmatprep.subr.bf16.mxu0 %v10388_v1 }
 0xa67   :  { %9511 = vmatpush3.bf16.msra.mxu1 %v10059_v42  ;;  %v10097_v42 = vld [vmem:[%s12492_s6 + $0x178] sm:$0xff]  }
 0xa68   :  { %9512 = vmatprep.subr.bf16.mxu1 %v10388_v1 }
 0xa69   :  { %9493 = vmatpush3.bf16.msra.mxu0 %v10060_v63  ;;  %v10098_v63 = vld [vmem:[%s12492_s6 + $0x180] sm:$0xff]  }
 0xa6a   :  { %9494 = vmatprep.subr.bf16.mxu0 %v10388_v1 }
 0xa6b   :  { %9513 = vmatpush3.bf16.msra.mxu1 %v10061_v0  ;;  %v10099_v0 = vld [vmem:[%s12492_s6 + $0x1c0] sm:$0xff]  }
 0xa6c   :  { %9514 = vmatprep.subr.bf16.mxu1 %v10388_v1 }
 0xa6d   :  { %9495 = vmatpush3.bf16.msra.mxu0 %v10062_v2  ;;  %v10100_v2 = vld [vmem:[%s12492_s6 + $0x188] sm:$0xff]  }
 0xa6e   :  { %9496 = vmatprep.subr.bf16.mxu0 %v10388_v1 }
 0xa6f   :  { %9515 = vmatpush3.bf16.msra.mxu1 %v10063_v3  ;;  %v10101_v3 = vld [vmem:[%s12492_s6 + $0x1c8] sm:$0xff]  }
 0xa70   :  { %9516 = vmatprep.subr.bf16.mxu1 %v10388_v1 }
 0xa71   :  { %9497 = vmatpush3.bf16.msra.mxu0 %v10064_v20  ;;  %v10102_v20 = vld [vmem:[%s12492_s6 + $0x190] sm:$0xff]  }
 0xa72   :  { %9522 = vmatprep.subr.bf16.mxu0 %v10388_v1 }
 0xa73   :  { %9517 = vmatpush3.bf16.msra.mxu1 %v10065_v25  ;;  %v10103_v25 = vld [vmem:[%s12492_s6 + $0x1d0] sm:$0xff]  }
 0xa74   :  { %9542 = vmatprep.subr.bf16.mxu1 %v10388_v1 }
 0xae7   :  { %v3992_v48 = vpop.xlane.xlu0 %3991 }
 0xae8   :  { %v3995_v51 = vmul.f32 0.0078125, %v3992_v48  ;;  %v10084_v48 = vld [vmem:[%s12492_s6 + $0x108] sm:$0xff]  }
 0xae9   :  { %v3994_v52 = vpop.xlane.xlu1 %3993 }
 0xaea   :  { %v3997_v53 = vsub.f32 %v11493_v39, %v3995_v51  ;;  %v3996_v54 = vmul.f32 0.0078125, %v3994_v52  ;;  %v10085_v51 = vld [vmem:[%s12492_s6 + $0x148] sm:$0xff]   ;;  %v10086_v52 = vld [vmem:[%s12492_s6 + $0x110] sm:$0xff]  }
 0xaec   :  { %v3998_v56 = vsub.f32 %v11497_v43, %v3996_v54  ;;  %v3999_v57 = vmul.f32 %v3997_v53, %v3997_v53  ;;  %v10088_v54 = vld [vmem:[%s12492_s6 + $0x118] sm:$0xff]  }
 0xaee   :  { %4001 = vadd.xlane.f32.xlu0 %v3999_v57  ;;  %v4000_v12 = vmul.f32 %v3998_v56, %v3998_v56  ;;  %v10090_v57 = vld [vmem:[%s12492_s6 + $0x120] sm:$0xff]  }
 0xaf0   :  { %4003 = vadd.xlane.f32.xlu1 %v4000_v12  ;;  %v10091_v12 = vld [vmem:[%s12492_s6 + $0x160] sm:$0xff]  }
 0xb7b   :  { %v4002_v4 = vpop.xlane.xlu0 %4001 }
 0xb7c   :  { %v4005_v5 = vmul.f32 0.0078125, %v4002_v4  ;;  %v10104_v4 = vld [vmem:[%s12492_s6 + $0x198] sm:$0xff]  }
 0xb7d   :  { %v4004_v6 = vpop.xlane.xlu1 %4003 }
 0xb7e   :  { %v4007_v7 = vadd.f32 1e-05, %v4005_v5  ;;  %v4006_v8 = vmul.f32 0.0078125, %v4004_v6  ;;  %v10105_v5 = vld [vmem:[%s12492_s6 + $0x1d8] sm:$0xff]   ;;  %v10106_v6 = vld [vmem:[%s12492_s6 + $0x1a0] sm:$0xff]  }
 0xb80   :  { %10306 = vrsqrt.f32 %v4007_v7  ;;  %v4008_v9 = vadd.f32 1e-05, %v4006_v8  ;;  %v10107_v7 = vld [vmem:[%s12492_s6 + $0x1e0] sm:$0xff]   ;;  %v10108_v8 = vld [vmem:[%s12492_s6 + $0x1a8] sm:$0xff]  }
 0xb82   :  { %10308 = vrsqrt.f32 %v4008_v9  ;;  %v10109_v9 = vld [vmem:[%s12492_s6 + $0x1e8] sm:$0xff]  }
 0xb8a   :  { %v10307_v10 = vpop.eup %10306 }
 0xb8b   :  { %v4011_v13 = vmul.f32 %v10307_v10, %v3997_v53  ;;  %v10087_v53 = vld [vmem:[%s12492_s6 + $0x150] sm:$0xff]  }
 0xb8c   :  { %v10309_v14 = vpop.eup %10308  ;;  %v10110_v10 = vld [vmem:[%s12492_s6 + $0x1b0] sm:$0xff]  }
 0xb8d   :  { %v4019_v15 = vmul.f32 %v8133_v11, %v4011_v13  ;;  %v4012_v17 = vmul.f32 %v10309_v14, %v3998_v56  ;;  %v10089_v56 = vld [vmem:[%s12492_s6 + $0x158] sm:$0xff]  }
 0xb8e   :  { %v10112_v13 = vld [vmem:[%s12492_s6 + $0x1b8] sm:$0xff]  }
 0xb8f   :  { %v4020_v45 = vmul.f32 %v8133_v11, %v4012_v17  ;;  %v4027_v46 = vadd.f32 %v8134_v18, %v4019_v15  ;;  %v10111_v11 = vld [vmem:[%s12492_s6 + $0x1f0] sm:$0xff]   ;;  %v10113_v14 = vld [vmem:[%s12492_s6 + $0x1f8] sm:$0xff]   ;;  %v10114_v15 = vld [vmem:[%s12457_s7 + $0x100] sm:$0xff]  }
 0xb90   :  { %v10115_v17 = vld [vmem:[%s12457_s7 + $0x140] sm:$0xff]  }
 0xb91   :  { %v4028_v49 = vadd.f32 %v8134_v18, %v4020_v45  ;;  %v10116_v18 = vld [vmem:[%s12457_s7 + $0x108] sm:$0xff]  }
 0xb92   :  { %v10117_v45 = vld [vmem:[%s12457_s7 + $0x148] sm:$0xff]  }
 0xb93   :  { %v11578_v22 = vpack.c.bf16 %v4028_v49, %v4027_v46  ;;  %v10118_v46 = vld [vmem:[%s12457_s7 + $0x110] sm:$0xff]  }
 0xb94   :  { %v10119_v49 = vld [vmem:[%s12457_s7 + $0x150] sm:$0xff]  }
 0xb95   :  { %9499 = vmatmul.mubr.bf16.vlgmr.msra.gmra.mrb[52].mxu0 %v11578_v22  ;;  %9519 = vmatmul.mubr.bf16.vlgmr.msra.gmra.mrb[68].mxu1 %v11578_v22 }
 0xb96   :  { %9523 = vmatpush3.bf16.msra.mxu0 %v10066_v50  ;;  %9543 = vmatpush3.bf16.msra.mxu1 %v10067_v55  ;;  %v10120_v50 = vld [vmem:[%s12457_s7 + $0x118] sm:$0xff]  }
 0xb97   :  { %9524 = vmatprep.subr.bf16.mxu0 %v10388_v1  ;;  %9544 = vmatprep.subr.bf16.mxu1 %v10388_v1  ;;  %v10121_v55 = vld [vmem:[%s12457_s7 + $0x158] sm:$0xff]  }
 0xb98   :  { %9538 = vmatprep.mubr.msk.bf16.mxu0 %vm10389_vm0, %v10388_v1  ;;  %9558 = vmatprep.mubr.msk.bf16.mxu1 %vm10389_vm0, %v10388_v1 }
 0xb9a   :  { %9525 = vmatpush3.bf16.msra.mxu0 %v10068_v58  ;;  %9545 = vmatpush3.bf16.msra.mxu1 %v10069_v19  ;;  %v10122_v58 = vld [vmem:[%s12457_s7 + $0x120] sm:$0xff]  }
 0xb9b   :  { %9526 = vmatprep.subr.bf16.mxu0 %v10388_v1  ;;  %9546 = vmatprep.subr.bf16.mxu1 %v10388_v1  ;;  %v10123_v19 = vld [vmem:[%s12457_s7 + $0x160] sm:$0xff]  }
 0xb9e   :  { %9527 = vmatpush3.bf16.msra.mxu0 %v10070_v21  ;;  %9547 = vmatpush3.bf16.msra.mxu1 %v10071_v23  ;;  %v10124_v21 = vld [vmem:[%s12457_s7 + $0x128] sm:$0xff]  }
 0xb9f   :  { %9528 = vmatprep.subr.bf16.mxu0 %v10388_v1  ;;  %9548 = vmatprep.subr.bf16.mxu1 %v10388_v1  ;;  %v10125_v23 = vld [vmem:[%s12457_s7 + $0x168] sm:$0xff]  }
 0xba2   :  { %9529 = vmatpush3.bf16.msra.mxu0 %v10072_v26  ;;  %9549 = vmatpush3.bf16.msra.mxu1 %v10073_v27  ;;  %v10126_v26 = vld [vmem:[%s12457_s7 + $0x130] sm:$0xff]  }
 0xba3   :  { %9530 = vmatprep.subr.bf16.mxu0 %v10388_v1  ;;  %9550 = vmatprep.subr.bf16.mxu1 %v10388_v1  ;;  %v10127_v27 = vld [vmem:[%s12457_s7 + $0x170] sm:$0xff]  }
 0xba6   :  { %9531 = vmatpush3.bf16.msra.mxu0 %v10074_v28  ;;  %9551 = vmatpush3.bf16.msra.mxu1 %v10075_v29  ;;  %v10128_v28 = vld [vmem:[%s12457_s7 + $0x138] sm:$0xff]  }
 0xba7   :  { %9532 = vmatprep.subr.bf16.mxu0 %v10388_v1  ;;  %9552 = vmatprep.subr.bf16.mxu1 %v10388_v1  ;;  %v10129_v29 = vld [vmem:[%s12457_s7 + $0x178] sm:$0xff]  }
 0xbaa   :  { %9533 = vmatpush3.bf16.msra.mxu0 %v10076_v33  ;;  %9553 = vmatpush3.bf16.msra.mxu1 %v10077_v36  ;;  %v10130_v33 = vld [vmem:[%s12457_s7 + $0x180] sm:$0xff]  }
 0xbab   :  { %9534 = vmatprep.subr.bf16.mxu0 %v10388_v1  ;;  %9554 = vmatprep.subr.bf16.mxu1 %v10388_v1  ;;  %v10131_v36 = vld [vmem:[%s12457_s7 + $0x1c0] sm:$0xff]  }
 0xbae   :  { %9535 = vmatpush3.bf16.msra.mxu0 %v10078_v37  ;;  %9555 = vmatpush3.bf16.msra.mxu1 %v10079_v38  ;;  %v10132_v37 = vld [vmem:[%s12457_s7 + $0x188] sm:$0xff]  }
 0xbaf   :  { %9536 = vmatprep.subr.bf16.mxu0 %v10388_v1  ;;  %9556 = vmatprep.subr.bf16.mxu1 %v10388_v1  ;;  %v10133_v38 = vld [vmem:[%s12457_s7 + $0x1c8] sm:$0xff]  }
 0xbb2   :  { %9537 = vmatpush3.bf16.msra.mxu0 %v10080_v44  ;;  %9557 = vmatpush3.bf16.msra.mxu1 %v10081_v47  ;;  %v10134_v44 = vld [vmem:[%s12457_s7 + $0x190] sm:$0xff]  }
 0xbb3   :  { %9562 = vmatprep.subr.bf16.mxu0 %v10388_v1  ;;  %9582 = vmatprep.subr.bf16.mxu1 %v10388_v1  ;;  %v10135_v47 = vld [vmem:[%s12457_s7 + $0x1d0] sm:$0xff]  }
 0xbb5   :  { %9539 = vmatmul.mubr.bf16.vlgmr.msra.gmra.mrb[56].mxu0 %v11578_v22  ;;  %9559 = vmatmul.mubr.bf16.vlgmr.msra.gmra.mrb[72].mxu1 %v11578_v22 }
 0xbb6   :  { %9563 = vmatpush3.bf16.msra.mxu0 %v10082_v59  ;;  %9583 = vmatpush3.bf16.msra.mxu1 %v10083_v60  ;;  %v10136_v59 = vld [vmem:[%s12457_s7 + $0x198] sm:$0xff]  }
 0xbb7   :  { %9564 = vmatprep.subr.bf16.mxu0 %v10388_v1  ;;  %9584 = vmatprep.subr.bf16.mxu1 %v10388_v1  ;;  %v10137_v60 = vld [vmem:[%s12457_s7 + $0x1d8] sm:$0xff]  }
 0xbb8   :  { %9578 = vmatprep.mubr.msk.bf16.mxu0 %vm10389_vm0, %v10388_v1  ;;  %9598 = vmatprep.mubr.msk.bf16.mxu1 %vm10389_vm0, %v10388_v1 }
 0xbba   :  { %9565 = vmatpush3.bf16.msra.mxu0 %v10084_v48  ;;  %9585 = vmatpush3.bf16.msra.mxu1 %v10085_v51  ;;  %v10138_v48 = vld [vmem:[%s12457_s7 + $0x1a0] sm:$0xff]  }
 0xbbb   :  { %9566 = vmatprep.subr.bf16.mxu0 %v10388_v1  ;;  %9586 = vmatprep.subr.bf16.mxu1 %v10388_v1  ;;  %v10139_v51 = vld [vmem:[%s12457_s7 + $0x1e0] sm:$0xff]  }
 0xbbe   :  { %9567 = vmatpush3.bf16.msra.mxu0 %v10086_v52  ;;  %9587 = vmatpush3.bf16.msra.mxu1 %v10087_v53  ;;  %v10140_v52 = vld [vmem:[%s12457_s7 + $0x1a8] sm:$0xff]  }
 0xbbf   :  { %9568 = vmatprep.subr.bf16.mxu0 %v10388_v1  ;;  %9588 = vmatprep.subr.bf16.mxu1 %v10388_v1  ;;  %v10141_v53 = vld [vmem:[%s12457_s7 + $0x1e8] sm:$0xff]  }
 0xbc2   :  { %9569 = vmatpush3.bf16.msra.mxu0 %v10088_v54  ;;  %9589 = vmatpush3.bf16.msra.mxu1 %v10089_v56  ;;  %v10142_v54 = vld [vmem:[%s12457_s7 + $0x1b0] sm:$0xff]  }
 0xbc3   :  { %9570 = vmatprep.subr.bf16.mxu0 %v10388_v1  ;;  %9590 = vmatprep.subr.bf16.mxu1 %v10388_v1  ;;  %v10143_v56 = vld [vmem:[%s12457_s7 + $0x1f0] sm:$0xff]  }
 0xbc6   :  { %9571 = vmatpush3.bf16.msra.mxu0 %v10090_v57  ;;  %9591 = vmatpush3.bf16.msra.mxu1 %v10091_v12  ;;  %v10144_v57 = vld [vmem:[%s12457_s7 + $0x1b8] sm:$0xff]  }
 0xbc7   :  { %9572 = vmatprep.subr.bf16.mxu0 %v10388_v1  ;;  %9592 = vmatprep.subr.bf16.mxu1 %v10388_v1  ;;  %v10145_v12 = vld [vmem:[%s12457_s7 + $0x1f8] sm:$0xff]  }
 0xbca   :  { %9573 = vmatpush3.bf16.msra.mxu0 %v10092_v16  ;;  %9593 = vmatpush3.bf16.msra.mxu1 %v10093_v61 }
 0xbcb   :  { %9574 = vmatprep.subr.bf16.mxu0 %v10388_v1  ;;  %9594 = vmatprep.subr.bf16.mxu1 %v10388_v1 }
 0xbce   :  { %9575 = vmatpush3.bf16.msra.mxu0 %v10094_v62  ;;  %9595 = vmatpush3.bf16.msra.mxu1 %v10095_v41 }
 0xbcf   :  { %9576 = vmatprep.subr.bf16.mxu0 %v10388_v1  ;;  %9596 = vmatprep.subr.bf16.mxu1 %v10388_v1 }
 0xbd2   :  { %9577 = vmatpush3.bf16.msra.mxu0 %v10096_v24  ;;  %9597 = vmatpush3.bf16.msra.mxu1 %v10097_v42 }
 0xbd3   :  { %9602 = vmatprep.subr.bf16.mxu0 %v10388_v1  ;;  %9622 = vmatprep.subr.bf16.mxu1 %v10388_v1 }
 0xbd5   :  { %9579 = vmatmul.mubr.bf16.vlgmr.msra.gmra.mrb[60].mxu0 %v11578_v22  ;;  %9599 = vmatmul.mubr.bf16.vlgmr.msra.gmra.mrb[76].mxu1 %v11578_v22 }
 0xbd6   :  { %9603 = vmatpush3.bf16.msra.mxu0 %v10098_v63  ;;  %9623 = vmatpush3.bf16.msra.mxu1 %v10099_v0 }
 0xbd7   :  { %9604 = vmatprep.subr.bf16.mxu0 %v10388_v1  ;;  %9624 = vmatprep.subr.bf16.mxu1 %v10388_v1 }
 0xbd8   :  { %9618 = vmatprep.mubr.msk.bf16.mxu0 %vm10389_vm0, %v10388_v1  ;;  %9638 = vmatprep.mubr.msk.bf16.mxu1 %vm10389_vm0, %v10388_v1 }
 0xbda   :  { %9605 = vmatpush3.bf16.msra.mxu0 %v10100_v2  ;;  %9625 = vmatpush3.bf16.msra.mxu1 %v10101_v3 }
 0xbdb   :  { %9606 = vmatprep.subr.bf16.mxu0 %v10388_v1  ;;  %9626 = vmatprep.subr.bf16.mxu1 %v10388_v1 }
 0xbde   :  { %9607 = vmatpush3.bf16.msra.mxu0 %v10102_v20  ;;  %9627 = vmatpush3.bf16.msra.mxu1 %v10103_v25 }
 0xbdf   :  { %9608 = vmatprep.subr.bf16.mxu0 %v10388_v1  ;;  %9628 = vmatprep.subr.bf16.mxu1 %v10388_v1 }
 0xbe2   :  { %9609 = vmatpush3.bf16.msra.mxu0 %v10104_v4  ;;  %9629 = vmatpush3.bf16.msra.mxu1 %v10105_v5 }
 0xbe3   :  { %9610 = vmatprep.subr.bf16.mxu0 %v10388_v1  ;;  %9630 = vmatprep.subr.bf16.mxu1 %v10388_v1 }
 0xbe6   :  { %9611 = vmatpush3.bf16.msra.mxu0 %v10106_v6  ;;  %9631 = vmatpush3.bf16.msra.mxu1 %v10107_v7 }
 0xbe7   :  { %9612 = vmatprep.subr.bf16.mxu0 %v10388_v1  ;;  %9632 = vmatprep.subr.bf16.mxu1 %v10388_v1 }
 0xbea   :  { %9613 = vmatpush3.bf16.msra.mxu0 %v10108_v8  ;;  %9633 = vmatpush3.bf16.msra.mxu1 %v10109_v9 }
 0xbeb   :  { %9614 = vmatprep.subr.bf16.mxu0 %v10388_v1  ;;  %9634 = vmatprep.subr.bf16.mxu1 %v10388_v1 }
 0xbee   :  { %9615 = vmatpush3.bf16.msra.mxu0 %v10110_v10  ;;  %9635 = vmatpush3.bf16.msra.mxu1 %v10111_v11 }
 0xbef   :  { %9616 = vmatprep.subr.bf16.mxu0 %v10388_v1  ;;  %9636 = vmatprep.subr.bf16.mxu1 %v10388_v1 }
 0xbf2   :  { %9617 = vmatpush3.bf16.msra.mxu0 %v10112_v13  ;;  %9637 = vmatpush3.bf16.msra.mxu1 %v10113_v14 }
 0xbf3   :  { %9642 = vmatprep.subr.bf16.mxu0 %v10388_v1  ;;  %9662 = vmatprep.subr.bf16.mxu1 %v10388_v1 }
 0xbf5   :  { %9619 = vmatmul.mubr.bf16.vlgmr.msra.gmra.mrb[64].mxu0 %v11578_v22  ;;  %9639 = vmatmul.mubr.bf16.vlgmr.msra.gmra.mrb[80].mxu1 %v11578_v22 }
 0xbf6   :  { %9643 = vmatpush3.bf16.msra.mxu0 %v10114_v15  ;;  %9663 = vmatpush3.bf16.msra.mxu1 %v10115_v17 }
 0xbf7   :  { %9644 = vmatprep.subr.bf16.mxu0 %v10388_v1  ;;  %9664 = vmatprep.subr.bf16.mxu1 %v10388_v1 }
 0xbf8   :  { %9658 = vmatprep.mubr.msk.bf16.mxu0 %vm10389_vm0, %v10388_v1  ;;  %9678 = vmatprep.mubr.msk.bf16.mxu1 %vm10389_vm0, %v10388_v1 }
 0xbfa   :  { %9645 = vmatpush3.bf16.msra.mxu0 %v10116_v18  ;;  %9665 = vmatpush3.bf16.msra.mxu1 %v10117_v45 }
 0xbfb   :  { %9646 = vmatprep.subr.bf16.mxu0 %v10388_v1  ;;  %9666 = vmatprep.subr.bf16.mxu1 %v10388_v1 }
 0xbfe   :  { %9647 = vmatpush3.bf16.msra.mxu0 %v10118_v46  ;;  %9667 = vmatpush3.bf16.msra.mxu1 %v10119_v49 }
 0xbff   :  { %9648 = vmatprep.subr.bf16.mxu0 %v10388_v1  ;;  %9668 = vmatprep.subr.bf16.mxu1 %v10388_v1 }
 0xc02   :  { %9649 = vmatpush3.bf16.msra.mxu0 %v10120_v50  ;;  %9669 = vmatpush3.bf16.msra.mxu1 %v10121_v55 }
 0xc03   :  { %9650 = vmatprep.subr.bf16.mxu0 %v10388_v1  ;;  %9670 = vmatprep.subr.bf16.mxu1 %v10388_v1 }
 0xc06   :  { %9651 = vmatpush3.bf16.msra.mxu0 %v10122_v58  ;;  %9671 = vmatpush3.bf16.msra.mxu1 %v10123_v19 }
 0xc07   :  { %9652 = vmatprep.subr.bf16.mxu0 %v10388_v1  ;;  %9672 = vmatprep.subr.bf16.mxu1 %v10388_v1 }
 0xc0a   :  { %9653 = vmatpush3.bf16.msra.mxu0 %v10124_v21  ;;  %9673 = vmatpush3.bf16.msra.mxu1 %v10125_v23 }
 0xc0b   :  { %9654 = vmatprep.subr.bf16.mxu0 %v10388_v1  ;;  %9674 = vmatprep.subr.bf16.mxu1 %v10388_v1 }
 0xc0e   :  { %9655 = vmatpush3.bf16.msra.mxu0 %v10126_v26  ;;  %9675 = vmatpush3.bf16.msra.mxu1 %v10127_v27 }
 0xc0f   :  { %9656 = vmatprep.subr.bf16.mxu0 %v10388_v1  ;;  %9676 = vmatprep.subr.bf16.mxu1 %v10388_v1 }
 0xc12   :  { %9657 = vmatpush3.bf16.msra.mxu0 %v10128_v28  ;;  %9677 = vmatpush3.bf16.msra.mxu1 %v10129_v29 }
 0xc13   :  { %9682 = vmatprep.subr.bf16.mxu0 %v10388_v1  ;;  %9702 = vmatprep.subr.bf16.mxu1 %v10388_v1 }
 0xc15   :  { %9659 = vmatmul.mubr.bf16.vlgmr.msra.gmra.mrb[68].mxu0 %v11578_v22  ;;  %9679 = vmatmul.mubr.bf16.vlgmr.msra.gmra.mrb[84].mxu1 %v11578_v22 }
 0xc16   :  { %9683 = vmatpush3.bf16.msra.mxu0 %v10130_v33  ;;  %9703 = vmatpush3.bf16.msra.mxu1 %v10131_v36 }
 0xc17   :  { %9684 = vmatprep.subr.bf16.mxu0 %v10388_v1  ;;  %9704 = vmatprep.subr.bf16.mxu1 %v10388_v1 }
 0xc18   :  { %9698 = vmatprep.mubr.msk.bf16.mxu0 %vm10389_vm0, %v10388_v1  ;;  %9718 = vmatprep.mubr.msk.bf16.mxu1 %vm10389_vm0, %v10388_v1 }
 0xc1a   :  { %9685 = vmatpush3.bf16.msra.mxu0 %v10132_v37  ;;  %9705 = vmatpush3.bf16.msra.mxu1 %v10133_v38 }
 0xc1b   :  { %9686 = vmatprep.subr.bf16.mxu0 %v10388_v1  ;;  %9706 = vmatprep.subr.bf16.mxu1 %v10388_v1 }
 0xc1e   :  { %9687 = vmatpush3.bf16.msra.mxu0 %v10134_v44  ;;  %9707 = vmatpush3.bf16.msra.mxu1 %v10135_v47 }
 0xc1f   :  { %9688 = vmatprep.subr.bf16.mxu0 %v10388_v1  ;;  %9708 = vmatprep.subr.bf16.mxu1 %v10388_v1 }
 0xc22   :  { %9689 = vmatpush3.bf16.msra.mxu0 %v10136_v59  ;;  %9709 = vmatpush3.bf16.msra.mxu1 %v10137_v60 }
 0xc23   :  { %9690 = vmatprep.subr.bf16.mxu0 %v10388_v1  ;;  %9710 = vmatprep.subr.bf16.mxu1 %v10388_v1 }
 0xc26   :  { %9691 = vmatpush3.bf16.msra.mxu0 %v10138_v48  ;;  %9711 = vmatpush3.bf16.msra.mxu1 %v10139_v51 }
 0xc27   :  { %9692 = vmatprep.subr.bf16.mxu0 %v10388_v1  ;;  %9712 = vmatprep.subr.bf16.mxu1 %v10388_v1 }
 0xc2a   :  { %9693 = vmatpush3.bf16.msra.mxu0 %v10140_v52  ;;  %9713 = vmatpush3.bf16.msra.mxu1 %v10141_v53 }
 0xc2b   :  { %9694 = vmatprep.subr.bf16.mxu0 %v10388_v1  ;;  %9714 = vmatprep.subr.bf16.mxu1 %v10388_v1 }
 0xc2e   :  { %9695 = vmatpush3.bf16.msra.mxu0 %v10142_v54  ;;  %9715 = vmatpush3.bf16.msra.mxu1 %v10143_v56 }
 0xc2f   :  { %9696 = vmatprep.subr.bf16.mxu0 %v10388_v1  ;;  %9716 = vmatprep.subr.bf16.mxu1 %v10388_v1 }
 0xc32   :  { %9697 = vmatpush3.bf16.msra.mxu0 %v10144_v57  ;;  %9717 = vmatpush3.bf16.msra.mxu1 %v10145_v12 }
 0xc33   :  { %9722 = vmatprep.subr.mxu0 %v10388_v1  ;;  %9727 = vmatprep.subr.mxu1 %v10388_v1 }
 0xc35   :  { %9699 = vmatmul.mubr.bf16.vlgmr.msra.gmra.mrb[72].mxu0 %v11578_v22  ;;  %9719 = vmatmul.mubr.bf16.vlgmr.msra.gmra.mrb[88].mxu1 %v11578_v22 }
 0xc36   :  { %9724 = vmatprep.mubr.msk.f32.mxu0 %vm10389_vm0, %v10388_v1  ;;  %9729 = vmatprep.mubr.msk.f32.mxu1 %vm10389_vm0, %v10388_v1 }
 0xc68   :  { %v4177_v16 = vpop.f32.mrb[52].mxu0  ;;  %v4266_v61 = vpop.f32.mrb[68].mxu1 }
 0xc69   :  { %v9500_v62 = vpop.f32.mrb[53].mxu0  ;;  %v9520_v41 = vpop.f32.mrb[69].mxu1 }
 0xc6a   :  { %v4180_v24 = vpop.f32.mrb[54].mxu0  ;;  %v4269_v42 = vpop.f32.mrb[70].mxu1 }
 0xc6b   :  { %v9501_v63 = vpop.f32.mrb[55].mxu0  ;;  %v9521_v0 = vpop.f32.mrb[71].mxu1 }
 0xc88   :  { %v4355_v2 = vpop.f32.mrb[56].mxu0  ;;  %v4444_v3 = vpop.f32.mrb[72].mxu1 }
 0xc89   :  { %v9540_v20 = vpop.f32.mrb[57].mxu0  ;;  %v9560_v25 = vpop.f32.mrb[73].mxu1 }
 0xc8a   :  { %v4358_v4 = vpop.f32.mrb[58].mxu0  ;;  %v4447_v22 = vpop.f32.mrb[74].mxu1 }
 0xc8b   :  { %v9541_v5 = vpop.f32.mrb[59].mxu0  ;;  %v9561_v6 = vpop.f32.mrb[75].mxu1 }
 0xca8   :  { %v4598_v7 = vpop.f32.mrb[60].mxu0  ;;  %v4687_v8 = vpop.f32.mrb[76].mxu1 }
 0xca9   :  { %v9580_v9 = vpop.f32.mrb[61].mxu0  ;;  %v9600_v10 = vpop.f32.mrb[77].mxu1  ;;  %9723 = vmatpush3.xpose.msk.msra.mxu0 %vm1672_vm1, %v4598_v7 }
 0xcaa   :  { %v4601_v11 = vpop.f32.mrb[62].mxu0  ;;  %v4690_v13 = vpop.f32.mrb[78].mxu1  ;;  %9732 = vmatprep.subr.mxu0 %v10388_v1 }
 0xcab   :  { %v9581_v14 = vpop.f32.mrb[63].mxu0  ;;  %v9601_v15 = vpop.f32.mrb[79].mxu1  ;;  %9728 = vmatpush3.xpose.msk.msra.mxu1 %vm1672_vm1, %v4601_v11 }
 0xcac   :  { %9725 = vmatmul.mubr.msk.f32.vlgmr.msra.gmra.mrb[76].mxu0 %vm1672_vm1, %v4177_v16  ;;  %9737 = vmatprep.subr.mxu1 %v10388_v1 }
 0xcad   :  { %9733 = vmatpush3.xpose.msk.msra.mxu0 %vm1672_vm1, %v4687_v8  ;;  %9734 = vmatprep.mubr.msk.f32.mxu0 %vm10389_vm0, %v10388_v1 }
 0xcae   :  { %9730 = vmatmul.mubr.msk.f32.vlgmr.msra.gmra.mrb[92].mxu1 %vm1672_vm1, %v4180_v24  ;;  %9742 = vmatprep.subr.mxu0 %v10388_v1 }
 0xcaf   :  { %9738 = vmatpush3.xpose.msk.msra.mxu1 %vm1672_vm1, %v4690_v13  ;;  %9739 = vmatprep.mubr.msk.f32.mxu1 %vm10389_vm0, %v10388_v1 }
 0xcb0   :  { %9735 = vmatmul.mubr.msk.f32.vlgmr.msra.gmra.mrb[78].mxu0 %vm1672_vm1, %v4266_v61  ;;  %9747 = vmatprep.subr.mxu1 %v10388_v1 }
 0xcb1   :  { %9744 = vmatprep.mubr.msk.f32.mxu0 %vm10389_vm0, %v10388_v1 }
 0xcb2   :  { %9740 = vmatmul.mubr.msk.f32.vlgmr.msra.gmra.mrb[94].mxu1 %vm1672_vm1, %v4269_v42 }
 0xcb3   :  { %9749 = vmatprep.mubr.msk.f32.mxu1 %vm10389_vm0, %v10388_v1 }
 0xcc8   :  { %v4776_v17 = vpop.f32.mrb[64].mxu0  ;;  %v4865_v18 = vpop.f32.mrb[80].mxu1 }
 0xcc9   :  { %v9620_v45 = vpop.f32.mrb[65].mxu0  ;;  %v9640_v46 = vpop.f32.mrb[81].mxu1  ;;  %9743 = vmatpush3.xpose.msk.msra.mxu0 %vm1672_vm1, %v4776_v17 }
 0xcca   :  { %v4779_v49 = vpop.f32.mrb[66].mxu0  ;;  %v4868_v50 = vpop.f32.mrb[82].mxu1  ;;  %9752 = vmatprep.subr.mxu0 %v10388_v1 }
 0xccb   :  { %v9621_v55 = vpop.f32.mrb[67].mxu0  ;;  %v9641_v58 = vpop.f32.mrb[83].mxu1  ;;  %9748 = vmatpush3.xpose.msk.msra.mxu1 %vm1672_vm1, %v4779_v49 }
 0xccc   :  { %9745 = vmatmul.mubr.msk.f32.vlgmr.msra.gmra.mrb[80].mxu0 %vm1672_vm1, %v4355_v2  ;;  %9757 = vmatprep.subr.mxu1 %v10388_v1 }
 0xccd   :  { %9753 = vmatpush3.xpose.msk.msra.mxu0 %vm1672_vm1, %v4865_v18  ;;  %9754 = vmatprep.mubr.msk.f32.mxu0 %vm10389_vm0, %v10388_v1 }
 0xcce   :  { %9750 = vmatmul.mubr.msk.f32.vlgmr.msra.gmra.mrb[96].mxu1 %vm1672_vm1, %v4358_v4  ;;  %9762 = vmatprep.subr.mxu0 %v10388_v1 }
 0xccf   :  { %9758 = vmatpush3.xpose.msk.msra.mxu1 %vm1672_vm1, %v4868_v50  ;;  %9759 = vmatprep.mubr.msk.f32.mxu1 %vm10389_vm0, %v10388_v1 }
 0xcd0   :  { %9755 = vmatmul.mubr.msk.f32.vlgmr.msra.gmra.mrb[82].mxu0 %vm1672_vm1, %v4444_v3  ;;  %9767 = vmatprep.subr.mxu1 %v10388_v1 }
 0xcd1   :  { %9764 = vmatprep.mubr.msk.f32.mxu0 %vm10389_vm0, %v10388_v1 }
 0xcd2   :  { %9760 = vmatmul.mubr.msk.f32.vlgmr.msra.gmra.mrb[98].mxu1 %vm1672_vm1, %v4447_v22 }
 0xcd3   :  { %9769 = vmatprep.mubr.msk.f32.mxu1 %vm10389_vm0, %v10388_v1 }
 0xce8   :  { %v5019_v19 = vpop.f32.mrb[68].mxu0  ;;  %v11970_v21 = vpop.f32.mrb[84].mxu1 }
 0xce9   :  { %v9660_v23 = vpop.f32.mrb[69].mxu0  ;;  %v9680_v26 = vpop.f32.mrb[85].mxu1  ;;  %9763 = vmatpush3.msra.mxu0 %v5019_v19 }
 0xcea   :  { %v5022_v27 = vpop.f32.mrb[70].mxu0  ;;  %v11972_v28 = vpop.f32.mrb[86].mxu1  ;;  %9772 = vmatprep.subr.mxu0 %v10388_v1 }
 0xceb   :  { %v9661_v29 = vpop.f32.mrb[71].mxu0  ;;  %v9681_v33 = vpop.f32.mrb[87].mxu1  ;;  %9768 = vmatpush3.msra.mxu1 %v5022_v27 }
 0xcec   :  { %9777 = vmatprep.subr.mxu1 %v10388_v1 }
 0xd08   :  { %v11976_v36 = vpop.f32.mrb[72].mxu0  ;;  %v11978_v37 = vpop.f32.mrb[88].mxu1 }
 0xd09   :  { %v9700_v38 = vpop.f32.mrb[73].mxu0  ;;  %v9720_v44 = vpop.f32.mrb[89].mxu1 }
 0xd0a   :  { %v11980_v47 = vpop.f32.mrb[74].mxu0  ;;  %v11982_v59 = vpop.f32.mrb[90].mxu1 }
 0xd0b   :  { %v9701_v60 = vpop.f32.mrb[75].mxu0  ;;  %v9721_v48 = vpop.f32.mrb[91].mxu1 }
 0xd7f   :  { %v5365_v51 = vpop.f32.mrb[76].mxu0 }
 0xd80   :  { %v5901_v52 = vmul.f32 0.17677669, %v5365_v51  ;;  %v9726_v53 = vpop.f32.mrb[77].mxu0 }
 0xd81   :  { %v5441_v54 = vpop.f32.mrb[92].mxu1 }
 0xd82   :  { %v5902_v56 = vmul.f32 0.17677669, %v5441_v54  ;;  %v9731_v57 = vpop.f32.mrb[93].mxu1  ;;  %v5909_v12 = vsel %vm2289_vm2, %v5901_v52, -inf }
 0xd83   :  { %5910 = vmax.xlane.f32.xlu0 %v5909_v12  ;;  %v5517_v16 = vpop.f32.mrb[78].mxu0 }
 0xd84   :  { %v5903_v61 = vmul.f32 0.17677669, %v5517_v16  ;;  %v9736_v62 = vpop.f32.mrb[79].mxu0  ;;  %v5912_v41 = vsel %vm2289_vm2, %v5902_v56, -inf }
 0xd85   :  { %5913 = vmax.xlane.f32.xlu1 %v5912_v41  ;;  %v5593_v24 = vpop.f32.mrb[94].mxu1 }
 0xd86   :  { %v5904_v42 = vmul.f32 0.17677669, %v5593_v24  ;;  %v9741_v63 = vpop.f32.mrb[95].mxu1  ;;  %v5915_v0 = vsel %vm2289_vm2, %v5903_v61, -inf }
 0xd87   :  { %5916 = vmax.xlane.f32.xlu0 %v5915_v0 }
 0xd88   :  { %v5918_v2 = vsel %vm2289_vm2, %v5904_v42, -inf }
 0xd89   :  { %5919 = vmax.xlane.f32.xlu1 %v5918_v2 }
 0xd9f   :  { %v5669_v3 = vpop.f32.mrb[80].mxu0 }
 0xda0   :  { %v5905_v20 = vmul.f32 0.17677669, %v5669_v3  ;;  %v9746_v25 = vpop.f32.mrb[81].mxu0 }
 0xda1   :  { %v5745_v4 = vpop.f32.mrb[96].mxu1 }
 0xda2   :  { %v5906_v22 = vmul.f32 0.17677669, %v5745_v4  ;;  %v9751_v5 = vpop.f32.mrb[97].mxu1  ;;  %v5921_v6 = vsel %vm2289_vm2, %v5905_v20, -inf }
 0xda3   :  { %5922 = vmax.xlane.f32.xlu0 %v5921_v6  ;;  %v5821_v7 = vpop.f32.mrb[82].mxu0 }
 0xda4   :  { %v5907_v8 = vmul.f32 0.17677669, %v5821_v7  ;;  %v9756_v9 = vpop.f32.mrb[83].mxu0  ;;  %v5924_v10 = vsel %vm2289_vm2, %v5906_v22, -inf }
 0xda5   :  { %5925 = vmax.xlane.f32.xlu1 %v5924_v10  ;;  %v5897_v11 = vpop.f32.mrb[98].mxu1 }
 0xda6   :  { %v5908_v13 = vmul.f32 0.17677669, %v5897_v11  ;;  %v9761_v14 = vpop.f32.mrb[99].mxu1  ;;  %v5927_v15 = vsel %vm2289_vm2, %v5907_v8, -inf }
 0xda7   :  { %5928 = vmax.xlane.f32.xlu0 %v5927_v15 }
 0xda8   :  { %v5930_v17 = vsel %vm2289_vm2, %v5908_v13, -inf }
 0xda9   :  { %5931 = vmax.xlane.f32.xlu1 %v5930_v17 }
 0xe10   :  { %v5911_v18 = vpop.xlane.xlu0 %5910 }
 0xe11   :  { %v5933_v45 = vsub.f32 %v5901_v52, %v5911_v18 }
 0xe12   :  { %v5914_v46 = vpop.xlane.xlu1 %5913 }
 0xe13   :  { %v5941_v49 = vmul.f32 1.442695, %v5933_v45  ;;  %v5934_v50 = vsub.f32 %v5902_v56, %v5914_v46 }
 0xe14   :  { %v5917_v55 = vpop.xlane.xlu0 %5916 }
 0xe15   :  { %10310 = vpow2.f32 %v5941_v49  ;;  %v5943_v58 = vmul.f32 1.442695, %v5934_v50  ;;  %v5935_v19 = vsub.f32 %v5903_v61, %v5917_v55 }
 0xe16   :  { %v5920_v23 = vpop.xlane.xlu1 %5919 }
 0xe17   :  { %10312 = vpow2.f32 %v5943_v58  ;;  %v5945_v26 = vmul.f32 1.442695, %v5935_v19  ;;  %v5936_v27 = vsub.f32 %v5904_v42, %v5920_v23  ;;  %v10146_v23 = vld [vmem:[%s12458_s8 + $0x40] sm:$0xff]  }
 0xe19   :  { %10314 = vpow2.f32 %v5945_v26  ;;  %v5947_v29 = vmul.f32 1.442695, %v5936_v27 }
 0xe1b   :  { %10316 = vpow2.f32 %v5947_v29 }
 0xe1f   :  { %v10311_v33 = vpop.eup %10310 }
 0xe20   :  { %v5957_v38 = vsel %vm2289_vm2, %v10311_v33, 0.0 }
 0xe21   :  { %v10313_v44 = vpop.eup %10312  ;;  %5958 = vadd.xlane.f32.xlu0 %v5957_v38 }
 0xe22   :  { %v5960_v60 = vsel %vm2289_vm2, %v10313_v44, 0.0 }
 0xe23   :  { %v10315_v48 = vpop.eup %10314  ;;  %5961 = vadd.xlane.f32.xlu1 %v5960_v60 }
 0xe24   :  { %v5963_v51 = vsel %vm2289_vm2, %v10315_v48, 0.0 }
 0xe25   :  { %v10317_v52 = vpop.eup %10316  ;;  %5964 = vadd.xlane.f32.xlu0 %v5963_v51 }
 0xe26   :  { %v5966_v53 = vsel %vm2289_vm2, %v10317_v52, 0.0 }
 0xe27   :  { %5967 = vadd.xlane.f32.xlu1 %v5966_v53 }
 0xe30   :  { %v5923_v54 = vpop.xlane.xlu0 %5922 }
 0xe31   :  { %v5937_v56 = vsub.f32 %v5905_v20, %v5923_v54 }
 0xe32   :  { %v5926_v57 = vpop.xlane.xlu1 %5925 }
 0xe33   :  { %v5949_v12 = vmul.f32 1.442695, %v5937_v56  ;;  %v5938_v16 = vsub.f32 %v5906_v22, %v5926_v57  ;;  %v10151_v57 = vld [vmem:[%s12458_s8 + $0x68] sm:$0xff]  }
 0xe34   :  { %v5929_v61 = vpop.xlane.xlu0 %5928 }
 0xe35   :  { %10318 = vpow2.f32 %v5949_v12  ;;  %v5951_v62 = vmul.f32 1.442695, %v5938_v16  ;;  %v5939_v41 = vsub.f32 %v5907_v8, %v5929_v61  ;;  %v10152_v12 = vld [vmem:[%s12458_s8 + $0x70] sm:$0xff]  }
 0xe36   :  { %v5932_v24 = vpop.xlane.xlu1 %5931 }
 0xe37   :  { %10320 = vpow2.f32 %v5951_v62  ;;  %v5953_v42 = vmul.f32 1.442695, %v5939_v41  ;;  %v5940_v63 = vsub.f32 %v5908_v13, %v5932_v24  ;;  %v10153_v62 = vld [vmem:[%s12458_s8 + $0x78] sm:$0xff]  }
 0xe39   :  { %10322 = vpow2.f32 %v5953_v42  ;;  %v5955_v0 = vmul.f32 1.442695, %v5940_v63 }
 0xe3b   :  { %10324 = vpow2.f32 %v5955_v0 }
 0xe3f   :  { %v10319_v2 = vpop.eup %10318 }
 0xe40   :  { %v5969_v3 = vsel %vm2289_vm2, %v10319_v2, 0.0 }
 0xe41   :  { %v10321_v25 = vpop.eup %10320  ;;  %5970 = vadd.xlane.f32.xlu0 %v5969_v3 }
 0xe42   :  { %v5972_v20 = vsel %vm2289_vm2, %v10321_v25, 0.0 }
 0xe43   :  { %v10323_v4 = vpop.eup %10322  ;;  %5973 = vadd.xlane.f32.xlu1 %v5972_v20 }
 0xe44   :  { %v5975_v22 = vsel %vm2289_vm2, %v10323_v4, 0.0 }
 0xe45   :  { %v10325_v5 = vpop.eup %10324  ;;  %5976 = vadd.xlane.f32.xlu0 %v5975_v22 }
 0xe46   :  { %v5978_v6 = vsel %vm2289_vm2, %v10325_v5, 0.0 }
 0xe47   :  { %5979 = vadd.xlane.f32.xlu1 %v5978_v6 }
 0xeae   :  { %v5959_v7 = vpop.xlane.xlu0 %5958 }
 0xeaf   :  { %10326 = vrcp.f32 %v5959_v7 }
 0xeb0   :  { %v5962_v8 = vpop.xlane.xlu1 %5961 }
 0xeb1   :  { %10328 = vrcp.f32 %v5962_v8 }
 0xeb2   :  { %v5965_v9 = vpop.xlane.xlu0 %5964 }
 0xeb3   :  { %10330 = vrcp.f32 %v5965_v9 }
 0xeb4   :  { %v5968_v10 = vpop.xlane.xlu1 %5967 }
 0xeb5   :  { %10332 = vrcp.f32 %v5968_v10 }
 0xeb9   :  { %v10327_v11 = vpop.eup %10326 }
 0xeba   :  { %v5982_v13 = vmul.f32 %v10327_v11, %v10311_v33  ;;  %v10149_v33 = vld [vmem:[%s12458_s8 + $0x58] sm:$0xff]  }
 0xebb   :  { %v10329_v14 = vpop.eup %10328 }
 0xebc   :  { %v5984_v15 = vmul.f32 %v10329_v14, %v10313_v44  ;;  %9765 = vmatmul.mubr.msk.f32.vlgmr.msra.gmra.mrb[84].mxu0 %vm2289_vm2, %v5982_v13 }
 0xebd   :  { %v10331_v17 = vpop.eup %10330  ;;  %9773 = vmatpush3.msra.mxu0 %v11970_v21  ;;  %9774 = vmatprep.mubr.msk.f32.mxu0 %vm10389_vm0, %v10388_v1 }
 0xebe   :  { %v5986_v18 = vmul.f32 %v10331_v17, %v10315_v48  ;;  %9770 = vmatmul.mubr.msk.f32.vlgmr.msra.gmra.mrb[100].mxu1 %vm2289_vm2, %v5984_v15  ;;  %9782 = vmatprep.subr.mxu0 %v10388_v1  ;;  %v10150_v48 = vld [vmem:[%s12458_s8 + $0x60] sm:$0xff]  }
 0xebf   :  { %v10333_v45 = vpop.eup %10332  ;;  %9778 = vmatpush3.msra.mxu1 %v11972_v28  ;;  %9779 = vmatprep.mubr.msk.f32.mxu1 %vm10389_vm0, %v10388_v1 }
 0xec0   :  { %v5988_v46 = vmul.f32 %v10333_v45, %v10317_v52  ;;  %9775 = vmatmul.mubr.msk.f32.vlgmr.msra.gmra.mrb[86].mxu0 %vm2289_vm2, %v5986_v18  ;;  %9787 = vmatprep.subr.mxu1 %v10388_v1 }
 0xec1   :  { %9783 = vmatpush3.msra.mxu0 %v11976_v36  ;;  %9784 = vmatprep.mubr.msk.f32.mxu0 %vm10389_vm0, %v10388_v1 }
 0xec2   :  { %9780 = vmatmul.mubr.msk.f32.vlgmr.msra.gmra.mrb[102].mxu1 %vm2289_vm2, %v5988_v46  ;;  %9792 = vmatprep.subr.mxu0 %v10388_v1 }
 0xec3   :  { %9788 = vmatpush3.msra.mxu1 %v11980_v47  ;;  %9789 = vmatprep.mubr.msk.f32.mxu1 %vm10389_vm0, %v10388_v1 }
 0xec4   :  { %9797 = vmatprep.subr.mxu1 %v10388_v1 }
 0xece   :  { %v5971_v21 = vpop.xlane.xlu0 %5970 }
 0xecf   :  { %10334 = vrcp.f32 %v5971_v21 }
 0xed0   :  { %v5974_v28 = vpop.xlane.xlu1 %5973 }
 0xed1   :  { %10336 = vrcp.f32 %v5974_v28 }
 0xed2   :  { %v5977_v49 = vpop.xlane.xlu0 %5976 }
 0xed3   :  { %10338 = vrcp.f32 %v5977_v49 }
 0xed4   :  { %v5980_v36 = vpop.xlane.xlu1 %5979 }
 0xed5   :  { %10340 = vrcp.f32 %v5980_v36 }
 0xed9   :  { %v10335_v50 = vpop.eup %10334 }
 0xeda   :  { %v5990_v55 = vmul.f32 %v10335_v50, %v10319_v2 }
 0xedb   :  { %v10337_v58 = vpop.eup %10336 }
 0xedc   :  { %v5992_v19 = vmul.f32 %v10337_v58, %v10321_v25  ;;  %9785 = vmatmul.mubr.msk.f32.vlgmr.msra.gmra.mrb[88].mxu0 %vm2289_vm2, %v5990_v55 }
 0xedd   :  { %v10339_v47 = vpop.eup %10338  ;;  %9793 = vmatpush3.msra.mxu0 %v11978_v37  ;;  %9794 = vmatprep.mubr.msk.f32.mxu0 %vm10389_vm0, %v10388_v1  ;;  %v10147_v37 = vld [vmem:[%s12458_s8 + $0x48] sm:$0xff]  }
 0xede   :  { %v5994_v26 = vmul.f32 %v10339_v47, %v10323_v4  ;;  %9790 = vmatmul.mubr.msk.f32.vlgmr.msra.gmra.mrb[104].mxu1 %vm2289_vm2, %v5992_v19  ;;  %9802 = vmatprep.subr.bf16.mxu0 %v10388_v1 }
 0xedf   :  { %v10341_v27 = vpop.eup %10340  ;;  %9798 = vmatpush3.msra.mxu1 %v11982_v59  ;;  %9799 = vmatprep.mubr.msk.f32.mxu1 %vm10389_vm0, %v10388_v1  ;;  %v10148_v59 = vld [vmem:[%s12458_s8 + $0x50] sm:$0xff]  }
 0xee0   :  { %v5996_v29 = vmul.f32 %v10341_v27, %v10325_v5  ;;  %9795 = vmatmul.mubr.msk.f32.vlgmr.msra.gmra.mrb[90].mxu0 %vm2289_vm2, %v5994_v26  ;;  %9810 = vmatprep.subr.bf16.mxu1 %v10388_v1  ;;  %v10154_v26 = vld [vmem:[%s12462_s12 + $0x100] ss:$16 sps:$4 sm:$0xff]   ;;  %v10156_v27 = vld [vmem:[%s12462_s12 + $0x104] ss:$16 sps:$4 sm:$0xff]  }
 0xee1   :  { %9803 = vmatpush3.bf16.msra.mxu0 %v10146_v23  ;;  %9806 = vmatprep.mubr.msk.bf16.mxu0 %vm10389_vm0, %v10388_v1 }
 0xee2   :  { %9800 = vmatmul.mubr.msk.f32.vlgmr.msra.gmra.mrb[106].mxu1 %vm2289_vm2, %v5996_v29  ;;  %9804 = vmatprep.subr.bf16.mxu0 %v10388_v1  ;;  %v10159_v29 = vld [vmem:[%s12462_s12 + $0x10c] ss:$16 sps:$4 sm:$0xff]  }
 0xee3   :  { %9814 = vmatprep.mubr.msk.bf16.mxu1 %vm10389_vm0, %v10388_v1  ;;  %9811 = vmatpush3.bf16.msra.mxu1 %v10148_v59  ;;  %v10160_v59 = vld [vmem:[%s12462_s12 + $0x120] ss:$16 sps:$4 sm:$0xff]  }
 0xee4   :  { %9812 = vmatprep.subr.bf16.mxu1 %v10388_v1 }
 0xee5   :  { %9805 = vmatpush3.bf16.msra.mxu0 %v10147_v37  ;;  %v10165_v37 = vld [vmem:[%s12462_s12 + $0x12c] ss:$16 sps:$4 sm:$0xff]  }
 0xee6   :  { %9818 = vmatprep.subr.bf16.mxu0 %v10388_v1 }
 0xee7   :  { %9813 = vmatpush3.bf16.msra.mxu1 %v10149_v33  ;;  %v10163_v33 = vld [vmem:[%s12462_s12 + $0x128] ss:$16 sps:$4 sm:$0xff]  }
 0xee8   :  { %9826 = vmatprep.subr.bf16.mxu1 %v10388_v1 }
 0xf8f   :  { %v6066_v38 = vpop.f32.mrb[84].mxu0 }
 0xf90   :  { %v9766_v44 = vpop.f32.mrb[85].mxu0 }
 0xf91   :  { %v6139_v60 = vpop.f32.mrb[100].mxu1 }
 0xf92   :  { %v6581_v51 = vpack.c.bf16 %v6139_v60, %v6066_v38  ;;  %v9771_v52 = vpop.f32.mrb[101].mxu1 }
 0xf93   :  { %v6212_v53 = vpop.f32.mrb[86].mxu0 }
 0xf94   :  { %v9776_v54 = vpop.f32.mrb[87].mxu0  ;;  %9807 = vmatmul.mubr.msk.bf16.vlgmr.msra.gmra.mrb[92].mxu0 %vm1672_vm1, %v6581_v51 }
 0xf95   :  { %v6285_v56 = vpop.f32.mrb[102].mxu1  ;;  %9819 = vmatpush3.bf16.msra.mxu0 %v10150_v48  ;;  %9822 = vmatprep.mubr.msk.bf16.mxu0 %vm10389_vm0, %v10388_v1 }
 0xf96   :  { %v6582_v16 = vpack.c.bf16 %v6285_v56, %v6212_v53  ;;  %v9781_v61 = vpop.f32.mrb[103].mxu1  ;;  %9820 = vmatprep.subr.bf16.mxu0 %v10388_v1  ;;  %v10168_v56 = vld [vmem:[%s12462_s12 + $0x144] ss:$16 sps:$4 sm:$0xff]  }
 0xf97   :  { %v10174_v61 = vld [vmem:[%s12462_s12 + $0x164] ss:$16 sps:$4 sm:$0xff]  }
 0xf98   :  { %9815 = vmatmul.mubr.msk.bf16.vlgmr.msra.gmra.mrb[108].mxu1 %vm1672_vm1, %v6582_v16  ;;  %v10169_v16 = vld [vmem:[%s12462_s12 + $0x148] ss:$16 sps:$4 sm:$0xff]  }
 0xf99   :  { %9821 = vmatpush3.bf16.msra.mxu0 %v10151_v57  ;;  %9827 = vmatpush3.bf16.msra.mxu1 %v10152_v12  ;;  %v10171_v57 = vld [vmem:[%s12462_s12 + $0x14c] ss:$16 sps:$4 sm:$0xff]   ;;  %v10166_v12 = vld [vmem:[%s12462_s12 + $0x140] ss:$16 sps:$4 sm:$0xff]  }
 0xf9a   :  { %9828 = vmatprep.subr.bf16.mxu1 %v10388_v1  ;;  %9830 = vmatprep.mubr.msk.bf16.mxu1 %vm10389_vm0, %v10388_v1 }
 0xf9b   :  { %7103 = vmatprep.subr.bf16.mxu0 %v10156_v27  ;;  %v10203_v27 = vld [vmem:[%s12464_s14 + $0x1c0] sm:$0xff]  }
 0xf9d   :  { %9829 = vmatpush3.bf16.msra.mxu1 %v10153_v62  ;;  %v10177_v62 = vld [vmem:[%s12462_s12 + $0x16c] ss:$16 sps:$4 sm:$0xff]  }
 0xf9e   :  { %7146 = vmatprep.subr.bf16.mxu1 %v10159_v29  ;;  %v10205_v29 = vld [vmem:[%s12464_s14 + $0x180] sm:$0xff]  }
 0xfaf   :  { %v6358_v41 = vpop.f32.mrb[88].mxu0 }
 0xfb0   :  { %v9786_v24 = vpop.f32.mrb[89].mxu0 }
 0xfb1   :  { %v6431_v42 = vpop.f32.mrb[104].mxu1  ;;  %v10175_v24 = vld [vmem:[%s12462_s12 + $0x168] ss:$16 sps:$4 sm:$0xff]  }
 0xfb2   :  { %v6583_v63 = vpack.c.bf16 %v6431_v42, %v6358_v41  ;;  %v9791_v0 = vpop.f32.mrb[105].mxu1  ;;  %v10172_v41 = vld [vmem:[%s12462_s12 + $0x160] ss:$16 sps:$4 sm:$0xff]   ;;  %v10180_v42 = vld [vmem:[%s12462_s12 + $0x184] ss:$16 sps:$4 sm:$0xff]  }
 0xfb3   :  { %v6504_v2 = vpop.f32.mrb[90].mxu0  ;;  %v10178_v0 = vld [vmem:[%s12462_s12 + $0x180] ss:$16 sps:$4 sm:$0xff]  }
 0xfb4   :  { %v9796_v3 = vpop.f32.mrb[91].mxu0  ;;  %9823 = vmatmul.mubr.msk.bf16.vlgmr.msra.gmra.mrb[96].mxu0 %vm1672_vm1, %v6583_v63  ;;  %v10183_v63 = vld [vmem:[%s12462_s12 + $0x18c] ss:$16 sps:$4 sm:$0xff]  }
 0xfb5   :  { %v6577_v25 = vpop.f32.mrb[106].mxu1  ;;  %7135 = vmatprep.mubr.bf16.mxu0 %v10390_v40  ;;  %7104 = vmatpush1.bf16.msra.mxu0 %v10154_v26  ;;  %v10186_v3 = vld [vmem:[%s12462_s12 + $0x1a4] ss:$16 sps:$4 sm:$0xff]  }
 0xfb6   :  { %v6584_v20 = vpack.c.bf16 %v6577_v25, %v6504_v2  ;;  %v9801_v4 = vpop.f32.mrb[107].mxu1  ;;  %v10181_v2 = vld [vmem:[%s12462_s12 + $0x188] ss:$16 sps:$4 sm:$0xff]   ;;  %v10189_v25 = vld [vmem:[%s12462_s12 + $0x1ac] ss:$16 sps:$4 sm:$0xff]   ;;  %v10202_v26 = vld [vmem:[%s12464_s14 + $0x140] sm:$0xff]  }
 0xfb7   :  { %v10187_v4 = vld [vmem:[%s12462_s12 + $0x1a8] ss:$16 sps:$4 sm:$0xff]  }
 0xfb8   :  { %9831 = vmatmul.mubr.msk.bf16.vlgmr.msra.gmra.mrb[112].mxu1 %vm1672_vm1, %v6584_v20  ;;  %v10184_v20 = vld [vmem:[%s12462_s12 + $0x1a0] ss:$16 sps:$4 sm:$0xff]  }
 0xfb9   :  { %7178 = vmatprep.mubr.bf16.mxu1 %v10390_v40  ;;  %v8476_v40 = vld [vmem:[%s12459_s9 + $0x1] ss:$0 sm:$0xff] }
0x1067   :  { %v6651_v1 = vpop.f32.mrb[92].mxu0 }
0x1068   :  { %v9808_v22 = vpop.f32.mrb[93].mxu0 }
0x1069   :  { %v6654_v5 = vpop.f32.mrb[94].mxu0  ;;  %v10195_v22 = vld [vmem:[%s12462_s12 + $0x1cc] ss:$16 sps:$4 sm:$0xff]  }
0x106a   :  { %v9809_v6 = vpop.f32.mrb[95].mxu0 }
0x106b   :  { %v6707_v7 = vpop.f32.mrb[108].mxu1  ;;  %v10193_v6 = vld [vmem:[%s12462_s12 + $0x1c8] ss:$16 sps:$4 sm:$0xff]  }
0x106c   :  { %v6826_v8 = vadd.f32 %v6707_v7, %v6651_v1  ;;  %v9816_v9 = vpop.f32.mrb[109].mxu1  ;;  %v10192_v1 = vld [vmem:[%s12462_s12 + $0x1c4] ss:$16 sps:$4 sm:$0xff]  }
0x106d   :  { %v6710_v10 = vpop.f32.mrb[110].mxu1  ;;  %v10198_v7 = vld [vmem:[%s12462_s12 + $0x1e4] ss:$16 sps:$4 sm:$0xff]   ;;  %v10196_v9 = vld [vmem:[%s12462_s12 + $0x1e0] ss:$16 sps:$4 sm:$0xff]  }
0x106e   :  { %v6829_v11 = vadd.f32 %v6710_v10, %v6654_v5  ;;  %v9817_v13 = vpop.f32.mrb[111].mxu1  ;;  %v10190_v5 = vld [vmem:[%s12462_s12 + $0x1c0] ss:$16 sps:$4 sm:$0xff]   ;;  %v10199_v10 = vld [vmem:[%s12462_s12 + $0x1e8] ss:$16 sps:$4 sm:$0xff]  }
0x1087   :  { %v6763_v14 = vpop.f32.mrb[96].mxu0 }
0x1088   :  { %v6827_v15 = vadd.f32 %v6826_v8, %v6763_v14  ;;  %v9824_v17 = vpop.f32.mrb[97].mxu0  ;;  %v10201_v8 = vld [vmem:[%s12462_s12 + $0x1ec] ss:$16 sps:$4 sm:$0xff]  }
0x1089   :  { %v6766_v18 = vpop.f32.mrb[98].mxu0 }
0x108a   :  { %v6830_v45 = vadd.f32 %v6829_v11, %v6766_v18  ;;  %v9825_v46 = vpop.f32.mrb[99].mxu0 }
0x108b   :  { %v6819_v21 = vpop.f32.mrb[112].mxu1  ;;  %v8479_v46 = vld [vmem:[%s12460_s10 + $0x1] ss:$0 sm:$0xff] }
0x108c   :  { %v6828_v28 = vadd.f32 %v6827_v15, %v6819_v21  ;;  %v9832_v49 = vpop.f32.mrb[113].mxu1 }
0x108d   :  { %v6822_v36 = vpop.f32.mrb[114].mxu1 }
0x108e   :  { %v6840_v50 = vadd.f32 %v8476_v40, %v6828_v28  ;;  %v6831_v55 = vadd.f32 %v6830_v45, %v6822_v36  ;;  %v9833_v58 = vpop.f32.mrb[115].mxu1  ;;  %v8480_v36 = vld [vmem:[%s12461_s11 + $0x1] ss:$0 sm:$0xff] }
0x1090   :  { %v6841_v19 = vadd.f32 %v8476_v40, %v6831_v55  ;;  %v12080_v47 = vadd.f32 %v6840_v50, %v11493_v39  ;;  %v10157_v39 = vld [vmem:[%s12462_s12 + $0x108] ss:$16 sps:$4 sm:$0xff]  }
0x1091   :  { %7147 = vmatpush1.bf16.msra.mxu1 %v10157_v39  ;;  %v10204_v39 = vld [vmem:[%s12464_s14 + $0x100] sm:$0xff]  }
0x1092   :  { %6848 = vadd.xlane.f32.xlu0 %v12080_v47  ;;  %v12084_v23 = vadd.f32 %v6841_v19, %v11497_v43  ;;  %v10162_v43 = vld [vmem:[%s12462_s12 + $0x124] ss:$16 sps:$4 sm:$0xff]   ;;  %7148 = vmatprep.subr.bf16.mxu1 %v10165_v37  ;;  %v10207_v37 = vld [vmem:[%s12464_s14 + $0x1c8] sm:$0xff]  }
0x1093   :  { %7105 = vmatprep.subr.bf16.mxu0 %v10162_v43  ;;  %v10206_v43 = vld [vmem:[%s12464_s14 + $0x148] sm:$0xff]  }
0x1094   :  { %6850 = vadd.xlane.f32.xlu1 %v12084_v23  ;;  %7106 = vmatpush1.bf16.msra.mxu0 %v10160_v59  ;;  %v10208_v59 = vld [vmem:[%s12464_s14 + $0x108] sm:$0xff]  }
0x1095   :  { %7149 = vmatpush1.bf16.msra.mxu1 %v10163_v33  ;;  %7107 = vmatprep.subr.bf16.mxu0 %v10168_v56  ;;  %v10209_v33 = vld [vmem:[%s12464_s14 + $0x188] sm:$0xff]   ;;  %v10218_v56 = vld [vmem:[%s12464_s14 + $0x160] sm:$0xff]  }
0x1096   :  { %7150 = vmatprep.subr.bf16.mxu1 %v10171_v57  ;;  %v10219_v57 = vld [vmem:[%s12464_s14 + $0x1e0] sm:$0xff]  }
0x1098   :  { %7108 = vmatpush1.bf16.msra.mxu0 %v10166_v12  ;;  %v10220_v12 = vld [vmem:[%s12464_s14 + $0x120] sm:$0xff]  }
0x1099   :  { %7151 = vmatpush1.bf16.msra.mxu1 %v10169_v16  ;;  %7109 = vmatprep.subr.bf16.mxu0 %v10174_v61  ;;  %v10221_v16 = vld [vmem:[%s12464_s14 + $0x1a0] sm:$0xff]   ;;  %v10222_v61 = vld [vmem:[%s12464_s14 + $0x168] sm:$0xff]  }
0x109a   :  { %7152 = vmatprep.subr.bf16.mxu1 %v10177_v62  ;;  %v10223_v62 = vld [vmem:[%s12464_s14 + $0x1e8] sm:$0xff]  }
0x109c   :  { %7110 = vmatpush1.bf16.msra.mxu0 %v10172_v41  ;;  %v10224_v41 = vld [vmem:[%s12464_s14 + $0x128] sm:$0xff]  }
0x109d   :  { %7153 = vmatpush1.bf16.msra.mxu1 %v10175_v24  ;;  %7111 = vmatprep.subr.bf16.mxu0 %v10180_v42  ;;  %v10225_v24 = vld [vmem:[%s12464_s14 + $0x1a8] sm:$0xff]   ;;  %v10226_v42 = vld [vmem:[%s12464_s14 + $0x170] sm:$0xff]  }
0x109e   :  { %7154 = vmatprep.subr.bf16.mxu1 %v10183_v63  ;;  %v10227_v63 = vld [vmem:[%s12464_s14 + $0x1f0] sm:$0xff]  }
0x10a0   :  { %7112 = vmatpush1.bf16.msra.mxu0 %v10178_v0  ;;  %v10228_v0 = vld [vmem:[%s12464_s14 + $0x130] sm:$0xff]  }
0x10a1   :  { %7155 = vmatpush1.bf16.msra.mxu1 %v10181_v2  ;;  %7113 = vmatprep.subr.bf16.mxu0 %v10186_v3  ;;  %v10229_v2 = vld [vmem:[%s12464_s14 + $0x1b0] sm:$0xff]   ;;  %v10230_v3 = vld [vmem:[%s12464_s14 + $0x178] sm:$0xff]  }
0x10a2   :  { %7156 = vmatprep.subr.bf16.mxu1 %v10189_v25  ;;  %v10231_v25 = vld [vmem:[%s12464_s14 + $0x1f8] sm:$0xff]  }
0x10a4   :  { %7114 = vmatpush1.bf16.msra.mxu0 %v10184_v20  ;;  %v10232_v20 = vld [vmem:[%s12464_s14 + $0x138] sm:$0xff]  }
0x10a5   :  { %7157 = vmatpush1.bf16.msra.mxu1 %v10187_v4  ;;  %7115 = vmatprep.subr.bf16.mxu0 %v10192_v1  ;;  %v10233_v4 = vld [vmem:[%s12464_s14 + $0x1b8] sm:$0xff]   ;;  %v8513_v1 = vld [vmem:[%s12463_s13 + $0x4] sm:$0xf] }
0x10a6   :  { %7158 = vmatprep.subr.bf16.mxu1 %v10195_v22  ;;  %v6926_v22 = vrot.slane %v8513_v1, %v3300_v31 }
0x10a8   :  { %7116 = vmatpush1.bf16.msra.mxu0 %v10190_v5  ;;  %v6934_v5 = vrot.slane %v8513_v1, %v3308_v32 }
0x10a9   :  { %7159 = vmatpush1.bf16.msra.mxu1 %v10193_v6  ;;  %7117 = vmatprep.subr.bf16.mxu0 %v10198_v7  ;;  %v6930_v6 = vrot.slane %v8513_v1, %v3304_v34  ;;  %v6938_v7 = vrot.slane %v8513_v1, %v3312_v35 }
0x10aa   :  { %7160 = vmatprep.subr.bf16.mxu1 %v10201_v8 }
0x10ac   :  { %7118 = vmatpush1.bf16.msra.mxu0 %v10196_v9 }
0x10ad   :  { %7161 = vmatpush1.bf16.msra.mxu1 %v10199_v10  ;;  %9044 = vmatprep.subr.bf16.mxu0 %v10202_v26 }
0x10ae   :  { %9066 = vmatprep.subr.bf16.mxu1 %v10203_v27 }
0x111f   :  { %v6849_v38 = vpop.xlane.xlu0 %6848 }
0x1120   :  { %v6852_v44 = vmul.f32 0.0078125, %v6849_v38  ;;  %v10210_v38 = vld [vmem:[%s12464_s14 + $0x150] sm:$0xff]  }
0x1121   :  { %v6851_v60 = vpop.xlane.xlu1 %6850 }
0x1122   :  { %v12112_v48 = vsub.f32 %v12080_v47, %v6852_v44  ;;  %v6853_v51 = vmul.f32 0.0078125, %v6851_v60  ;;  %v10211_v44 = vld [vmem:[%s12464_s14 + $0x1d0] sm:$0xff]  }
0x1123   :  { %v10212_v60 = vld [vmem:[%s12464_s14 + $0x110] sm:$0xff]  }
0x1124   :  { %v12115_v52 = vsub.f32 %v12084_v23, %v6853_v51  ;;  %v6856_v53 = vmul.f32 %v12112_v48, %v12112_v48  ;;  %v10214_v51 = vld [vmem:[%s12464_s14 + $0x158] sm:$0xff]  }
0x1126   :  { %6858 = vadd.xlane.f32.xlu0 %v6856_v53  ;;  %v6857_v54 = vmul.f32 %v12115_v52, %v12115_v52  ;;  %v10216_v53 = vld [vmem:[%s12464_s14 + $0x118] sm:$0xff]  }
0x1128   :  { %6860 = vadd.xlane.f32.xlu1 %v6857_v54  ;;  %v10217_v54 = vld [vmem:[%s12464_s14 + $0x198] sm:$0xff]  }
0x11b3   :  { %v6859_v11 = vpop.xlane.xlu0 %6858 }
0x11b4   :  { %v6862_v13 = vmul.f32 0.0078125, %v6859_v11 }
0x11b5   :  { %v6861_v14 = vpop.xlane.xlu1 %6860 }
0x11b6   :  { %v6864_v15 = vadd.f32 1e-05, %v6862_v13  ;;  %v6863_v17 = vmul.f32 0.0078125, %v6861_v14 }
0x11b8   :  { %10342 = vrsqrt.f32 %v6864_v15  ;;  %v6865_v18 = vadd.f32 1e-05, %v6863_v17 }
0x11ba   :  { %10344 = vrsqrt.f32 %v6865_v18 }
0x11c2   :  { %v10343_v45 = vpop.eup %10342 }
0x11c3   :  { %v6868_v21 = vmul.f32 %v10343_v45, %v12112_v48  ;;  %v10213_v48 = vld [vmem:[%s12464_s14 + $0x190] sm:$0xff]  }
0x11c4   :  { %v10345_v40 = vpop.eup %10344 }
0x11c5   :  { %v6869_v28 = vmul.f32 %v10345_v40, %v12115_v52  ;;  %v6876_v49 = vmul.f32 %v8479_v46, %v6868_v21  ;;  %v10215_v52 = vld [vmem:[%s12464_s14 + $0x1d8] sm:$0xff]  }
0x11c7   :  { %v6877_v50 = vmul.f32 %v8479_v46, %v6869_v28  ;;  %v6884_v55 = vadd.f32 %v8480_v36, %v6876_v49 }
0x11c9   :  { %v6885_v58 = vadd.f32 %v8480_v36, %v6877_v50 }
0x11cb   :  { %v6886_v19 = vpack.c.bf16 %v6885_v58, %v6884_v55 }
0x11cd   :  { %7136 = vmatmul.mubr.bf16.vlgmr.msra.gmra.mrb[100].mxu0 %v6886_v19  ;;  %7179 = vmatmul.mubr.bf16.vlgmr.msra.gmra.mrb[116].mxu1 %v6886_v19 }
0x11ce   :  { %9045 = vmatpush3.bf16.msra.mxu0 %v10204_v39  ;;  %9067 = vmatpush3.bf16.msra.mxu1 %v10205_v29 }
0x11cf   :  { %9046 = vmatprep.subr.bf16.mxu0 %v10206_v43  ;;  %9068 = vmatprep.subr.bf16.mxu1 %v10207_v37 }
0x11d2   :  { %9047 = vmatpush3.bf16.msra.mxu0 %v10208_v59  ;;  %9069 = vmatpush3.bf16.msra.mxu1 %v10209_v33 }
0x11d3   :  { %9048 = vmatprep.subr.bf16.mxu0 %v10210_v38  ;;  %9070 = vmatprep.subr.bf16.mxu1 %v10211_v44 }
0x11d6   :  { %9049 = vmatpush3.bf16.msra.mxu0 %v10212_v60  ;;  %9071 = vmatpush3.bf16.msra.mxu1 %v10213_v48 }
0x11d7   :  { %9050 = vmatprep.subr.bf16.mxu0 %v10214_v51  ;;  %9072 = vmatprep.subr.bf16.mxu1 %v10215_v52 }
0x11da   :  { %9051 = vmatpush3.bf16.msra.mxu0 %v10216_v53  ;;  %9073 = vmatpush3.bf16.msra.mxu1 %v10217_v54 }
0x11db   :  { %9052 = vmatprep.subr.bf16.mxu0 %v10218_v56  ;;  %9074 = vmatprep.subr.bf16.mxu1 %v10219_v57 }
0x11de   :  { %9053 = vmatpush3.bf16.msra.mxu0 %v10220_v12  ;;  %9075 = vmatpush3.bf16.msra.mxu1 %v10221_v16 }
0x11df   :  { %9054 = vmatprep.subr.bf16.mxu0 %v10222_v61  ;;  %9076 = vmatprep.subr.bf16.mxu1 %v10223_v62 }
0x11e2   :  { %9055 = vmatpush3.bf16.msra.mxu0 %v10224_v41  ;;  %9077 = vmatpush3.bf16.msra.mxu1 %v10225_v24 }
0x11e3   :  { %9056 = vmatprep.subr.bf16.mxu0 %v10226_v42  ;;  %9078 = vmatprep.subr.bf16.mxu1 %v10227_v63 }
0x11e6   :  { %9057 = vmatpush3.bf16.msra.mxu0 %v10228_v0  ;;  %9079 = vmatpush3.bf16.msra.mxu1 %v10229_v2 }
0x11e7   :  { %9058 = vmatprep.subr.bf16.mxu0 %v10230_v3  ;;  %9080 = vmatprep.subr.bf16.mxu1 %v10231_v25 }
0x11ea   :  { %9059 = vmatpush3.bf16.msra.mxu0 %v10232_v20  ;;  %9081 = vmatpush3.bf16.msra.mxu1 %v10233_v4 }
0x12a0   :  { %v7137_v8 = vpop.f32.mrb[100].mxu0  ;;  %v7180_v9 = vpop.f32.mrb[116].mxu1 }
0x12a1   :  { %v12308_v10 = vadd.f32 %v7137_v8, %v6926_v22  ;;  %v12310_v11 = vadd.f32 %v7180_v9, %v6934_v5  ;;  %v7139_v13 = vpop.f32.mrb[101].mxu0  ;;  %v7182_v14 = vpop.f32.mrb[117].mxu1 }
0x12a2   :  { %v12312_v15 = vadd.f32 %v7139_v13, %v6930_v6  ;;  %v12314_v31 = vadd.f32 %v7182_v14, %v6938_v7  ;;  %v7141_v17 = vpop.f32.mrb[102].mxu0  ;;  %v7184_v32 = vpop.f32.mrb[118].mxu1 }
0x12a3   :  { %v7189_v34 = vmul.f32 %v12308_v10, %v12308_v10  ;;  %v7191_v30 = vmul.f32 %v12310_v11, %v12310_v11  ;;  %v12320_v35 = vadd.f32 %v7141_v17, %v6926_v22  ;;  %v12322_v18 = vadd.f32 %v7184_v32, %v6934_v5  ;;  %v7143_v45 = vpop.f32.mrb[103].mxu0  ;;  %v7186_v46 = vpop.f32.mrb[119].mxu1 }
0x12a4   :  { %v7190_v21 = vmul.f32 %v12312_v15, %v12312_v15  ;;  %v7192_v40 = vmul.f32 %v12314_v31, %v12314_v31  ;;  %v12328_v28 = vadd.f32 %v7143_v45, %v6930_v6  ;;  %v12330_v49 = vadd.f32 %v7186_v46, %v6938_v7 }
0x12a5   :  { %v7197_v36 = vmul.f32 %v7189_v34, %v12308_v10  ;;  %v7199_v50 = vmul.f32 %v7191_v30, %v12310_v11  ;;  %v7193_v55 = vmul.f32 %v12320_v35, %v12320_v35  ;;  %v7195_v58 = vmul.f32 %v12322_v18, %v12322_v18 }
0x12a6   :  { %v7198_v19 = vmul.f32 %v7190_v21, %v12312_v15  ;;  %v7200_v26 = vmul.f32 %v7192_v40, %v12314_v31  ;;  %v7194_v27 = vmul.f32 %v12328_v28, %v12328_v28  ;;  %v7196_v39 = vmul.f32 %v12330_v49, %v12330_v49 }
0x12a7   :  { %v7205_v29 = vmul.f32 0.044715, %v7197_v36  ;;  %v7207_v43 = vmul.f32 0.044715, %v7199_v50  ;;  %v7201_v37 = vmul.f32 %v7193_v55, %v12320_v35  ;;  %v7203_v59 = vmul.f32 %v7195_v58, %v12322_v18 }
0x12a8   :  { %v7206_v33 = vmul.f32 0.044715, %v7198_v19  ;;  %v7208_v38 = vmul.f32 0.044715, %v7200_v26  ;;  %v7202_v44 = vmul.f32 %v7194_v27, %v12328_v28  ;;  %v7204_v60 = vmul.f32 %v7196_v39, %v12330_v49 }
0x12a9   :  { %v7213_v48 = vadd.f32 %v7205_v29, %v12308_v10  ;;  %v7215_v51 = vadd.f32 %v7207_v43, %v12310_v11  ;;  %v7209_v52 = vmul.f32 0.044715, %v7201_v37  ;;  %v7211_v53 = vmul.f32 0.044715, %v7203_v59 }
0x12aa   :  { %v7214_v54 = vadd.f32 %v7206_v33, %v12312_v15  ;;  %v7216_v56 = vadd.f32 %v7208_v38, %v12314_v31  ;;  %v7210_v57 = vmul.f32 0.044715, %v7202_v44  ;;  %v7212_v12 = vmul.f32 0.044715, %v7204_v60 }
0x12ab   :  { %v7221_v16 = vmul.f32 0.7978846, %v7213_v48  ;;  %v7223_v61 = vmul.f32 0.7978846, %v7215_v51  ;;  %v7217_v62 = vadd.f32 %v7209_v52, %v12320_v35  ;;  %v7219_v41 = vadd.f32 %v7211_v53, %v12322_v18 }
0x12ac   :  { %v7222_v24 = vmul.f32 0.7978846, %v7214_v54  ;;  %v7224_v42 = vmul.f32 0.7978846, %v7216_v56  ;;  %v7218_v63 = vadd.f32 %v7210_v57, %v12328_v28  ;;  %v7220_v0 = vadd.f32 %v7212_v12, %v12330_v49 }
0x12ad   :  { %10346 = vtanh.f32 %v7221_v16  ;;  %v7225_v2 = vmul.f32 0.7978846, %v7217_v62  ;;  %v7227_v3 = vmul.f32 0.7978846, %v7219_v41 }
0x12ae   :  { %10348 = vtanh.f32 %v7223_v61  ;;  %v7226_v25 = vmul.f32 0.7978846, %v7218_v63  ;;  %v7228_v20 = vmul.f32 0.7978846, %v7220_v0 }
0x12af   :  { %10350 = vtanh.f32 %v7222_v24 }
0x12b0   :  { %10352 = vtanh.f32 %v7224_v42 }
0x12b1   :  { %10354 = vtanh.f32 %v7225_v2 }
0x12b2   :  { %10356 = vtanh.f32 %v7227_v3 }
0x12b3   :  { %10358 = vtanh.f32 %v7226_v25 }
0x12b4   :  { %10360 = vtanh.f32 %v7228_v20 }
0x12b7   :  { %v10347_v4 = vpop.eup %10346 }
0x12b8   :  { %v10349_v1 = vpop.eup %10348  ;;  %v7237_v22 = vadd.f32 1.0, %v10347_v4 }
0x12b9   :  { %v10351_v5 = vpop.eup %10350  ;;  %v7239_v6 = vadd.f32 1.0, %v10349_v1 }
0x12ba   :  { %v10353_v7 = vpop.eup %10352  ;;  %v7238_v8 = vadd.f32 1.0, %v10351_v5  ;;  %v7245_v17 = vmul.f32 0.5, %v7237_v22 }
0x12bb   :  { %v10355_v9 = vpop.eup %10354  ;;  %v7240_v13 = vadd.f32 1.0, %v10353_v7  ;;  %v7247_v30 = vmul.f32 0.5, %v7239_v6 }
0x12bc   :  { %v10357_v14 = vpop.eup %10356  ;;  %v7241_v32 = vadd.f32 1.0, %v10355_v9  ;;  %v7246_v36 = vmul.f32 0.5, %v7238_v8  ;;  %v7253_v19 = vmul.f32 %v7245_v17, %v12308_v10 }
0x12bd   :  { %v10359_v34 = vpop.eup %10358  ;;  %v7243_v45 = vadd.f32 1.0, %v10357_v14  ;;  %v7248_v58 = vmul.f32 0.5, %v7240_v13  ;;  %v7255_v39 = vmul.f32 %v7247_v30, %v12310_v11  ;;  %v10235_v13 = vld [vmem:[%s12470_s20] sm:$0xff]  }
0x12be   :  { %v10361_v46 = vpop.eup %10360  ;;  %v7249_v21 = vmul.f32 0.5, %v7241_v32  ;;  %v7242_v40 = vadd.f32 1.0, %v10359_v34  ;;  %v7254_v37 = vmul.f32 %v7246_v36, %v12312_v15  ;;  %v8611_v15 = vld [vmem:[%s12465_s15 + $0x1] ss:$0 sm:$0xff] }
0x12bf   :  { %v7251_v50 = vmul.f32 0.5, %v7243_v45  ;;  %v7244_v55 = vadd.f32 1.0, %v10361_v46  ;;  %v7256_v38 = vmul.f32 %v7248_v58, %v12314_v31  ;;  %v10238_v58 = vld [vmem:[%s12470_s20 + $0x50] sm:$0xff]  }
0x12c0   :  { %v7257_v26 = vmul.f32 %v7249_v21, %v12320_v35  ;;  %v7250_v27 = vmul.f32 0.5, %v7242_v40 }
0x12c1   :  { %v7259_v29 = vmul.f32 %v7251_v50, %v12322_v18  ;;  %v7252_v43 = vmul.f32 0.5, %v7244_v55  ;;  %v10236_v50 = vld [vmem:[%s12470_s20 + $0x48] sm:$0xff]  }
0x12c2   :  { %v7258_v59 = vmul.f32 %v7250_v27, %v12328_v28  ;;  %v7261_v33 = vpack.c.bf16 %v7257_v26, %v7253_v19  ;;  %v10237_v55 = vld [vmem:[%s12470_s20 + $0x8] sm:$0xff]   ;;  %v10239_v19 = vld [vmem:[%s12470_s20 + $0x10] sm:$0xff]   ;;  %v10240_v26 = vld [vmem:[%s12470_s20 + $0x58] sm:$0xff]  }
0x12c3   :  { %v7260_v44 = vmul.f32 %v7252_v43, %v12330_v49  ;;  %v7263_v60 = vpack.c.bf16 %v7259_v29, %v7255_v39  ;;  %v10241_v27 = vld [vmem:[%s12470_s20 + $0x18] sm:$0xff]   ;;  %v10242_v39 = vld [vmem:[%s12470_s20 + $0x60] sm:$0xff]   ;;  %v10244_v43 = vld [vmem:[%s12470_s20 + $0x68] sm:$0xff]  }
0x12c4   :  { %v7262_v48 = vpack.c.bf16 %v7258_v59, %v7254_v37  ;;  %v10243_v29 = vld [vmem:[%s12470_s20 + $0x20] sm:$0xff]   ;;  %v10245_v37 = vld [vmem:[%s12470_s20 + $0x28] sm:$0xff]   ;;  %v10246_v59 = vld [vmem:[%s12470_s20 + $0x70] sm:$0xff]  }
0x12c5   :  { %v7264_v10 = vpack.c.bf16 %v7260_v44, %v7256_v38  ;;  %v10248_v38 = vld [vmem:[%s12470_s20 + $0x78] sm:$0xff]  }
0x12c6   :  { %7562 = vmatprep.mubr.bf16.mxu0 %v7262_v48  ;;  %v10249_v44 = vld [vmem:[%s12470_s20 + $0x38] sm:$0xff]  }
0x12c7   :  { %7603 = vmatprep.mubr.bf16.mxu1 %v7264_v10  ;;  %7563 = vmatmul.mubr.bf16.vlgmr.msra.gmra.mrb[104].mxu0 %v7261_v33  ;;  %v10247_v33 = vld [vmem:[%s12470_s20 + $0x30] sm:$0xff]  }
0x12c8   :  { %7604 = vmatmul.mubr.bf16.vlgmr.msra.gmra.mrb[120].mxu1 %v7263_v60 }
0x139a   :  { %v9060_v11 = vpop.f32.mrb[104].mxu0 }
0x139b   :  { %v9082_v35 = vpop.f32.mrb[120].mxu1  ;;  %v9061_v18 = vpop.f32.mrb[105].mxu0 }
0x139c   :  { %v9062_v28 = vadd.f32 %v9061_v18, %v9060_v11  ;;  %v9083_v51 = vpop.f32.mrb[121].mxu1  ;;  %v9063_v52 = vpop.f32.mrb[106].mxu0  ;;  %v8644_v18 = vld [vmem:[%s12466_s16] ss:$0 sm:$0xff] }
0x139d   :  { %v9084_v31 = vadd.f32 %v9083_v51, %v9082_v35  ;;  %v9085_v53 = vpop.f32.mrb[122].mxu1  ;;  %v9064_v49 = vpop.f32.mrb[107].mxu0 }
0x139e   :  { %v7565_v54 = vadd.f32 %v9062_v28, %v8611_v15  ;;  %v9065_v56 = vadd.f32 %v9064_v49, %v9063_v52  ;;  %v9086_v57 = vpop.f32.mrb[123].mxu1  ;;  %v8646_v28 = vld [vmem:[%s12468_s18] ss:$0 sm:$0xff] }
0x139f   :  { %v9087_v12 = vadd.f32 %v9086_v57, %v9085_v53 }
0x13a0   :  { %v7606_v16 = vadd.f32 %v9084_v31, %v7565_v54  ;;  %v7568_v61 = vadd.f32 %v9065_v56, %v8611_v15  ;;  %v8647_v54 = vld [vmem:[%s12469_s19] ss:$0 sm:$0xff] }
0x13a1   :  { %v8645_v56 = vld [vmem:[%s12467_s17] ss:$0 sm:$0xff]  ;;  %s10391_s17 = smov [#allocation2]  }
0x13a2   :  { %v7612_v62 = vadd.f32 %v7606_v16, %v12080_v47  ;;  %v7609_v41 = vadd.f32 %v9087_v12, %v7568_v61  ;;  %s7894_s19 = sshll.u32 %s10391_s17, 4  ;;  %s7895_s19 = int_to_ptr.vmem [resolvable:$true] %s7894_s19 }
0x13a3   :  { %s10364_s30 = scalar_lea.vmem %s7895_s19, 32  ;;  %p10369_p1 = scmp.lt.s32.totalorder %s7895_s19, %s7895_s19 }
0x13a4   :  { %v7614_v24 = vrot.slane %v7612_v62, 4  ;;  %v7613_v42 = vadd.f32 %v7609_v41, %v12084_v23  ;;  %v10234_v23 = vld [vmem:[%s12470_s20 + $0x40] sm:$0xff]   ;;  %p10365_p0 = scmp.ne.s32.totalorder %s7895_s19, %s10364_s30  ;;  %p10370_p2 = scmp.lt.s32.totalorder %s10364_s30, %s10364_s30 }
0x13a5   :  { %9088 = vmatprep.subr.bf16.mxu0 %v10234_v23 }
0x13a6   :  { %v7615_v63 = vadd.f32 %v7614_v24, %v7612_v62  ;;  %v7620_v0 = vrot.slane %v7613_v42, 4  ;;  %9089 = vmatpush3.bf16.msra.mxu0 %v10235_v13  ;;  %p10371_p3 = por %p10370_p2, %p10369_p1 }
0x13a7   :  { %9090 = vmatprep.subr.bf16.mxu0 %v10236_v50 }
0x13a8   :  { %v7616_v2 = vrot.slane %v7615_v63, 2  ;;  %v7621_v3 = vadd.f32 %v7620_v0, %v7613_v42  ;;  %p10372_p4 = pnand %p10371_p3, %p10365_p0 }
0x13aa   :  { %v7622_v25 = vrot.slane %v7621_v3, 2  ;;  %v7617_v20 = vadd.f32 %v7616_v2, %v7615_v63  ;;  %9091 = vmatpush3.bf16.msra.mxu0 %v10237_v55 }
0x13ab   :  { %9092 = vmatprep.subr.bf16.mxu0 %v10238_v58 }
0x13ac   :  { %v7618_v4 = vrot.slane %v7617_v20, 1  ;;  %v7623_v1 = vadd.f32 %v7622_v25, %v7621_v3  ;;  %v8648_v25 = vld [vmem:[%s12471_s21] ss:$0 sm:$0xff] }
0x13ae   :  { %v7619_v22 = vadd.f32 %v7618_v4, %v7617_v20  ;;  %v7624_v5 = vrot.slane %v7623_v1, 1  ;;  %9093 = vmatpush3.bf16.msra.mxu0 %v10239_v19 }
0x13af   :  { %9094 = vmatprep.subr.bf16.mxu0 %v10240_v26 }
0x13b0   :  { %v7625_v6 = vadd.f32 %v7624_v5, %v7623_v1  ;;  %v7627_v7 = vmul.f32 0.125, %v7619_v22 }
0x13b2   :  { %v7628_v8 = vmul.f32 0.125, %v7625_v6  ;;  %9095 = vmatpush3.bf16.msra.mxu0 %v10241_v27 }
0x13b3   :  { %9096 = vmatprep.subr.bf16.mxu0 %v10242_v39 }
0x13b4   :  { %v7632_v47 = vsel %vm7631_vm3, %v7628_v8, %v7627_v7 }
0x13b5   :  { %v7635_v9 = vsel %vm7634_vm4, %v7632_v47, 0.0 }
0x13b6   :  { %7636 = vadd.xlane.f32.xlu0 %v7635_v9  ;;  %9097 = vmatpush3.bf16.msra.mxu0 %v10243_v29 }
0x13b7   :  { %9098 = vmatprep.subr.bf16.mxu0 %v10244_v43 }
0x13ba   :  { %9099 = vmatpush3.bf16.msra.mxu0 %v10245_v37 }
0x13bb   :  { %9100 = vmatprep.subr.bf16.mxu0 %v10246_v59 }
0x13be   :  { %9101 = vmatpush3.bf16.msra.mxu0 %v10247_v33 }
0x13bf   :  { %9102 = vmatprep.subr.bf16.mxu0 %v10248_v38 }
0x13c2   :  { %9103 = vmatpush3.bf16.msra.mxu0 %v10249_v44 }
0x1443   :  { %v7637_v14 = vpop.xlane.xlu0 %7636 }
0x1444   :  { %v7638_v17 = vmul.f32 0.0078125, %v7637_v14 }
0x1446   :  { %v7640_v32 = vrot.slane %v7638_v17, 1  ;;  %v7643_v34 = vsub.f32 %v7627_v7, %v7638_v17 }
0x1448   :  { %v7644_v30 = vsub.f32 %v7628_v8, %v7640_v32  ;;  %v7645_v46 = vmul.f32 %v7643_v34, %v7643_v34 }
0x144a   :  { %v7646_v45 = vmul.f32 %v7644_v30, %v7644_v30 }
0x144c   :  { %v7649_v21 = vrot.slane %v7646_v45, 7 }
0x144e   :  { %v7650_v40 = vsel %vm7631_vm3, %v7649_v21, %v7645_v46 }
0x144f   :  { %v7652_v36 = vsel %vm7634_vm4, %v7650_v40, 0.0 }
0x1450   :  { %7653 = vadd.xlane.f32.xlu1 %v7652_v36 }
0x14dd   :  { %v7654_v60 = vpop.xlane.xlu1 %7653 }
0x14de   :  { %v7655_v48 = vmul.f32 0.0078125, %v7654_v60 }
0x14e0   :  { %v7656_v10 = vadd.f32 1e-05, %v7655_v48 }
0x14e2   :  { %10362 = vrsqrt.f32 %v7656_v10 }
0x14ec   :  { %v10363_v11 = vpop.eup %10362 }
0x14ed   :  { %v7659_v35 = vrot.slane %v10363_v11, 1  ;;  %v7662_v15 = vmul.f32 %v10363_v11, %v7643_v34 }
0x14ef   :  { %v7663_v51 = vmul.f32 %v7659_v35, %v7644_v30  ;;  %v7671_v52 = vmul.f32 %v8644_v18, %v7662_v15  ;;  %v7689_v31 = vmul.f32 %v8646_v28, %v7662_v15 }
0x14f1   :  { %v7690_v53 = vmul.f32 %v8646_v28, %v7663_v51  ;;  %v7672_v49 = vmul.f32 %v8644_v18, %v7663_v51  ;;  %v7698_v16 = vadd.f32 %v8647_v54, %v7689_v31  ;;  %v7680_v62 = vadd.f32 %v8645_v56, %v7671_v52 }
0x14f3   :  { %v7699_v57 = vadd.f32 %v8647_v54, %v7690_v53  ;;  %v7681_v12 = vadd.f32 %v8645_v56, %v7672_v49 }
0x14f5   :  { %v7707_v61 = vrot.slane %v7699_v57, 7  ;;  %v7702_v41 = vrot.slane %v7681_v12, 7 }
0x14f7   :  { %v7708_v24 = vsel %vm7631_vm3, %v7707_v61, %v7698_v16  ;;  %v7703_v42 = vsel %vm7631_vm3, %v7702_v41, %v7680_v62 }
0x14f8   :  { %v7711_v63 = vpack.c.bf16 %v7708_v24, %v7708_v24  ;;  %v7710_v0 = vpack.c.bf16 %v7703_v42, %v7703_v42 }
0x14fa   :  { %7879 = vmatprep.mubr.bf16.mxu0 %v7711_v63 }
0x14fb   :  { %7880 = vmatmul.mubr.bf16.vlgmr.msra.gmra.mrb[108].mxu0 %v7710_v0 }
0x15ce   :  { %v9104_v2 = vpop.f32.mrb[108].mxu0 }
0x15cf   :  { %v9105_v3 = vpop.f32.mrb[109].mxu0 }
0x15d0   :  { %v9106_v20 = vadd.f32 %v9105_v3, %v9104_v2  ;;  %v9107_v4 = vpop.f32.mrb[110].mxu0 }
0x15d1   :  { %v9108_v1 = vpop.f32.mrb[111].mxu0 }
0x15d2   :  { %v7882_v22 = vadd.f32 %v9106_v20, %v8648_v25 }
0x15d4   :  { %7887 = vst [vmem:[#allocation2] sm:$0x3] %v7882_v22 }
0x15d5   :  { %10375 = shalt.err (!%p10372_p4)
}
0x15d6   :  { %s10376_s23 = scalar_lea.hbm %s12472_s22, 32 }
0x15d7   :  { %p10377_p5 = scmp.ne.s32.totalorder %s12472_s22, %s10376_s23  ;;  %p10380_p6 = scmp.lt.u32.totalorder %s10376_s23, %s12472_s22 }
0x15d9   :  { %p10382_p7 = pnand %p10380_p6, %p10377_p5 }
0x15db   :  { %10385 = shalt.err (!%p10382_p7)
}
0x15dc   :  { %7897 = dma.vmem_to_hbm [thread:$0]  %s7895_s19, 32, %s12472_s22, [#allocation3]  }
0x15dd   :  { %10386 = dma.done.wait [#allocation3], 32  }
0x15de   :  { %10387 = vsyncadd [#allocation3], 4294967264 }
0x15df   :  { %7901 = vsyncpa [#allocation3], 1 }

</bundles_post_ra>
